<compile_context>
chip_gen: v6e
topology: v6e:2x2x1
jax: 0.10.0
libtpu: 0.0.40
codegen_flags: <defaults>
</compile_context>

<pallas_src>
import functools

import jax
import jax.numpy as jnp
from jax.experimental import pallas as pl
from jax.experimental.pallas import tpu as pltpu


# ----------------------------------------------------------------------------
# helpers
# ----------------------------------------------------------------------------
def _round_up(x, m):
    return (x + m - 1) // m * m


def _pad_k(k):
    # contraction dim: keep it the full block when small, tile by 512 when big
    return _round_up(k, 512) if k > 512 else _round_up(k, 8)


_VMEM_LIMIT = 48 * 1024 * 1024  # > all defaults, safely below v7x's 64 MiB


# ----------------------------------------------------------------------------
# Pallas kernels
# ----------------------------------------------------------------------------
def _matmul_bias_relu_kernel(x_ref, w_ref, b_ref, o_ref, acc_ref):
    """Tiled (M,K)@(K,N) with f32 accumulator; epilogue = +bias, ReLU, cast."""
    @pl.when(pl.program_id(2) == 0)
    def _():
        acc_ref[...] = jnp.zeros_like(acc_ref)

    acc_ref[...] += jnp.dot(x_ref[...], w_ref[...],
                            preferred_element_type=jnp.float32)

    @pl.when(pl.program_id(2) == pl.num_programs(2) - 1)
    def _():
        o_ref[...] = jnp.maximum(acc_ref[...] + b_ref[...],
                                 0.0).astype(o_ref.dtype)


def _conv3x3_bias_relu_kernel(x_ref, w_ref, b_ref, o_ref):
    """3x3 conv (pad already applied) for one batch element / one N tile.

    x_ref: (1, H+2, W+2, C) bf16   w_ref: (3, 3, C, tn) bf16
    b_ref: (1, tn) f32             o_ref: (1, H, W, tn)
    The 9 taps are accumulated in-kernel (no im2col in HBM).
    """
    _, ho, wo, tn = o_ref.shape
    c = x_ref.shape[-1]
    acc = jnp.zeros((ho * wo, tn), jnp.float32)
    for di in range(3):
        for dj in range(3):
            xs = x_ref[0, di:di + ho, dj:dj + wo, :]       # (ho, wo, c) bf16
            xs = xs.reshape(ho * wo, c)
            acc = acc + jnp.dot(xs, w_ref[di, dj],
                                preferred_element_type=jnp.float32)
    out = jnp.maximum(acc + b_ref[...], 0.0)
    o_ref[...] = out.reshape(o_ref.shape).astype(o_ref.dtype)


# ----------------------------------------------------------------------------
# kernel wrappers
# ----------------------------------------------------------------------------
def _matmul_bias_relu(x2d, w, bias, out_dtype):
    """relu(x2d @ w + bias); x2d (M,K) bf16, w (K,N) bf16, bias (1,N) f32."""
    M, K = x2d.shape
    Kw, N = w.shape
    assert Kw == K and bias.shape == (1, N) and N % 128 == 0

    tm = 256
    Mp = _round_up(M, tm)
    if Mp != M:
        x2d = jnp.pad(x2d, ((0, Mp - M), (0, 0)))
    tn = 256 if N % 256 == 0 else 128          # 256 feeds v6e/v7x MXU; 128 ok on v5e
    tk = 512 if K > 512 else K                 # K padded to a multiple of 512 if big
    assert K % tk == 0

    out_bytes = jnp.dtype(out_dtype).itemsize
    return pl.pallas_call(
        _matmul_bias_relu_kernel,
        out_shape=jax.ShapeDtypeStruct((Mp, N), out_dtype),
        grid=(Mp // tm, N // tn, K // tk),
        in_specs=[
            pl.BlockSpec((tm, tk), lambda i, j, k: (i, k)),
            pl.BlockSpec((tk, tn), lambda i, j, k: (k, j)),
            pl.BlockSpec((1, tn), lambda i, j, k: (0, j)),
        ],
        out_specs=pl.BlockSpec((tm, tn), lambda i, j, k: (i, j)),
        scratch_shapes=[pltpu.VMEM((tm, tn), jnp.float32)],
        compiler_params=pltpu.CompilerParams(
            dimension_semantics=("parallel", "parallel", "arbitrary"),
            vmem_limit_bytes=_VMEM_LIMIT),
        cost_estimate=pl.CostEstimate(
            flops=int(2 * Mp * N * K),
            transcendentals=0,
            bytes_accessed=int(Mp * K * 2 + K * N * 2 + Mp * N * out_bytes)),
    )(x2d, w, bias)


def _conv3x3_bias_relu(x_nhwc, w_taps, bias, out_dtype):
    """relu(conv3x3(x) + bias); x (B,H,W,C) bf16, w (3,3,C,N) bf16, bias (1,N)."""
    B, H, W, C = x_nhwc.shape
    _, _, Cw, N = w_taps.shape
    assert Cw == C and bias.shape == (1, N) and N % 128 == 0

    xp = jnp.pad(x_nhwc, ((0, 0), (1, 1), (1, 1), (0, 0)))   # spatial pad=1
    Hp, Wp = H + 2, W + 2
    tn = 256 if N % 256 == 0 else 128

    out_bytes = jnp.dtype(out_dtype).itemsize
    return pl.pallas_call(
        _conv3x3_bias_relu_kernel,
        out_shape=jax.ShapeDtypeStruct((B, H, W, N), out_dtype),
        grid=(B, N // tn),
        in_specs=[
            pl.BlockSpec((1, Hp, Wp, C), lambda b, n: (b, 0, 0, 0)),
            pl.BlockSpec((3, 3, C, tn), lambda b, n: (0, 0, 0, n)),
            pl.BlockSpec((1, tn), lambda b, n: (0, n)),
        ],
        out_specs=pl.BlockSpec((1, H, W, tn), lambda b, n: (b, 0, 0, n)),
        compiler_params=pltpu.CompilerParams(
            dimension_semantics=("parallel", "parallel"),
            vmem_limit_bytes=_VMEM_LIMIT),
        cost_estimate=pl.CostEstimate(
            flops=int(2 * B * H * W * 9 * C * N),
            transcendentals=0,
            bytes_accessed=int(B * Hp * Wp * C * 2 + 9 * C * N * 2
                               + B * H * W * N * out_bytes)),
    )(xp, w_taps, bias)


# ----------------------------------------------------------------------------
# parameters: raw (PyTorch-like) + one-time prep (transpose / BN fold / bf16)
# ----------------------------------------------------------------------------
def init_raw_params(key, in_ch, mid_ch, out_ch):
    ks = jax.random.split(key, 4)
    c1 = in_ch + mid_ch
    lim1 = 1.0 / (c1 ** 0.5)
    lim2 = 1.0 / ((mid_ch * 9) ** 0.5)
    return {
        "w1": jax.random.uniform(ks[0], (mid_ch, c1, 1, 1), jnp.float32, -lim1, lim1),
        "b1": jax.random.uniform(ks[1], (mid_ch,), jnp.float32, -lim1, lim1),
        "gamma1": jnp.ones((mid_ch,), jnp.float32),
        "beta1": jnp.zeros((mid_ch,), jnp.float32),
        "mean1": jnp.zeros((mid_ch,), jnp.float32),
        "var1": jnp.ones((mid_ch,), jnp.float32),
        "w2": jax.random.uniform(ks[2], (out_ch, mid_ch, 3, 3), jnp.float32, -lim2, lim2),
        "b2": jax.random.uniform(ks[3], (out_ch,), jnp.float32, -lim2, lim2),
        "gamma2": jnp.ones((out_ch,), jnp.float32),
        "beta2": jnp.zeros((out_ch,), jnp.float32),
        "mean2": jnp.zeros((out_ch,), jnp.float32),
        "var2": jnp.ones((out_ch,), jnp.float32),
    }


def prepare_params(raw, in_ch, mid_ch, out_ch, eps=1e-5):
    """Fold inference-mode BN into weights/bias, transpose, pad, cast to bf16."""
    k1 = in_ch + mid_ch
    k1p = _pad_k(k1)
    midp = _round_up(mid_ch, 128)   # conv1 N pad == conv2 C pad (chain stays exact)
    outp = _round_up(out_ch, 128)

    # conv1 (1x1): (mid, k1, 1, 1) -> (k1, mid), BN scale folded into columns
    s1 = raw["gamma1"] * jax.lax.rsqrt(raw["var1"] + eps)
    w1 = raw["w1"][:, :, 0, 0].T * s1[None, :]
    b1 = (raw["b1"] - raw["mean1"]) * s1 + raw["beta1"]
    w1 = jnp.pad(w1, ((0, k1p - k1), (0, midp - mid_ch))).astype(jnp.bfloat16)
    b1 = jnp.pad(b1, (0, midp - mid_ch)).reshape(1, midp).astype(jnp.float32)

    # conv2 (3x3): (out, mid, 3, 3) -> (3, 3, mid, out), BN scale folded
    s2 = raw["gamma2"] * jax.lax.rsqrt(raw["var2"] + eps)
    w2 = jnp.transpose(raw["w2"], (2, 3, 1, 0)) * s2[None, None, None, :]
    b2 = (raw["b2"] - raw["mean2"]) * s2 + raw["beta2"]
    w2 = jnp.pad(w2, ((0, 0), (0, 0), (0, midp - mid_ch),
                      (0, outp - out_ch))).astype(jnp.bfloat16)
    b2 = jnp.pad(b2, (0, outp - out_ch)).reshape(1, outp).astype(jnp.float32)

    return {"w1": w1, "b1": b1, "w2": w2, "b2": b2}


# ----------------------------------------------------------------------------
# forward (mirrors DoubleConv.forward)
# ----------------------------------------------------------------------------
def double_conv_forward(params, x_nchw, *, out_ch):
    x = jnp.transpose(x_nchw, (0, 2, 3, 1))            # NCHW -> NHWC
    B, H, W, C = x.shape

    w1, b1 = params["w1"], params["b1"]
    k1p, midp = w1.shape
    if C < k1p:                                         # zero-pad channels (exact)
        x = jnp.pad(x, ((0, 0), (0, 0), (0, 0), (0, k1p - C)))
    x2d = x.reshape(B * H * W, k1p).astype(jnp.bfloat16)

    # conv1 (1x1) + BN + ReLU  -> bf16 activation (feeds conv2's MXU)
    h2d = _matmul_bias_relu(x2d, w1, b1, out_dtype=jnp.bfloat16)
    h = h2d[:B * H * W].reshape(B, H, W, midp)

    # conv2 (3x3, pad=1) + BN + ReLU  -> f32 module output
    y = _conv3x3_bias_relu(h, params["w2"], params["b2"], out_dtype=jnp.float32)
    y = y[..., :out_ch]
    return jnp.transpose(y, (0, 3, 1, 2))               # NHWC -> NCHW


# ----------------------------------------------------------------------------
# plain-JAX f32 reference (for numerical sanity vs bf16 MXU path)
# ----------------------------------------------------------------------------
def double_conv_reference(raw, x_nchw, eps=1e-5):
    dn = ("NCHW", "OIHW", "NCHW")

    def bn(y, g, b, m, v):
        s = (g * jax.lax.rsqrt(v + eps))[None, :, None, None]
        return (y - m[None, :, None, None]) * s + b[None, :, None, None]

    y = jax.lax.conv_general_dilated(x_nchw, raw["w1"], (1, 1), "VALID",
                                     dimension_numbers=dn)
    y = y + raw["b1"][None, :, None, None]
    y = jnp.maximum(bn(y, raw["gamma1"], raw["beta1"], raw["mean1"], raw["var1"]), 0.0)
    y = jax.lax.conv_general_dilated(y, raw["w2"], (1, 1), ((1, 1), (1, 1)),
                                     dimension_numbers=dn)
    y = y + raw["b2"][None, :, None, None]
    y = jnp.maximum(bn(y, raw["gamma2"], raw["beta2"], raw["mean2"], raw["var2"]), 0.0)
    return y


# ----------------------------------------------------------------------------
if __name__ == "__main__":
    IN_CH, MID_CH, OUT_CH = 32, 32, 64
    B, H, W = 2, 16, 16

    key = jax.random.PRNGKey(0)
    pkey, xkey = jax.random.split(key)
    raw = init_raw_params(pkey, IN_CH, MID_CH, OUT_CH)
    params = prepare_params(raw, IN_CH, MID_CH, OUT_CH)

    x = jax.random.normal(xkey, (B, IN_CH + MID_CH, H, W), jnp.float32)  # NCHW

    fwd = jax.jit(functools.partial(double_conv_forward, out_ch=OUT_CH))
    y = jax.block_until_ready(fwd(params, x))

    assert y.shape == (B, OUT_CH, H, W)
    assert bool(jnp.all(jnp.isfinite(y)))

    # sanity check against an f32 XLA reference (generous tol: bf16 MXU operands)
    ref = double_conv_reference(raw, x)
    err = float(jnp.max(jnp.abs(y - ref)))
    scale = float(jnp.max(jnp.abs(ref))) + 1e-6
    assert err <= 0.05 * scale + 0.05, f"mismatch: max_err={err}, scale={scale}"

    print("KERNEL_OK")
</pallas_src>

<mosaic_0001>
module attributes {stable_mosaic.version = 11 : i64} {
  func.func @_matmul_bias_relu_kernel(%arg0: i32, %arg1: i32, %arg2: i32, %arg3: memref<256x64xbf16, #tpu.memory_space<vmem>>, %arg4: memref<64x128xbf16, #tpu.memory_space<vmem>>, %arg5: memref<1x128xf32, #tpu.memory_space<vmem>>, %arg6: memref<256x128xbf16, #tpu.memory_space<vmem>>, %arg7: memref<256x128xf32, #tpu.memory_space<vmem>>) attributes {dimension_semantics = [#tpu.dimension_semantics<parallel>, #tpu.dimension_semantics<parallel>, #tpu.dimension_semantics<arbitrary>], iteration_bounds = array<i64: 2, 1, 1>, scalar_prefetch = 0 : i64, scratch_operands = 1 : i64, tpu.core_type = #tpu.core_type<tc>, window_params = [{transform_indices = @transform_0, window_bounds = array<i64: 256, 64>}, {transform_indices = @transform_1, window_bounds = array<i64: 64, 128>}, {transform_indices = @transform_2, window_bounds = array<i64: 1, 128>}, {transform_indices = @transform_3, window_bounds = array<i64: 256, 128>}]} {
    %c0_i32 = arith.constant 0 : i32
    %0 = arith.cmpi eq, %arg2, %c0_i32 : i32
    %1 = arith.extui %0 : i1 to i32
    %c0_i32_0 = arith.constant 0 : i32
    %2 = arith.cmpi ne, %1, %c0_i32_0 : i32
    scf.if %2 {
      %cst_10 = arith.constant 0.000000e+00 : f32
      %12 = vector.broadcast %cst_10 : f32 to vector<256x128xf32>
      %c0_11 = arith.constant 0 : index
      %c0_12 = arith.constant 0 : index
      %13 = vector.load %arg7[%c0_11, %c0_12] : memref<256x128xf32, #tpu.memory_space<vmem>>, vector<256x128xf32>
      tpu.vector_store %arg7[%c0_11, %c0_12], %12 {strides = array<i32>} : memref<256x128xf32, #tpu.memory_space<vmem>>, vector<256x128xf32>,
    } else {
    }
    %c0 = arith.constant 0 : index
    %c0_1 = arith.constant 0 : index
    %3 = vector.load %arg7[%c0, %c0_1] : memref<256x128xf32, #tpu.memory_space<vmem>>, vector<256x128xf32>
    %c0_2 = arith.constant 0 : index
    %c0_3 = arith.constant 0 : index
    %4 = vector.load %arg3[%c0_2, %c0_3] : memref<256x64xbf16, #tpu.memory_space<vmem>>, vector<256x64xbf16>
    %c0_4 = arith.constant 0 : index
    %c0_5 = arith.constant 0 : index
    %5 = vector.load %arg4[%c0_4, %c0_5] : memref<64x128xbf16, #tpu.memory_space<vmem>>, vector<64x128xbf16>
    %cst = arith.constant dense<0.000000e+00> : vector<256x128xf32>
    %6 = tpu.matmul %4, %5, %cst {dimension_numbers = #tpu.dot_dimension_numbers<[1], [0], [0], [1], [0, 0, 1, 1], [], []>} : vector<256x64xbf16>, vector<64x128xbf16>, vector<256x128xf32> -> vector<256x128xf32>
    %7 = arith.addf %3, %6 : vector<256x128xf32>
    %c0_6 = arith.constant 0 : index
    %c0_7 = arith.constant 0 : index
    %8 = vector.load %arg7[%c0_6, %c0_7] : memref<256x128xf32, #tpu.memory_space<vmem>>, vector<256x128xf32>
    tpu.vector_store %arg7[%c0_6, %c0_7], %7 {strides = array<i32>} : memref<256x128xf32, #tpu.memory_space<vmem>>, vector<256x128xf32>,
    %c0_i32_8 = arith.constant 0 : i32
    %9 = arith.cmpi eq, %arg2, %c0_i32_8 : i32
    %10 = arith.extui %9 : i1 to i32
    %c0_i32_9 = arith.constant 0 : i32
    %11 = arith.cmpi ne, %10, %c0_i32_9 : i32
    scf.if %11 {
      %c0_10 = arith.constant 0 : index
      %c0_11 = arith.constant 0 : index
      %12 = vector.load %arg7[%c0_10, %c0_11] : memref<256x128xf32, #tpu.memory_space<vmem>>, vector<256x128xf32>
      %c0_12 = arith.constant 0 : index
      %c0_13 = arith.constant 0 : index
      %13 = vector.load %arg5[%c0_12, %c0_13] : memref<1x128xf32, #tpu.memory_space<vmem>>, vector<1x128xf32>
      %14 = vector.broadcast %13 : vector<1x128xf32> to vector<256x128xf32>
      %15 = arith.addf %12, %14 : vector<256x128xf32>
      %cst_14 = arith.constant 0.000000e+00 : f32
      %16 = vector.broadcast %cst_14 : f32 to vector<256x128xf32>
      %17 = arith.maximumf %15, %16 : vector<256x128xf32>
      %18 = arith.truncf %17 : vector<256x128xf32> to vector<256x128xbf16>
      %c0_15 = arith.constant 0 : index
      %c0_16 = arith.constant 0 : index
      %19 = vector.load %arg6[%c0_15, %c0_16] : memref<256x128xbf16, #tpu.memory_space<vmem>>, vector<256x128xbf16>
      tpu.vector_store %arg6[%c0_15, %c0_16], %18 {strides = array<i32>} : memref<256x128xbf16, #tpu.memory_space<vmem>>, vector<256x128xbf16>,
    } else {
    }
    return
  }
  func.func @transform_0(%arg0: i32, %arg1: i32, %arg2: i32) -> (i32, i32) {
    %c0_i32 = arith.constant 0 : i32
    return %arg0, %arg2 : i32, i32
  }
  func.func @transform_1(%arg0: i32, %arg1: i32, %arg2: i32) -> (i32, i32) {
    %c0_i32 = arith.constant 0 : i32
    return %arg2, %arg1 : i32, i32
  }
  func.func @transform_2(%arg0: i32, %arg1: i32, %arg2: i32) -> (i32, i32) {
    %c0_i32 = arith.constant 0 : i32
    %c0_i32_0 = arith.constant 0 : i32
    return %c0_i32, %arg1 : i32, i32
  }
  func.func @transform_3(%arg0: i32, %arg1: i32, %arg2: i32) -> (i32, i32) {
    %c0_i32 = arith.constant 0 : i32
    return %arg0, %arg1 : i32, i32
  }
}

module attributes {stable_mosaic.version = 11 : i64} {
  func.func @_conv3x3_bias_relu_kernel(%arg0: i32, %arg1: i32, %arg2: memref<1x18x18x128xbf16, #tpu.memory_space<vmem>>, %arg3: memref<3x3x128x128xbf16, #tpu.memory_space<vmem>>, %arg4: memref<1x128xf32, #tpu.memory_space<vmem>>, %arg5: memref<1x16x16x128xf32, #tpu.memory_space<vmem>>) attributes {dimension_semantics = [#tpu.dimension_semantics<parallel>, #tpu.dimension_semantics<parallel>], iteration_bounds = array<i64: 2, 1>, scalar_prefetch = 0 : i64, scratch_operands = 0 : i64, tpu.core_type = #tpu.core_type<tc>, window_params = [{transform_indices = @transform_0, window_bounds = array<i64: 1, 18, 18, 128>}, {transform_indices = @transform_1, window_bounds = array<i64: 3, 3, 128, 128>}, {transform_indices = @transform_2, window_bounds = array<i64: 1, 128>}, {transform_indices = @transform_3, window_bounds = array<i64: 1, 16, 16, 128>}]} {
    %cst = arith.constant 0.000000e+00 : f32
    %0 = vector.broadcast %cst : f32 to vector<256x128xf32>
    %c0 = arith.constant 0 : index
    %c0_0 = arith.constant 0 : index
    %c0_1 = arith.constant 0 : index
    %c0_2 = arith.constant 0 : index
    %1 = vector.load %arg2[%c0, %c0_0, %c0_1, %c0_2] : memref<1x18x18x128xbf16, #tpu.memory_space<vmem>>, vector<1x16x16x128xbf16>
    %2 = vector.shape_cast %1 : vector<1x16x16x128xbf16> to vector<16x16x128xbf16>
    %3 = vector.shape_cast %2 : vector<16x16x128xbf16> to vector<256x128xbf16>
    %c0_3 = arith.constant 0 : index
    %c0_4 = arith.constant 0 : index
    %c0_5 = arith.constant 0 : index
    %c0_6 = arith.constant 0 : index
    %4 = vector.load %arg3[%c0_3, %c0_4, %c0_5, %c0_6] : memref<3x3x128x128xbf16, #tpu.memory_space<vmem>>, vector<1x1x128x128xbf16>
    %5 = vector.shape_cast %4 : vector<1x1x128x128xbf16> to vector<128x128xbf16>
    %cst_7 = arith.constant dense<0.000000e+00> : vector<256x128xf32>
    %6 = tpu.matmul %3, %5, %cst_7 {dimension_numbers = #tpu.dot_dimension_numbers<[1], [0], [0], [1], [0, 0, 1, 1], [], []>} : vector<256x128xbf16>, vector<128x128xbf16>, vector<256x128xf32> -> vector<256x128xf32>
    %7 = arith.addf %0, %6 : vector<256x128xf32>
    %c0_8 = arith.constant 0 : index
    %c0_9 = arith.constant 0 : index
    %c1 = arith.constant 1 : index
    %c0_10 = arith.constant 0 : index
    %8 = vector.load %arg2[%c0_8, %c0_9, %c1, %c0_10] : memref<1x18x18x128xbf16, #tpu.memory_space<vmem>>, vector<1x16x16x128xbf16>
    %9 = vector.shape_cast %8 : vector<1x16x16x128xbf16> to vector<16x16x128xbf16>
    %10 = vector.shape_cast %9 : vector<16x16x128xbf16> to vector<256x128xbf16>
    %c0_11 = arith.constant 0 : index
    %c1_12 = arith.constant 1 : index
    %c0_13 = arith.constant 0 : index
    %c0_14 = arith.constant 0 : index
    %11 = vector.load %arg3[%c0_11, %c1_12, %c0_13, %c0_14] : memref<3x3x128x128xbf16, #tpu.memory_space<vmem>>, vector<1x1x128x128xbf16>
    %12 = vector.shape_cast %11 : vector<1x1x128x128xbf16> to vector<128x128xbf16>
    %cst_15 = arith.constant dense<0.000000e+00> : vector<256x128xf32>
    %13 = tpu.matmul %10, %12, %cst_15 {dimension_numbers = #tpu.dot_dimension_numbers<[1], [0], [0], [1], [0, 0, 1, 1], [], []>} : vector<256x128xbf16>, vector<128x128xbf16>, vector<256x128xf32> -> vector<256x128xf32>
    %14 = arith.addf %7, %13 : vector<256x128xf32>
    %c0_16 = arith.constant 0 : index
    %c0_17 = arith.constant 0 : index
    %c2 = arith.constant 2 : index
    %c0_18 = arith.constant 0 : index
    %15 = vector.load %arg2[%c0_16, %c0_17, %c2, %c0_18] : memref<1x18x18x128xbf16, #tpu.memory_space<vmem>>, vector<1x16x16x128xbf16>
    %16 = vector.shape_cast %15 : vector<1x16x16x128xbf16> to vector<16x16x128xbf16>
    %17 = vector.shape_cast %16 : vector<16x16x128xbf16> to vector<256x128xbf16>
    %c0_19 = arith.constant 0 : index
    %c2_20 = arith.constant 2 : index
    %c0_21 = arith.constant 0 : index
    %c0_22 = arith.constant 0 : index
    %18 = vector.load %arg3[%c0_19, %c2_20, %c0_21, %c0_22] : memref<3x3x128x128xbf16, #tpu.memory_space<vmem>>, vector<1x1x128x128xbf16>
    %19 = vector.shape_cast %18 : vector<1x1x128x128xbf16> to vector<128x128xbf16>
    %cst_23 = arith.constant dense<0.000000e+00> : vector<256x128xf32>
    %20 = tpu.matmul %17, %19, %cst_23 {dimension_numbers = #tpu.dot_dimension_numbers<[1], [0], [0], [1], [0, 0, 1, 1], [], []>} : vector<256x128xbf16>, vector<128x128xbf16>, vector<256x128xf32> -> vector<256x128xf32>
    %21 = arith.addf %14, %20 : vector<256x128xf32>
    %c0_24 = arith.constant 0 : index
    %c1_25 = arith.constant 1 : index
    %c0_26 = arith.constant 0 : index
    %c0_27 = arith.constant 0 : index
    %22 = vector.load %arg2[%c0_24, %c1_25, %c0_26, %c0_27] : memref<1x18x18x128xbf16, #tpu.memory_space<vmem>>, vector<1x16x16x128xbf16>
    %23 = vector.shape_cast %22 : vector<1x16x16x128xbf16> to vector<16x16x128xbf16>
    %24 = vector.shape_cast %23 : vector<16x16x128xbf16> to vector<256x128xbf16>
    %c1_28 = arith.constant 1 : index
    %c0_29 = arith.constant 0 : index
    %c0_30 = arith.constant 0 : index
    %c0_31 = arith.constant 0 : index
    %25 = vector.load %arg3[%c1_28, %c0_29, %c0_30, %c0_31] : memref<3x3x128x128xbf16, #tpu.memory_space<vmem>>, vector<1x1x128x128xbf16>
    %26 = vector.shape_cast %25 : vector<1x1x128x128xbf16> to vector<128x128xbf16>
    %cst_32 = arith.constant dense<0.000000e+00> : vector<256x128xf32>
    %27 = tpu.matmul %24, %26, %cst_32 {dimension_numbers = #tpu.dot_dimension_numbers<[1], [0], [0], [1], [0, 0, 1, 1], [], []>} : vector<256x128xbf16>, vector<128x128xbf16>, vector<256x128xf32> -> vector<256x128xf32>
    %28 = arith.addf %21, %27 : vector<256x128xf32>
    %c0_33 = arith.constant 0 : index
    %c1_34 = arith.constant 1 : index
    %c1_35 = arith.constant 1 : index
    %c0_36 = arith.constant 0 : index
    %29 = vector.load %arg2[%c0_33, %c1_34, %c1_35, %c0_36] : memref<1x18x18x128xbf16, #tpu.memory_space<vmem>>, vector<1x16x16x128xbf16>
    %30 = vector.shape_cast %29 : vector<1x16x16x128xbf16> to vector<16x16x128xbf16>
    %31 = vector.shape_cast %30 : vector<16x16x128xbf16> to vector<256x128xbf16>
    %c1_37 = arith.constant 1 : index
    %c1_38 = arith.constant 1 : index
    %c0_39 = arith.constant 0 : index
    %c0_40 = arith.constant 0 : index
    %32 = vector.load %arg3[%c1_37, %c1_38, %c0_39, %c0_40] : memref<3x3x128x128xbf16, #tpu.memory_space<vmem>>, vector<1x1x128x128xbf16>
    %33 = vector.shape_cast %32 : vector<1x1x128x128xbf16> to vector<128x128xbf16>
    %cst_41 = arith.constant dense<0.000000e+00> : vector<256x128xf32>
    %34 = tpu.matmul %31, %33, %cst_41 {dimension_numbers = #tpu.dot_dimension_numbers<[1], [0], [0], [1], [0, 0, 1, 1], [], []>} : vector<256x128xbf16>, vector<128x128xbf16>, vector<256x128xf32> -> vector<256x128xf32>
    %35 = arith.addf %28, %34 : vector<256x128xf32>
    %c0_42 = arith.constant 0 : index
    %c1_43 = arith.constant 1 : index
    %c2_44 = arith.constant 2 : index
    %c0_45 = arith.constant 0 : index
    %36 = vector.load %arg2[%c0_42, %c1_43, %c2_44, %c0_45] : memref<1x18x18x128xbf16, #tpu.memory_space<vmem>>, vector<1x16x16x128xbf16>
    %37 = vector.shape_cast %36 : vector<1x16x16x128xbf16> to vector<16x16x128xbf16>
    %38 = vector.shape_cast %37 : vector<16x16x128xbf16> to vector<256x128xbf16>
    %c1_46 = arith.constant 1 : index
    %c2_47 = arith.constant 2 : index
    %c0_48 = arith.constant 0 : index
    %c0_49 = arith.constant 0 : index
    %39 = vector.load %arg3[%c1_46, %c2_47, %c0_48, %c0_49] : memref<3x3x128x128xbf16, #tpu.memory_space<vmem>>, vector<1x1x128x128xbf16>
    %40 = vector.shape_cast %39 : vector<1x1x128x128xbf16> to vector<128x128xbf16>
    %cst_50 = arith.constant dense<0.000000e+00> : vector<256x128xf32>
    %41 = tpu.matmul %38, %40, %cst_50 {dimension_numbers = #tpu.dot_dimension_numbers<[1], [0], [0], [1], [0, 0, 1, 1], [], []>} : vector<256x128xbf16>, vector<128x128xbf16>, vector<256x128xf32> -> vector<256x128xf32>
    %42 = arith.addf %35, %41 : vector<256x128xf32>
    %c0_51 = arith.constant 0 : index
    %c2_52 = arith.constant 2 : index
    %c0_53 = arith.constant 0 : index
    %c0_54 = arith.constant 0 : index
    %43 = vector.load %arg2[%c0_51, %c2_52, %c0_53, %c0_54] : memref<1x18x18x128xbf16, #tpu.memory_space<vmem>>, vector<1x16x16x128xbf16>
    %44 = vector.shape_cast %43 : vector<1x16x16x128xbf16> to vector<16x16x128xbf16>
    %45 = vector.shape_cast %44 : vector<16x16x128xbf16> to vector<256x128xbf16>
    %c2_55 = arith.constant 2 : index
    %c0_56 = arith.constant 0 : index
    %c0_57 = arith.constant 0 : index
    %c0_58 = arith.constant 0 : index
    %46 = vector.load %arg3[%c2_55, %c0_56, %c0_57, %c0_58] : memref<3x3x128x128xbf16, #tpu.memory_space<vmem>>, vector<1x1x128x128xbf16>
    %47 = vector.shape_cast %46 : vector<1x1x128x128xbf16> to vector<128x128xbf16>
    %cst_59 = arith.constant dense<0.000000e+00> : vector<256x128xf32>
    %48 = tpu.matmul %45, %47, %cst_59 {dimension_numbers = #tpu.dot_dimension_numbers<[1], [0], [0], [1], [0, 0, 1, 1], [], []>} : vector<256x128xbf16>, vector<128x128xbf16>, vector<256x128xf32> -> vector<256x128xf32>
    %49 = arith.addf %42, %48 : vector<256x128xf32>
    %c0_60 = arith.constant 0 : index
    %c2_61 = arith.constant 2 : index
    %c1_62 = arith.constant 1 : index
    %c0_63 = arith.constant 0 : index
    %50 = vector.load %arg2[%c0_60, %c2_61, %c1_62, %c0_63] : memref<1x18x18x128xbf16, #tpu.memory_space<vmem>>, vector<1x16x16x128xbf16>
    %51 = vector.shape_cast %50 : vector<1x16x16x128xbf16> to vector<16x16x128xbf16>
    %52 = vector.shape_cast %51 : vector<16x16x128xbf16> to vector<256x128xbf16>
    %c2_64 = arith.constant 2 : index
    %c1_65 = arith.constant 1 : index
    %c0_66 = arith.constant 0 : index
    %c0_67 = arith.constant 0 : index
    %53 = vector.load %arg3[%c2_64, %c1_65, %c0_66, %c0_67] : memref<3x3x128x128xbf16, #tpu.memory_space<vmem>>, vector<1x1x128x128xbf16>
    %54 = vector.shape_cast %53 : vector<1x1x128x128xbf16> to vector<128x128xbf16>
    %cst_68 = arith.constant dense<0.000000e+00> : vector<256x128xf32>
    %55 = tpu.matmul %52, %54, %cst_68 {dimension_numbers = #tpu.dot_dimension_numbers<[1], [0], [0], [1], [0, 0, 1, 1], [], []>} : vector<256x128xbf16>, vector<128x128xbf16>, vector<256x128xf32> -> vector<256x128xf32>
    %56 = arith.addf %49, %55 : vector<256x128xf32>
    %c0_69 = arith.constant 0 : index
    %c2_70 = arith.constant 2 : index
    %c2_71 = arith.constant 2 : index
    %c0_72 = arith.constant 0 : index
    %57 = vector.load %arg2[%c0_69, %c2_70, %c2_71, %c0_72] : memref<1x18x18x128xbf16, #tpu.memory_space<vmem>>, vector<1x16x16x128xbf16>
    %58 = vector.shape_cast %57 : vector<1x16x16x128xbf16> to vector<16x16x128xbf16>
    %59 = vector.shape_cast %58 : vector<16x16x128xbf16> to vector<256x128xbf16>
    %c2_73 = arith.constant 2 : index
    %c2_74 = arith.constant 2 : index
    %c0_75 = arith.constant 0 : index
    %c0_76 = arith.constant 0 : index
    %60 = vector.load %arg3[%c2_73, %c2_74, %c0_75, %c0_76] : memref<3x3x128x128xbf16, #tpu.memory_space<vmem>>, vector<1x1x128x128xbf16>
    %61 = vector.shape_cast %60 : vector<1x1x128x128xbf16> to vector<128x128xbf16>
    %cst_77 = arith.constant dense<0.000000e+00> : vector<256x128xf32>
    %62 = tpu.matmul %59, %61, %cst_77 {dimension_numbers = #tpu.dot_dimension_numbers<[1], [0], [0], [1], [0, 0, 1, 1], [], []>} : vector<256x128xbf16>, vector<128x128xbf16>, vector<256x128xf32> -> vector<256x128xf32>
    %63 = arith.addf %56, %62 : vector<256x128xf32>
    %c0_78 = arith.constant 0 : index
    %c0_79 = arith.constant 0 : index
    %64 = vector.load %arg4[%c0_78, %c0_79] : memref<1x128xf32, #tpu.memory_space<vmem>>, vector<1x128xf32>
    %65 = vector.broadcast %64 : vector<1x128xf32> to vector<256x128xf32>
    %66 = arith.addf %63, %65 : vector<256x128xf32>
    %cst_80 = arith.constant 0.000000e+00 : f32
    %67 = vector.broadcast %cst_80 : f32 to vector<256x128xf32>
    %68 = arith.maximumf %66, %67 : vector<256x128xf32>
    %69 = vector.shape_cast %68 : vector<256x128xf32> to vector<1x16x16x128xf32>
    %c0_81 = arith.constant 0 : index
    %c0_82 = arith.constant 0 : index
    %c0_83 = arith.constant 0 : index
    %c0_84 = arith.constant 0 : index
    %70 = vector.load %arg5[%c0_81, %c0_82, %c0_83, %c0_84] : memref<1x16x16x128xf32, #tpu.memory_space<vmem>>, vector<1x16x16x128xf32>
    tpu.vector_store %arg5[%c0_81, %c0_82, %c0_83, %c0_84], %69 {strides = array<i32>} : memref<1x16x16x128xf32, #tpu.memory_space<vmem>>, vector<1x16x16x128xf32>,
    return
  }
  func.func @transform_0(%arg0: i32, %arg1: i32) -> (i32, i32, i32, i32) {
    %c0_i32 = arith.constant 0 : i32
    %c0_i32_0 = arith.constant 0 : i32
    %c0_i32_1 = arith.constant 0 : i32
    %c0_i32_2 = arith.constant 0 : i32
    return %arg0, %c0_i32, %c0_i32_0, %c0_i32_1 : i32, i32, i32, i32
  }
  func.func @transform_1(%arg0: i32, %arg1: i32) -> (i32, i32, i32, i32) {
    %c0_i32 = arith.constant 0 : i32
    %c0_i32_0 = arith.constant 0 : i32
    %c0_i32_1 = arith.constant 0 : i32
    %c0_i32_2 = arith.constant 0 : i32
    return %c0_i32, %c0_i32_0, %c0_i32_1, %arg1 : i32, i32, i32, i32
  }
  func.func @transform_2(%arg0: i32, %arg1: i32) -> (i32, i32) {
    %c0_i32 = arith.constant 0 : i32
    %c0_i32_0 = arith.constant 0 : i32
    return %c0_i32, %arg1 : i32, i32
  }
  func.func @transform_3(%arg0: i32, %arg1: i32) -> (i32, i32, i32, i32) {
    %c0_i32 = arith.constant 0 : i32
    %c0_i32_0 = arith.constant 0 : i32
    %c0_i32_1 = arith.constant 0 : i32
    return %arg0, %c0_i32, %c0_i32_0, %arg1 : i32, i32, i32, i32
  }
}

</mosaic_0001>

<bundles_post_ra>
// kernel: double_conv_forward.2
= control target key start
LH: loop header
LB: loop body
LE: loop exit
PB: predicated region body
PF: predicated region fallthrough
CT: control target
= control target key end

     0   :  { %s1488_s12 = smov 0   ;;  %s1490_s13 = smov 0   ;;  %s1629_s0 = inlined_call_operand.vmem [shape: bf16[512,64], index: 0, kind: input, shape index: {}]   ;;  %s1630_s1 = inlined_call_operand.vmem [shape: bf16[64,128], index: 1, kind: input, shape index: {}]   ;;  %s1631_s2 = inlined_call_operand.vmem [shape: f32[1,128], index: 2, kind: input, shape index: {}]   ;;  %s1632_s3 = inlined_call_operand.vmem [shape: bf16[512,128], index: 3, kind: output, shape index: {}]  }
   0x1   :  { %s1492_s14 = smov 0  }
   0x2 LB: > { %s32_s15 = sadd.s32 1, %s1462_s13  ;;  %p1129_p0 = scmp.ge.s32.totalorder %s1466_s14, 1  ;;  %s1466_s14 = sphi %s1492_s14, %s13_s14   ;;  %s1462_s13 = sphi %s1490_s13, %s1634_s13   ;;  %s1458_s12 = sphi %s1488_s12, %s1633_s12  }
   0x3   : > { %p34_p1 = scmp.ge.s32.totalorder %s32_s15, 2  ;;  %p188_p2 = scmp.lt.s32.totalorder %s1466_s14, 3 }
   0x5   : > { %s1636_s15 = smov (%p34_p1, %s32_s15), 0  ;;  %p189_p3 = pnand %p1129_p0, %p188_p2 }
   0x6   : > { %s1130_s18 = sshll.u32 (!%p189_p3), %s1458_s12, 5 }
   0x7   : > { %192 = sbr.rel (%p189_p3) target bundleno = 259 (0x103), region = 32  ;;  %p230_p4 = scmp.lt.s32.totalorder (!%p189_p3), %s1130_s18, 63 }
   0xc   : > { %v1424_v0 = vld [vmem:[%s1630_s1 + $0x18] sm:$0xff]   ;;  %v1425_v1 = vld [vmem:[%s1630_s1 + $0x10] sm:$0xff]   ;;  %s1638_s18 = smov (!%p230_p4, %s1130_s18), 63  ;;  %v1426_v2 = vld [vmem:[%s1630_s1 + $0x8] sm:$0xff]   ;;  %vm472_vm0 = vcmask 523264  }
   0xd   : > { %1352 = vmatprep.subr.bf16.mxu0 %v1424_v0  ;;  %1392 = vmatprep.subr.bf16.mxu1 %v1424_v0  ;;  %s1131_s23 = sshll.u32 %s1638_s18, 2  ;;  %v1427_v3 = vld [vmem:[%s1630_s1] sm:$0xff]  }
   0xe   : > { %1353 = vmatpush3.bf16.msra.mxu0 %v1424_v0  ;;  %1396 = vmatpush3.bf16.msra.mxu1 %v1424_v0  ;;  %s1526_s28 = scalar_lea.vmem %s1629_s0, %s1131_s23  ;;  %v1563_v20 = vld [vmem:[%s1631_s2] ss:$0 sm:$0xff]  ;;  %s1578_s6 = scalar_lea.vmem %s1632_s3, %s1131_s23 }
   0xf   : > { %1354 = vmatprep.subr.bf16.mxu0 %v1425_v1  ;;  %1393 = vmatprep.subr.bf16.mxu1 %v1425_v1  ;;  %v1428_v4 = vld [vmem:[%s1526_s28] sm:$0xff]   ;;  %v1430_v6 = vld [vmem:[%s1526_s28 + $0x8] sm:$0xff]   ;;  %v1432_v8 = vld [vmem:[%s1526_s28 + $0x10] sm:$0xff]  }
  0x10   : > { %v1429_v5 = vld [vmem:[%s1526_s28 + $0x40] sm:$0xff]   ;;  %1360 = vmatprep.mubr.msk.bf16.mxu0 %vm472_vm0, %v1428_v4  ;;  %v1431_v7 = vld [vmem:[%s1526_s28 + $0x48] sm:$0xff]   ;;  %v1433_v9 = vld [vmem:[%s1526_s28 + $0x50] sm:$0xff]  }
  0x11   : > { %1376 = vmatprep.mubr.msk.bf16.mxu1 %vm472_vm0, %v1429_v5  ;;  %v1434_v10 = vld [vmem:[%s1526_s28 + $0x18] sm:$0xff]   ;;  %v1436_v12 = vld [vmem:[%s1526_s28 + $0x20] sm:$0xff]   ;;  %v1438_v14 = vld [vmem:[%s1526_s28 + $0x28] sm:$0xff]  }
  0x12   : > { %1355 = vmatpush3.bf16.msra.mxu0 %v1425_v1  ;;  %1397 = vmatpush3.bf16.msra.mxu1 %v1425_v1  ;;  %v1435_v11 = vld [vmem:[%s1526_s28 + $0x58] sm:$0xff]   ;;  %v1437_v13 = vld [vmem:[%s1526_s28 + $0x60] sm:$0xff]   ;;  %v1439_v15 = vld [vmem:[%s1526_s28 + $0x68] sm:$0xff]  }
  0x13   : > { %1356 = vmatprep.subr.bf16.mxu0 %v1426_v2  ;;  %1394 = vmatprep.subr.bf16.mxu1 %v1426_v2  ;;  %v1440_v16 = vld [vmem:[%s1526_s28 + $0x30] sm:$0xff]   ;;  %v1442_v18 = vld [vmem:[%s1526_s28 + $0x38] sm:$0xff]  }
  0x14   : > { %v1441_v17 = vld [vmem:[%s1526_s28 + $0x70] sm:$0xff]   ;;  %v1443_v19 = vld [vmem:[%s1526_s28 + $0x78] sm:$0xff]  }
  0x16   : > { %1357 = vmatpush3.bf16.msra.mxu0 %v1426_v2  ;;  %1398 = vmatpush3.bf16.msra.mxu1 %v1426_v2 }
  0x17   : > { %1358 = vmatprep.subr.bf16.mxu0 %v1427_v3  ;;  %1395 = vmatprep.subr.bf16.mxu1 %v1427_v3 }
  0x1a   : > { %1359 = vmatpush3.bf16.msra.mxu0 %v1427_v3  ;;  %1399 = vmatpush3.bf16.msra.mxu1 %v1427_v3 }
  0x1d   : > { %1361 = vmatmul.mubr.msk.bf16.vlgmr.msra.gmra.mxu0 %vm472_vm0, %v1430_v6  ;;  %1377 = vmatmul.mubr.msk.bf16.vlgmr.msra.gmra.mxu1 %vm472_vm0, %v1431_v7 }
  0x1e   : > { %1364 = vmatprep.mubr.msk.bf16.mxu0 %vm472_vm0, %v1432_v8  ;;  %1380 = vmatprep.mubr.msk.bf16.mxu1 %vm472_vm0, %v1433_v9 }
  0x25   : > { %1365 = vmatmul.mubr.msk.bf16.gmra.mxu0 %vm472_vm0, %v1434_v10  ;;  %1381 = vmatmul.mubr.msk.bf16.gmra.mxu1 %vm472_vm0, %v1435_v11 }
  0x26   : > { %1368 = vmatprep.mubr.msk.bf16.mxu0 %vm472_vm0, %v1436_v12  ;;  %1384 = vmatprep.mubr.msk.bf16.mxu1 %vm472_vm0, %v1437_v13 }
  0x2d   : > { %1369 = vmatmul.mubr.msk.bf16.gmra.mxu0 %vm472_vm0, %v1438_v14  ;;  %1385 = vmatmul.mubr.msk.bf16.gmra.mxu1 %vm472_vm0, %v1439_v15 }
  0x2e   : > { %1372 = vmatprep.mubr.msk.bf16.mxu0 %vm472_vm0, %v1440_v16  ;;  %1388 = vmatprep.mubr.msk.bf16.mxu1 %vm472_vm0, %v1441_v17 }
  0x35   : > { %1373 = vmatmul.mubr.msk.bf16.gmra.mxu0 %vm472_vm0, %v1442_v18  ;;  %1389 = vmatmul.mubr.msk.bf16.gmra.mxu1 %vm472_vm0, %v1443_v19 }
  0xdd   : > { %v1362_v21 = vpop.f32.mrf.mxu0  ;;  %v1378_v22 = vpop.f32.mrf.mxu1 }
  0xde   : > { %v790_v23 = vadd.f32 %v1362_v21, %v1563_v20  ;;  %v806_v24 = vadd.f32 %v1378_v22, %v1563_v20 }
  0xdf   : > { %v555_v25 = vpop.f32.mrf.mxu0  ;;  %v619_v26 = vpop.f32.mrf.mxu1 }
  0xe0   : > { %v788_v27 = vadd.f32 %v1563_v20, %v555_v25  ;;  %v804_v28 = vadd.f32 %v1563_v20, %v619_v26  ;;  %v822_v33 = vmax.f32 %v790_v23, 0.0  ;;  %v838_v34 = vmax.f32 %v806_v24, 0.0 }
  0xe1   : > { %v1363_v29 = vpop.f32.mrf.mxu0  ;;  %v1379_v30 = vpop.f32.mrf.mxu1 }
  0xe2   : > { %v791_v31 = vadd.f32 %v1363_v29, %v1563_v20  ;;  %v807_v32 = vadd.f32 %v1379_v30, %v1563_v20  ;;  %v820_v41 = vmax.f32 %v788_v27, 0.0  ;;  %v836_v42 = vmax.f32 %v804_v28, 0.0 }
  0xe3   : > { %v558_v35 = vpop.f32.mrf.mxu0  ;;  %v622_v36 = vpop.f32.mrf.mxu1 }
  0xe4   : > { %v823_v37 = vmax.f32 %v791_v31, 0.0  ;;  %v839_v38 = vmax.f32 %v807_v32, 0.0  ;;  %v789_v39 = vadd.f32 %v1563_v20, %v558_v35  ;;  %v805_v40 = vadd.f32 %v1563_v20, %v622_v36 }
  0xe5   : > { %v1366_v43 = vpop.f32.mrf.mxu0  ;;  %v1382_v44 = vpop.f32.mrf.mxu1 }
  0xe6   : > { %v1245_v45 = vpack.c.bf16 %v823_v37, %v822_v33  ;;  %v1285_v46 = vpack.c.bf16 %v839_v38, %v838_v34  ;;  %v821_v47 = vmax.f32 %v789_v39, 0.0  ;;  %v837_v48 = vmax.f32 %v805_v40, 0.0 }
  0xe7   : > { %v794_v49 = vadd.f32 %v1366_v43, %v1563_v20  ;;  %v810_v50 = vadd.f32 %v1382_v44, %v1563_v20  ;;  %v571_v51 = vpop.f32.mrf.mxu0  ;;  %v635_v52 = vpop.f32.mrf.mxu1 }
  0xe8   : > { %1317 = vst [vmem:[%s1578_s6 + $0x8] sm:$0xff] %v1245_v45   ;;  %1325 = vst [vmem:[%s1578_s6 + $0x48] sm:$0xff] %v1285_v46   ;;  %v1240_v53 = vpack.c.bf16 %v821_v47, %v820_v41  ;;  %v1280_v54 = vpack.c.bf16 %v837_v48, %v836_v42  ;;  %v792_v55 = vadd.f32 %v1563_v20, %v571_v51 }
  0xe9   : > { %v808_v56 = vadd.f32 %v1563_v20, %v635_v52  ;;  %v1367_v57 = vpop.f32.mrf.mxu0  ;;  %v1383_v58 = vpop.f32.mrf.mxu1  ;;  %v826_v61 = vmax.f32 %v794_v49, 0.0  ;;  %v842_v62 = vmax.f32 %v810_v50, 0.0 }
  0xea   : > { %1241 = vst [vmem:[%s1578_s6] sm:$0xff] %v1240_v53   ;;  %1324 = vst [vmem:[%s1578_s6 + $0x40] sm:$0xff] %v1280_v54   ;;  %v795_v59 = vadd.f32 %v1367_v57, %v1563_v20  ;;  %v811_v60 = vadd.f32 %v1383_v58, %v1563_v20  ;;  %v824_v5 = vmax.f32 %v792_v55, 0.0 }
  0xeb   : > { %v574_v63 = vpop.f32.mrf.mxu0  ;;  %v638_v0 = vpop.f32.mrf.mxu1  ;;  %v840_v6 = vmax.f32 %v808_v56, 0.0 }
  0xec   : > { %v827_v1 = vmax.f32 %v795_v59, 0.0  ;;  %v843_v2 = vmax.f32 %v811_v60, 0.0  ;;  %v793_v3 = vadd.f32 %v1563_v20, %v574_v63  ;;  %v809_v4 = vadd.f32 %v1563_v20, %v638_v0 }
  0xed   : > { %v1370_v7 = vpop.f32.mrf.mxu0  ;;  %v1386_v8 = vpop.f32.mrf.mxu1 }
  0xee   : > { %v1255_v9 = vpack.c.bf16 %v827_v1, %v826_v61  ;;  %v1295_v10 = vpack.c.bf16 %v843_v2, %v842_v62  ;;  %v825_v11 = vmax.f32 %v793_v3, 0.0  ;;  %v841_v12 = vmax.f32 %v809_v4, 0.0 }
  0xef   : > { %v798_v13 = vadd.f32 %v1370_v7, %v1563_v20  ;;  %v814_v14 = vadd.f32 %v1386_v8, %v1563_v20  ;;  %v587_v15 = vpop.f32.mrf.mxu0  ;;  %v651_v16 = vpop.f32.mrf.mxu1 }
  0xf0   : > { %1319 = vst [vmem:[%s1578_s6 + $0x18] sm:$0xff] %v1255_v9   ;;  %1327 = vst [vmem:[%s1578_s6 + $0x58] sm:$0xff] %v1295_v10   ;;  %v1250_v17 = vpack.c.bf16 %v825_v11, %v824_v5  ;;  %v1290_v18 = vpack.c.bf16 %v841_v12, %v840_v6  ;;  %v796_v19 = vadd.f32 %v1563_v20, %v587_v15 }
  0xf1   : > { %v812_v21 = vadd.f32 %v1563_v20, %v651_v16  ;;  %v1371_v22 = vpop.f32.mrf.mxu0  ;;  %v1387_v23 = vpop.f32.mrf.mxu1  ;;  %v830_v26 = vmax.f32 %v798_v13, 0.0  ;;  %v846_v27 = vmax.f32 %v814_v14, 0.0 }
  0xf2   : > { %1318 = vst [vmem:[%s1578_s6 + $0x10] sm:$0xff] %v1250_v17   ;;  %1326 = vst [vmem:[%s1578_s6 + $0x50] sm:$0xff] %v1290_v18   ;;  %v799_v24 = vadd.f32 %v1371_v22, %v1563_v20  ;;  %v815_v25 = vadd.f32 %v1387_v23, %v1563_v20  ;;  %v828_v34 = vmax.f32 %v796_v19, 0.0 }
  0xf3   : > { %v590_v28 = vpop.f32.mrf.mxu0  ;;  %v654_v29 = vpop.f32.mrf.mxu1  ;;  %v844_v35 = vmax.f32 %v812_v21, 0.0 }
  0xf4   : > { %v831_v30 = vmax.f32 %v799_v24, 0.0  ;;  %v847_v31 = vmax.f32 %v815_v25, 0.0  ;;  %v797_v32 = vadd.f32 %v1563_v20, %v590_v28  ;;  %v813_v33 = vadd.f32 %v1563_v20, %v654_v29 }
  0xf5   : > { %v1374_v36 = vpop.f32.mrf.mxu0  ;;  %v1390_v37 = vpop.f32.mrf.mxu1 }
  0xf6   : > { %v1265_v38 = vpack.c.bf16 %v831_v30, %v830_v26  ;;  %v1305_v39 = vpack.c.bf16 %v847_v31, %v846_v27  ;;  %v829_v40 = vmax.f32 %v797_v32, 0.0  ;;  %v845_v41 = vmax.f32 %v813_v33, 0.0 }
  0xf7   : > { %v802_v42 = vadd.f32 %v1374_v36, %v1563_v20  ;;  %v818_v43 = vadd.f32 %v1390_v37, %v1563_v20  ;;  %v603_v44 = vpop.f32.mrf.mxu0  ;;  %v667_v45 = vpop.f32.mrf.mxu1 }
  0xf8   : > { %1321 = vst [vmem:[%s1578_s6 + $0x28] sm:$0xff] %v1265_v38   ;;  %1329 = vst [vmem:[%s1578_s6 + $0x68] sm:$0xff] %v1305_v39   ;;  %v1260_v46 = vpack.c.bf16 %v829_v40, %v828_v34  ;;  %v1300_v47 = vpack.c.bf16 %v845_v41, %v844_v35  ;;  %v800_v48 = vadd.f32 %v1563_v20, %v603_v44 }
  0xf9   : > { %v816_v49 = vadd.f32 %v1563_v20, %v667_v45  ;;  %v1375_v50 = vpop.f32.mrf.mxu0  ;;  %v1391_v51 = vpop.f32.mrf.mxu1  ;;  %v834_v54 = vmax.f32 %v802_v42, 0.0  ;;  %v850_v55 = vmax.f32 %v818_v43, 0.0 }
  0xfa   : > { %1320 = vst [vmem:[%s1578_s6 + $0x20] sm:$0xff] %v1260_v46   ;;  %1328 = vst [vmem:[%s1578_s6 + $0x60] sm:$0xff] %v1300_v47   ;;  %v803_v52 = vadd.f32 %v1375_v50, %v1563_v20  ;;  %v819_v53 = vadd.f32 %v1391_v51, %v1563_v20  ;;  %v832_v62 = vmax.f32 %v800_v48, 0.0 }
  0xfb   : > { %v606_v56 = vpop.f32.mrf.mxu0  ;;  %v670_v57 = vpop.f32.mrf.mxu1  ;;  %v848_v63 = vmax.f32 %v816_v49, 0.0 }
  0xfc   : > { %v835_v58 = vmax.f32 %v803_v52, 0.0  ;;  %v851_v59 = vmax.f32 %v819_v53, 0.0  ;;  %v801_v60 = vadd.f32 %v1563_v20, %v606_v56  ;;  %v817_v61 = vadd.f32 %v1563_v20, %v670_v57 }
  0xfe   : > { %v1275_v0 = vpack.c.bf16 %v835_v58, %v834_v54  ;;  %v1315_v1 = vpack.c.bf16 %v851_v59, %v850_v55  ;;  %v833_v2 = vmax.f32 %v801_v60, 0.0  ;;  %v849_v3 = vmax.f32 %v817_v61, 0.0 }
 0x100   : > { %1323 = vst [vmem:[%s1578_s6 + $0x38] sm:$0xff] %v1275_v0   ;;  %1331 = vst [vmem:[%s1578_s6 + $0x78] sm:$0xff] %v1315_v1   ;;  %v1270_v4 = vpack.c.bf16 %v833_v2, %v832_v62  ;;  %v1310_v5 = vpack.c.bf16 %v849_v3, %v848_v63 }
 0x102   : > { %1322 = vst [vmem:[%s1578_s6 + $0x30] sm:$0xff] %v1270_v4   ;;  %1330 = vst [vmem:[%s1578_s6 + $0x70] sm:$0xff] %v1310_v5  }
 0x103 PF: > { %s13_s14 = sadd.s32 1, %s1466_s14   ;;  %s1633_s12 = smov %s1462_s13 }
 0x104   : > { %p10_p5 = scmp.ge.s32.totalorder %s13_s14, 4   ;;  %s1634_s13 = smov %s1636_s15 }
 0x106   :  { %12 = sbr.rel (!%p10_p5) target bundleno = 2 (0x2), region = 76 }

// kernel: double_conv_forward.3
= control target key start
LH: loop header
LB: loop body
LE: loop exit
PB: predicated region body
PF: predicated region fallthrough
CT: control target
= control target key end

     0   :  { %s6700_s12 = smov 0   ;;  %s6702_s13 = smov 0   ;;  %s9438_s0 = inlined_call_operand.vmem [shape: bf16[2,18,18,128], index: 0, kind: input, shape index: {}]   ;;  %s9439_s1 = inlined_call_operand.vmem [shape: bf16[3,3,128,128], index: 1, kind: input, shape index: {}]   ;;  %s9440_s2 = inlined_call_operand.vmem [shape: f32[1,128], index: 2, kind: input, shape index: {}]   ;;  %s9441_s3 = inlined_call_operand.vmem [shape: f32[2,16,16,128], index: 3, kind: output, shape index: {}]  }
   0x1   :  { %s6704_s14 = smov 0  }
   0x2 LB: > { %s25_s15 = sadd.s32 1, %s6674_s13  ;;  %p5246_p0 = scmp.ge.s32.totalorder %s6678_s14, 1  ;;  %s6678_s14 = sphi %s6704_s14, %s13_s14   ;;  %s6674_s13 = sphi %s6702_s13, %s9688_s13   ;;  %s6670_s12 = sphi %s6700_s12, %s9687_s12  }
   0x3   : > { %p27_p1 = scmp.ge.s32.totalorder %s25_s15, 2  ;;  %p168_p2 = scmp.lt.s32.totalorder %s6678_s14, 3 }
   0x5   : > { %s9690_s15 = smov (%p27_p1, %s25_s15), 0  ;;  %p169_p3 = pnand %p5246_p0, %p168_p2 }
   0x7   : > { %172 = sbr.rel (%p169_p3) target bundleno = 557 (0x22d), region = 32 }
   0xc   : > { %v6527_v0 = vld [vmem:[%s9439_s1 + $0x78] sm:$0xff]   ;;  %p202_p4 = scmp.lt.s32.totalorder %s6670_s12, 1  ;;  %v6528_v1 = vld [vmem:[%s9439_s1 + $0x70] sm:$0xff]   ;;  %v6529_v2 = vld [vmem:[%s9439_s1 + $0x68] sm:$0xff]   ;;  %vm287_vm0 = vsmask.f32 3328 }
   0xd   : > { %6054 = vmatprep.subr.bf16.mxu0 %v6527_v0  ;;  %6486 = vmatprep.subr.bf16.mxu1 %v6527_v0  ;;  %v6530_v3 = vld [vmem:[%s9439_s1 + $0x60] sm:$0xff]   ;;  %vm288_vm1 = vsmask.f32 7440  ;;  %v6531_v17 = vld [vmem:[%s9439_s1 + $0x58] sm:$0xff]   ;;  %v6532_v33 = vld [vmem:[%s9439_s1 + $0x50] sm:$0xff]   ;;  %vm1317_vm3 = vcmask 1042432  }
   0xe   : > { %s9692_s12 = smov (!%p202_p4, %s6670_s12), 1  ;;  %6055 = vmatpush3.bf16.msra.mxu0 %v6527_v0  ;;  %6494 = vmatpush3.bf16.msra.mxu1 %v6527_v0  ;;  %vm6764_vm2 = vmor %vm287_vm0, %vm288_vm1  ;;  %v6533_v58 = vld [vmem:[%s9439_s1 + $0x48] sm:$0xff]   ;;  %vm1318_vm4 = vcmask 1046532  }
   0xf   : > { %6056 = vmatprep.subr.bf16.mxu0 %v6528_v1  ;;  %6487 = vmatprep.subr.bf16.mxu1 %v6528_v1  ;;  %s6502_s22 = smul.u32 216, %s9692_s12  ;;  %vm7075_vm5 = vmor %vm1317_vm3, %vm1318_vm4  ;;  %s5837_s6 = sshll.u32 %s9692_s12, 8 }
  0x10   : > { %s9287_s8 = scalar_lea.vmem %s9441_s3, %s5837_s6 }
  0x11   : > { %s6733_s25 = scalar_lea.vmem %s9438_s0, %s6502_s22 }
  0x12   : > { %6057 = vmatpush3.bf16.msra.mxu0 %v6528_v1  ;;  %6495 = vmatpush3.bf16.msra.mxu1 %v6528_v1  ;;  %v6739_v4 = vld [vmem:[%s6733_s25] sm:$0xf]  ;;  %v6742_v5 = vld [vmem:[%s6733_s25 + $0x4] sm:$0xf]  ;;  %v6745_v6 = vld [vmem:[%s6733_s25 + $0x8] sm:$0x1] }
  0x13   : > { %6058 = vmatprep.subr.bf16.mxu0 %v6529_v2  ;;  %6488 = vmatprep.subr.bf16.mxu1 %v6529_v2  ;;  %v291_v7 = vshrl.u32 %v6739_v4, 16  ;;  %v294_v8 = vshll.u32 %v6739_v4, 16  ;;  %v300_v9 = vshll.u32 %v6742_v5, 16  ;;  %v304_v10 = vshrl.u32 %v6742_v5, 16  ;;  %v239_v12 = vld [vmem:[%s6733_s25 + $0x60] sm:$0xf] }
  0x14   : > { %v310_v11 = vshll.u32 %v6745_v6, 16  ;;  %v240_v15 = vld [vmem:[%s6733_s25 + $0x64] sm:$0xf]  ;;  %v279_v16 = vld [vmem:[%s6733_s25 + $0x68] sm:$0x1]  ;;  %v483_v21 = vshrl.u32 %v239_v12, 16 }
  0x15   : > { %v293_v13 = vrot.slane %v291_v7, 4  ;;  %v296_v14 = vrot.slane %v294_v8, 5  ;;  %v302_v18 = vrot.slane %v300_v9, 5  ;;  %v306_v19 = vrot.slane %v304_v10, 4  ;;  %v6760_v26 = vld [vmem:[%s6733_s25 + $0xc] sm:$0xf] }
  0x16   : > { %6059 = vmatpush3.bf16.msra.mxu0 %v6529_v2  ;;  %6496 = vmatpush3.bf16.msra.mxu1 %v6529_v2  ;;  %v486_v23 = vshll.u32 %v239_v12, 16  ;;  %v492_v24 = vshll.u32 %v240_v15, 16  ;;  %v496_v25 = vshrl.u32 %v240_v15, 16  ;;  %v312_v29 = vrot.slane %v310_v11, 5  ;;  %v6769_v32 = vld [vmem:[%s6733_s25 + $0x10] sm:$0xf] }
  0x17   : > { %6060 = vmatprep.subr.bf16.mxu0 %v6530_v3  ;;  %6489 = vmatprep.subr.bf16.mxu1 %v6530_v3  ;;  %v297_v22 = vor.u32 %v296_v14, %v293_v13  ;;  %v307_v28 = vor.u32 %v306_v19, %v302_v18  ;;  %v485_v30 = vrot.slane %v483_v21, 4  ;;  %v502_v31 = vshll.u32 %v279_v16, 16  ;;  %v6775_v40 = vld [vmem:[%s6733_s25 + $0x14] sm:$0x1]  ;;  %v241_v47 = vld [vmem:[%s6733_s25 + $0x6c] sm:$0xf] }
  0x18   : > { %v488_v35 = vrot.slane %v486_v23, 5  ;;  %v494_v36 = vrot.slane %v492_v24, 5  ;;  %v498_v37 = vrot.slane %v496_v25, 4  ;;  %v315_v41 = vshrl.u32 %v6760_v26, 16  ;;  %v242_v52 = vld [vmem:[%s6733_s25 + $0x70] sm:$0xf] }
  0x19   : > { %v298_v34 = vrot.slane %v297_v22, 4  ;;  %v308_v38 = vrot.slane %v307_v28, 4  ;;  %v504_v39 = vrot.slane %v502_v31, 5  ;;  %v318_v42 = vshll.u32 %v6760_v26, 16  ;;  %v280_v57 = vld [vmem:[%s6733_s25 + $0x74] sm:$0x1] }
  0x1a   : > { %6061 = vmatpush3.bf16.msra.mxu0 %v6530_v3  ;;  %6497 = vmatpush3.bf16.msra.mxu1 %v6530_v3  ;;  %v489_v44 = vor.u32 %v488_v35, %v485_v30  ;;  %v499_v45 = vor.u32 %v498_v37, %v494_v36  ;;  %v324_v46 = vshll.u32 %v6769_v32, 16  ;;  %v317_v49 = vrot.slane %v315_v41, 4  ;;  %v6798_v14 = vld [vmem:[%s6733_s25 + $0x18] sm:$0xf]  ;;  %v6534_v15 = vld [vmem:[%s9439_s1 + $0x40] sm:$0xff]  }
  0x1b   : > { %6062 = vmatprep.subr.bf16.mxu0 %v6531_v17  ;;  %6490 = vmatprep.subr.bf16.mxu1 %v6531_v17  ;;  %v303_v43 = vsel %vm6764_vm2, %v298_v34, %v302_v18  ;;  %v313_v48 = vsel %vm6764_vm2, %v308_v38, %v312_v29  ;;  %v320_v50 = vrot.slane %v318_v42, 5  ;;  %v328_v51 = vshrl.u32 %v6769_v32, 16  ;;  %v6806_v19 = vld [vmem:[%s6733_s25 + $0x1c] sm:$0xf]  ;;  %v6811_v25 = vld [vmem:[%s6733_s25 + $0x20] sm:$0x1] }
  0x1c   : > { %v5266_v53 = vcombine.low %v303_v43, %v313_v48  ;;  %v490_v54 = vrot.slane %v489_v44, 4  ;;  %v500_v55 = vrot.slane %v499_v45, 4  ;;  %v326_v56 = vrot.slane %v324_v46, 5  ;;  %v243_v34 = vld [vmem:[%s6733_s25 + $0x78] sm:$0xf] }
  0x1d   : > { %v321_v59 = vor.u32 %v320_v50, %v317_v49  ;;  %v330_v60 = vrot.slane %v328_v51, 4  ;;  %v334_v61 = vshll.u32 %v6775_v40, 16  ;;  %v507_v1 = vshrl.u32 %v241_v47, 16  ;;  %v6535_v41 = vld [vmem:[%s9439_s1 + $0x38] sm:$0xff]   ;;  %v281_v49 = vld [vmem:[%s6733_s25 + $0x80] sm:$0x1] }
  0x1e   : > { %6063 = vmatpush3.bf16.msra.mxu0 %v6531_v17  ;;  %6498 = vmatpush3.bf16.msra.mxu1 %v6531_v17  ;;  %v495_v63 = vsel %vm6764_vm2, %v490_v54, %v494_v36  ;;  %v505_v0 = vsel %vm6764_vm2, %v500_v55, %v504_v39  ;;  %v510_v2 = vshll.u32 %v241_v47, 16  ;;  %v516_v12 = vshll.u32 %v242_v52, 16  ;;  %v6820_v39 = vld [vmem:[%s6733_s25 + $0x7c] sm:$0xf] }
  0x1f   : > { %6064 = vmatprep.subr.bf16.mxu0 %v6532_v33  ;;  %6491 = vmatprep.subr.bf16.mxu1 %v6532_v33  ;;  %v5274_v3 = vcombine.low %v495_v63, %v505_v0  ;;  %v322_v7 = vrot.slane %v321_v59, 4  ;;  %v331_v8 = vor.u32 %v330_v60, %v326_v56  ;;  %v336_v9 = vrot.slane %v334_v61, 5  ;;  %v6536_v42 = vld [vmem:[%s9439_s1 + $0xb8] sm:$0xff]   ;;  %v6538_v59 = vld [vmem:[%s9439_s1 + $0xb0] sm:$0xff]   ;;  %v6847_v0 = vld [vmem:[%s6733_s25 + $0x28] sm:$0xf] }
  0x20   : > { %6070 = vmatprep.mubr.bf16.mxu0 %v5266_v53  ;;  %v509_v10 = vrot.slane %v507_v1, 4  ;;  %v512_v11 = vrot.slane %v510_v2, 5  ;;  %v520_v13 = vshrl.u32 %v242_v52, 16  ;;  %v526_v18 = vshll.u32 %v280_v57, 16  ;;  %v6537_v52 = vld [vmem:[%s9439_s1 + $0x30] sm:$0xff]  }
  0x21   : > { %v327_v16 = vsel %vm6764_vm2, %v322_v7, %v326_v56  ;;  %v332_v17 = vrot.slane %v331_v8, 4  ;;  %6086 = vmatprep.mubr.bf16.mxu1 %v5274_v3  ;;  %v518_v23 = vrot.slane %v516_v12, 5  ;;  %v339_v28 = vshrl.u32 %v6798_v14, 16  ;;  %v6838_v57 = vld [vmem:[%s6733_s25 + $0x24] sm:$0xf] }
  0x22   : > { %6065 = vmatpush3.bf16.msra.mxu0 %v6532_v33  ;;  %6499 = vmatpush3.bf16.msra.mxu1 %v6532_v33  ;;  %v513_v22 = vor.u32 %v512_v11, %v509_v10  ;;  %v522_v24 = vrot.slane %v520_v13, 4  ;;  %v528_v30 = vrot.slane %v526_v18, 5  ;;  %v342_v31 = vshll.u32 %v6798_v14, 16  ;;  %v6850_v8 = vld [vmem:[%s6733_s25 + $0x2c] sm:$0x1] }
  0x23   : > { %6066 = vmatprep.subr.bf16.mxu0 %v6533_v58  ;;  %6492 = vmatprep.subr.bf16.mxu1 %v6533_v58  ;;  %v337_v29 = vsel %vm6764_vm2, %v332_v17, %v336_v9  ;;  %v348_v33 = vshll.u32 %v6806_v19, 16  ;;  %v341_v38 = vrot.slane %v339_v28, 4  ;;  %v352_v45 = vshrl.u32 %v6806_v19, 16  ;;  %v6854_v13 = vld [vmem:[%s6733_s25 + $0x84] sm:$0xf] }
  0x24   : > { %v5267_v35 = vcombine.low %v327_v16, %v337_v29  ;;  %v514_v36 = vrot.slane %v513_v22, 4  ;;  %v523_v37 = vor.u32 %v522_v24, %v518_v23  ;;  %v344_v43 = vrot.slane %v342_v31, 5  ;;  %v6861_v22 = vld [vmem:[%s6733_s25 + $0x88] sm:$0xf] }
  0x25   : > { %v350_v44 = vrot.slane %v348_v33, 5  ;;  %v358_v46 = vshll.u32 %v6811_v25, 16  ;;  %v531_v50 = vshrl.u32 %v243_v34, 16  ;;  %v534_v51 = vshll.u32 %v243_v34, 16 }
  0x26   : > { %6067 = vmatpush3.bf16.msra.mxu0 %v6533_v58  ;;  %6500 = vmatpush3.bf16.msra.mxu1 %v6533_v58  ;;  %v519_v47 = vsel %vm6764_vm2, %v514_v36, %v518_v23  ;;  %v524_v48 = vrot.slane %v523_v37, 4  ;;  %v345_v53 = vor.u32 %v344_v43, %v341_v38  ;;  %v354_v54 = vrot.slane %v352_v45, 4  ;;  %v6870_v36 = vld [vmem:[%s6733_s25 + $0x8c] sm:$0x1] }
  0x27   : > { %6068 = vmatprep.subr.bf16.mxu0 %v6534_v15  ;;  %6493 = vmatprep.subr.bf16.mxu1 %v6534_v15  ;;  %v360_v55 = vrot.slane %v358_v46, 5  ;;  %v540_v56 = vshll.u32 %v6820_v39, 16  ;;  %v533_v60 = vrot.slane %v531_v50, 4  ;;  %v536_v61 = vrot.slane %v534_v51, 5  ;;  %v6540_v37 = vld [vmem:[%s9439_s1 + $0xa8] sm:$0xff]  }
  0x28   : > { %v529_v58 = vsel %vm6764_vm2, %v524_v48, %v528_v30  ;;  %v544_v63 = vshrl.u32 %v6820_v39, 16  ;;  %v346_v2 = vrot.slane %v345_v53, 4  ;;  %v355_v3 = vor.u32 %v354_v54, %v350_v44  ;;  %v6539_v30 = vld [vmem:[%s9439_s1 + $0x28] sm:$0xff]   ;;  %v6885_v53 = vld [vmem:[%s6733_s25 + $0x30] sm:$0xf] }
  0x29   : > { %v5275_v1 = vcombine.low %v519_v47, %v529_v58  ;;  %v542_v7 = vrot.slane %v540_v56, 5  ;;  %v537_v9 = vor.u32 %v536_v61, %v533_v60  ;;  %v550_v11 = vshll.u32 %v281_v49, 16  ;;  %v6894_v60 = vld [vmem:[%s6733_s25 + $0x34] sm:$0xf] }
  0x2a   : > { %6069 = vmatpush3.bf16.msra.mxu0 %v6534_v15  ;;  %6501 = vmatpush3.bf16.msra.mxu1 %v6534_v15  ;;  %v546_v10 = vrot.slane %v544_v63, 4  ;;  %v363_v12 = vshrl.u32 %v6838_v57, 16  ;;  %v351_v15 = vsel %vm6764_vm2, %v346_v2, %v350_v44  ;;  %v356_v16 = vrot.slane %v355_v3, 4 }
  0x2b   : > { %6102 = vmatprep.subr.bf16.mxu1 %v6535_v41  ;;  %6150 = vmatprep.subr.bf16.mxu0 %v6536_v42  ;;  %v366_v17 = vshll.u32 %v6838_v57, 16  ;;  %v372_v18 = vshll.u32 %v6847_v0, 16  ;;  %v538_v23 = vrot.slane %v537_v9, 4  ;;  %v552_v28 = vrot.slane %v550_v11, 5 }
  0x2c   : > { %v547_v24 = vor.u32 %v546_v10, %v542_v7  ;;  %v365_v29 = vrot.slane %v363_v12, 4  ;;  %v361_v31 = vsel %vm6764_vm2, %v356_v16, %v360_v55  ;;  %v382_v43 = vshll.u32 %v6850_v8, 16  ;;  %v6902_v16 = vld [vmem:[%s6733_s25 + $0x38] sm:$0x1] }
  0x2d   : > { %6071 = vmatmul.mubr.bf16.vlgmr.msra.gmra.mxu0 %v5267_v35  ;;  %6087 = vmatmul.mubr.bf16.vlgmr.msra.gmra.mxu1 %v5275_v1  ;;  %v368_v33 = vrot.slane %v366_v17, 5  ;;  %v374_v34 = vrot.slane %v372_v18, 5  ;;  %v376_v35 = vshrl.u32 %v6847_v0, 16  ;;  %v5268_v38 = vcombine.low %v351_v15, %v361_v31  ;;  %v6906_v18 = vld [vmem:[%s6733_s25 + $0x90] sm:$0xf] }
  0x2e   : > { %6103 = vmatpush3.bf16.msra.mxu1 %v6535_v41  ;;  %6151 = vmatpush3.bf16.msra.mxu0 %v6536_v42  ;;  %v543_v41 = vsel %vm6764_vm2, %v538_v23, %v542_v7  ;;  %v548_v42 = vrot.slane %v547_v24, 4  ;;  %v555_v46 = vshrl.u32 %v6854_v13, 16  ;;  %v558_v47 = vshll.u32 %v6854_v13, 16  ;;  %v6912_v31 = vld [vmem:[%s6733_s25 + $0x94] sm:$0xf] }
  0x2f   : > { %6104 = vmatprep.subr.bf16.mxu1 %v6537_v52  ;;  %6152 = vmatprep.subr.bf16.mxu0 %v6538_v59  ;;  %v369_v44 = vor.u32 %v368_v33, %v365_v29  ;;  %v378_v45 = vrot.slane %v376_v35, 4  ;;  %v384_v49 = vrot.slane %v382_v43, 5  ;;  %v564_v50 = vshll.u32 %v6861_v22, 16 }
  0x30   : > { %v553_v48 = vsel %vm6764_vm2, %v548_v42, %v552_v28  ;;  %v568_v51 = vshrl.u32 %v6861_v22, 16  ;;  %6074 = vmatprep.mubr.bf16.mxu0 %v5268_v38  ;;  %v557_v58 = vrot.slane %v555_v46, 4  ;;  %v560_v61 = vrot.slane %v558_v47, 5  ;;  %v6544_v38 = vld [vmem:[%s9439_s1 + $0x98] sm:$0xff]   ;;  %v6545_v46 = vld [vmem:[%s9439_s1 + $0x10] sm:$0xff]  }
  0x31   : > { %v5276_v54 = vcombine.low %v543_v41, %v553_v48  ;;  %v370_v55 = vrot.slane %v369_v44, 4  ;;  %v379_v56 = vor.u32 %v378_v45, %v374_v34  ;;  %v566_v63 = vrot.slane %v564_v50, 5  ;;  %v6922_v44 = vld [vmem:[%s6733_s25 + $0x98] sm:$0x1] }
  0x32   : > { %6105 = vmatpush3.bf16.msra.mxu1 %v6537_v52  ;;  %6153 = vmatpush3.bf16.msra.mxu0 %v6538_v59  ;;  %v6541_v52 = vld [vmem:[%s9439_s1 + $0x20] sm:$0xff]   ;;  %v570_v1 = vrot.slane %v568_v51, 4  ;;  %v574_v2 = vshll.u32 %v6870_v36, 16  ;;  %v387_v9 = vshrl.u32 %v6885_v53, 16  ;;  %v390_v10 = vshll.u32 %v6885_v53, 16 }
  0x33   : > { %6106 = vmatprep.subr.bf16.mxu1 %v6539_v30  ;;  %v6542_v59 = vld [vmem:[%s9439_s1 + $0xa0] sm:$0xff]   ;;  %6154 = vmatprep.subr.bf16.mxu0 %v6540_v37  ;;  %v375_v3 = vsel %vm6764_vm2, %v370_v55, %v374_v34  ;;  %v380_v7 = vrot.slane %v379_v56, 4  ;;  %v561_v11 = vor.u32 %v560_v61, %v557_v58  ;;  %v396_v17 = vshll.u32 %v6894_v60, 16  ;;  %v6935_v51 = vld [vmem:[%s6733_s25 + $0x3c] sm:$0xf]  ;;  %v6546_v55 = vld [vmem:[%s9439_s1 + $0x90] sm:$0xff]  }
  0x34   : > { %6090 = vmatprep.mubr.bf16.mxu1 %v5276_v54  ;;  %v571_v12 = vor.u32 %v570_v1, %v566_v63  ;;  %v576_v15 = vrot.slane %v574_v2, 5  ;;  %v389_v24 = vrot.slane %v387_v9, 4  ;;  %v392_v28 = vrot.slane %v390_v10, 5  ;;  %v6938_v54 = vld [vmem:[%s6733_s25 + $0x40] sm:$0xf] }
  0x35   : > { %v385_v23 = vsel %vm6764_vm2, %v380_v7, %v384_v49  ;;  %v400_v29 = vshrl.u32 %v6894_v60, 16  ;;  %v562_v34 = vrot.slane %v561_v11, 4  ;;  %v406_v43 = vshll.u32 %v6902_v16, 16  ;;  %v6945_v7 = vld [vmem:[%s6733_s25 + $0x44] sm:$0x1] }
  0x36   : > { %6107 = vmatpush3.bf16.msra.mxu1 %v6539_v30  ;;  %6155 = vmatpush3.bf16.msra.mxu0 %v6540_v37  ;;  %v6543_v30 = vld [vmem:[%s9439_s1 + $0x18] sm:$0xff]   ;;  %v5269_v33 = vcombine.low %v375_v3, %v385_v23  ;;  %v572_v35 = vrot.slane %v571_v12, 4  ;;  %v398_v37 = vrot.slane %v396_v17, 5  ;;  %v393_v41 = vor.u32 %v392_v28, %v389_v24  ;;  %v6957_v28 = vld [vmem:[%s6733_s25 + $0xa0] sm:$0xf] }
  0x37   : > { %6108 = vmatprep.subr.bf16.mxu1 %v6541_v52  ;;  %6156 = vmatprep.subr.bf16.mxu0 %v6542_v59  ;;  %v402_v42 = vrot.slane %v400_v29, 4  ;;  %v579_v45 = vshrl.u32 %v6906_v18, 16  ;;  %v567_v47 = vsel %vm6764_vm2, %v562_v34, %v566_v63  ;;  %v582_v49 = vshll.u32 %v6906_v18, 16  ;;  %v6948_v9 = vld [vmem:[%s6733_s25 + $0x9c] sm:$0xf]  ;;  %v6547_v29 = vld [vmem:[%s9439_s1 + $0x8] sm:$0xff]  }
  0x38   : > { %6075 = vmatmul.mubr.bf16.gmra.mxu0 %v5269_v33  ;;  %v577_v48 = vsel %vm6764_vm2, %v572_v35, %v576_v15  ;;  %v588_v50 = vshll.u32 %v6912_v31, 16  ;;  %v394_v58 = vrot.slane %v393_v41, 4  ;;  %v408_v63 = vrot.slane %v406_v43, 5  ;;  %v6548_v41 = vld [vmem:[%s9439_s1 + $0x88] sm:$0xff]  }
  0x39   : > { %v5277_v56 = vcombine.low %v567_v47, %v577_v48  ;;  %v403_v61 = vor.u32 %v402_v42, %v398_v37  ;;  %v584_v1 = vrot.slane %v582_v49, 5  ;;  %v592_v3 = vshrl.u32 %v6912_v31, 16 }
  0x3a   : > { %6109 = vmatpush3.bf16.msra.mxu1 %v6541_v52  ;;  %6157 = vmatpush3.bf16.msra.mxu0 %v6542_v59  ;;  %v581_v52 = vrot.slane %v579_v45, 4  ;;  %v590_v2 = vrot.slane %v588_v50, 5  ;;  %v399_v10 = vsel %vm6764_vm2, %v394_v58, %v398_v37  ;;  %v598_v11 = vshll.u32 %v6922_v44, 16 }
  0x3b   : > { %6110 = vmatprep.subr.bf16.mxu1 %v6543_v30  ;;  %6158 = vmatprep.subr.bf16.mxu0 %v6544_v38  ;;  %v404_v59 = vrot.slane %v403_v61, 4  ;;  %v411_v12 = vshrl.u32 %v6935_v51, 16  ;;  %v594_v17 = vrot.slane %v592_v3, 4  ;;  %v414_v23 = vshll.u32 %v6935_v51, 16  ;;  %v6973_v61 = vld [vmem:[%s6733_s25 + $0xa4] sm:$0x1] }
  0x3c   : > { %6091 = vmatmul.mubr.bf16.gmra.mxu1 %v5277_v56  ;;  %v585_v15 = vor.u32 %v584_v1, %v581_v52  ;;  %v420_v24 = vshll.u32 %v6938_v54, 16  ;;  %v600_v34 = vrot.slane %v598_v11, 5  ;;  %v424_v37 = vshrl.u32 %v6938_v54, 16 }
  0x3d   : > { %v409_v33 = vsel %vm6764_vm2, %v404_v59, %v408_v63  ;;  %v413_v35 = vrot.slane %v411_v12, 4  ;;  %v595_v43 = vor.u32 %v594_v17, %v590_v2  ;;  %v416_v45 = vrot.slane %v414_v23, 5  ;;  %v6978_v59 = vld [vmem:[%s6733_s25 + $0x48] sm:$0xf]  ;;  %v6987_v17 = vld [vmem:[%s6733_s25 + $0x4c] sm:$0xf] }
  0x3e   : > { %6111 = vmatpush3.bf16.msra.mxu1 %v6543_v30  ;;  %6159 = vmatpush3.bf16.msra.mxu0 %v6544_v38  ;;  %v5270_v42 = vcombine.low %v399_v10, %v409_v33  ;;  %v586_v30 = vrot.slane %v585_v15, 4  ;;  %v422_v47 = vrot.slane %v420_v24, 5  ;;  %v426_v48 = vrot.slane %v424_v37, 4 }
  0x3f   : > { %6112 = vmatprep.subr.bf16.mxu1 %v6545_v46  ;;  %6160 = vmatprep.subr.bf16.mxu0 %v6546_v55  ;;  %v430_v49 = vshll.u32 %v6945_v7, 16  ;;  %v603_v50 = vshrl.u32 %v6948_v9, 16  ;;  %v596_v56 = vrot.slane %v595_v43, 4  ;;  %v417_v58 = vor.u32 %v416_v45, %v413_v35 }
  0x40   : > { %6078 = vmatprep.mubr.bf16.mxu0 %v5270_v42  ;;  %v591_v38 = vsel %vm6764_vm2, %v586_v30, %v590_v2  ;;  %v606_v63 = vshll.u32 %v6948_v9, 16  ;;  %v427_v52 = vor.u32 %v426_v48, %v422_v47  ;;  %v612_v10 = vshll.u32 %v6957_v28, 16  ;;  %v6549_v2 = vld [vmem:[%s9439_s1] sm:$0xff]   ;;  %v6996_v30 = vld [vmem:[%s6733_s25 + $0x50] sm:$0x1] }
  0x41   : > { %v432_v1 = vrot.slane %v430_v49, 5  ;;  %v605_v3 = vrot.slane %v603_v50, 4  ;;  %v601_v11 = vsel %vm6764_vm2, %v596_v56, %v600_v34  ;;  %v418_v12 = vrot.slane %v417_v58, 4 }
  0x42   : > { %6113 = vmatpush3.bf16.msra.mxu1 %v6545_v46  ;;  %6161 = vmatpush3.bf16.msra.mxu0 %v6546_v55  ;;  %v608_v15 = vrot.slane %v606_v63, 5  ;;  %v616_v46 = vshrl.u32 %v6957_v28, 16  ;;  %v6550_v55 = vld [vmem:[%s9439_s1 + $0x80] sm:$0xff]   ;;  %v5278_v23 = vcombine.low %v591_v38, %v601_v11  ;;  %v428_v24 = vrot.slane %v427_v52, 4  ;;  %v7004_v38 = vld [vmem:[%s6733_s25 + $0xa8] sm:$0xf] }
  0x43   : > { %6114 = vmatprep.subr.bf16.mxu1 %v6547_v29  ;;  %6162 = vmatprep.subr.bf16.mxu0 %v6548_v41  ;;  %v614_v33 = vrot.slane %v612_v10, 5  ;;  %v622_v35 = vshll.u32 %v6973_v61, 16  ;;  %v423_v34 = vsel %vm6764_vm2, %v418_v12, %v422_v47  ;;  %v435_v43 = vshrl.u32 %v6978_v59, 16  ;;  %9468 = vst [vmem:[#allocation2_spill] sm:$0xff] %v7004_v38  ;;  %v7009_v47 = vld [vmem:[%s9439_s1 + $0xf8] sm:$0xff]  }
  0x44   : > { %v609_v37 = vor.u32 %v608_v15, %v605_v3  ;;  %v618_v42 = vrot.slane %v616_v46, 4  ;;  %6094 = vmatprep.mubr.bf16.mxu1 %v5278_v23  ;;  %v433_v45 = vsel %vm6764_vm2, %v428_v24, %v432_v1  ;;  %v438_v49 = vshll.u32 %v6978_v59, 16  ;;  %v7012_v52 = vld [vmem:[%s6733_s25 + $0xac] sm:$0xf]  ;;  %v7017_v1 = vld [vmem:[%s9439_s1 + $0x138] sm:$0xff]  }
  0x45   : > { %v624_v48 = vrot.slane %v622_v35, 5  ;;  %v444_v50 = vshll.u32 %v6987_v17, 16  ;;  %v437_v63 = vrot.slane %v435_v43, 4  ;;  %v448_v10 = vshrl.u32 %v6987_v17, 16  ;;  %v7022_v12 = vld [vmem:[%s6733_s25 + $0xb0] sm:$0x1] }
  0x46   : > { %6115 = vmatpush3.bf16.msra.mxu1 %v6547_v29  ;;  %6163 = vmatpush3.bf16.msra.mxu0 %v6548_v41  ;;  %v5271_v29 = vcombine.low %v423_v34, %v433_v45  ;;  %v610_v56 = vrot.slane %v609_v37, 4  ;;  %v619_v58 = vor.u32 %v618_v42, %v614_v33  ;;  %v440_v41 = vrot.slane %v438_v49, 5  ;;  %9469 = vst [vmem:[#allocation3_spill] sm:$0xff] %v7022_v12  ;;  %v7025_v15 = vld [vmem:[%s6733_s25 + $0x54] sm:$0xf] }
  0x47   : > { %6116 = vmatprep.subr.bf16.mxu1 %v6549_v2  ;;  %6164 = vmatprep.subr.bf16.mxu0 %v6550_v55  ;;  %v446_v3 = vrot.slane %v444_v50, 5  ;;  %v454_v11 = vshll.u32 %v6996_v30, 16  ;;  %v627_v24 = vshrl.u32 %v7004_v38, 16  ;;  %v630_v35 = vshll.u32 %v7004_v38, 16  ;;  %v7032_v34 = vld [vmem:[%s6733_s25 + $0x58] sm:$0xf] }
  0x48   : > { %6079 = vmatmul.mubr.bf16.gmra.mxu0 %v5271_v29  ;;  %v615_v46 = vsel %vm6764_vm2, %v610_v56, %v614_v33  ;;  %v620_v23 = vrot.slane %v619_v58, 4  ;;  %v441_v37 = vor.u32 %v440_v41, %v437_v63  ;;  %v450_v42 = vrot.slane %v448_v10, 4 }
  0x49   : > { %v456_v43 = vrot.slane %v454_v11, 5  ;;  %v636_v45 = vshll.u32 %v7012_v52, 16  ;;  %v629_v49 = vrot.slane %v627_v24, 4  ;;  %v632_v50 = vrot.slane %v630_v35, 5 }
  0x4a   : > { %6117 = vmatpush3.bf16.msra.mxu1 %v6549_v2  ;;  %6165 = vmatpush3.bf16.msra.mxu0 %v6550_v55  ;;  %v625_v33 = vsel %vm6764_vm2, %v620_v23, %v624_v48  ;;  %v640_v29 = vshrl.u32 %v7012_v52, 16  ;;  %v442_v56 = vrot.slane %v441_v37, 4  ;;  %v451_v58 = vor.u32 %v450_v42, %v446_v3  ;;  %v7041_v55 = vld [vmem:[%s6733_s25 + $0x5c] sm:$0x1]  ;;  %v7046_v48 = vld [vmem:[%s6733_s25 + $0xb4] sm:$0xf] }
  0x4b   : > { %6198 = vmatprep.subr.bf16.mxu1 %v7009_v47  ;;  %6246 = vmatprep.subr.bf16.mxu0 %v7017_v1  ;;  %v5279_v2 = vcombine.low %v615_v46, %v625_v33  ;;  %v638_v63 = vrot.slane %v636_v45, 5  ;;  %v633_v41 = vor.u32 %v632_v50, %v629_v49  ;;  %v646_v11 = vshll.u32 %v7022_v12, 16  ;;  %9470 = vst [vmem:[#allocation4_spill] sm:$0xff] %v7046_v48  ;;  %v7053_v37 = vld [vmem:[%s6733_s25 + $0xb8] sm:$0xf] }
  0x4c   : > { %v642_v10 = vrot.slane %v640_v29, 4  ;;  %v459_v21 = vshrl.u32 %v7025_v15, 16  ;;  %v447_v23 = vsel %vm6764_vm2, %v442_v56, %v446_v3  ;;  %v452_v24 = vrot.slane %v451_v58, 4  ;;  %9471 = vst [vmem:[#allocation5_spill] sm:$0xff] %v7053_v37  ;;  %v7059_v3 = vld [vmem:[%s6733_s25 + $0xbc] sm:$0x1] }
  0x4d   : > { %6095 = vmatmul.mubr.bf16.gmra.mxu1 %v5279_v2  ;;  %v462_v46 = vshll.u32 %v7025_v15, 16  ;;  %v468_v35 = vshll.u32 %v7032_v34, 16  ;;  %v634_v42 = vrot.slane %v633_v41, 4  ;;  %v648_v33 = vrot.slane %v646_v11, 5  ;;  %9472 = vst [vmem:[#allocation6_spill] sm:$0xff] %v7059_v3 }
  0x4e   : > { %v643_v45 = vor.u32 %v642_v10, %v638_v63  ;;  %v461_v49 = vrot.slane %v459_v21, 4  ;;  %v457_v50 = vsel %vm6764_vm2, %v452_v24, %v456_v43  ;;  %v472_v62 = vshrl.u32 %v7032_v34, 16  ;;  %v1269_v10 = vld [vmem:[%s6733_s25] sm:$0xe] }
  0x4f   : > { %v464_v29 = vrot.slane %v462_v46, 5  ;;  %v470_v2 = vrot.slane %v468_v35, 5  ;;  %v5272_v56 = vcombine.low %v447_v23, %v457_v50  ;;  %v639_v58 = vsel %vm6764_vm2, %v634_v42, %v638_v63 }
  0x50   : > { %v644_v20 = vrot.slane %v643_v45, 4  ;;  %v478_v41 = vshll.u32 %v7041_v55, 16  ;;  %v474_v21 = vrot.slane %v472_v62, 4  ;;  %v651_v12 = vshrl.u32 %v7046_v48, 16 }
  0x51   : > { %v465_v11 = vor.u32 %v464_v29, %v461_v49  ;;  %v654_v43 = vshll.u32 %v7046_v48, 16  ;;  %6082 = vmatprep.mubr.bf16.mxu0 %v5272_v56  ;;  %v660_v46 = vshll.u32 %v7053_v37, 16  ;;  %v664_v63 = vshrl.u32 %v7053_v37, 16  ;;  %v1270_v49 = vld [vmem:[%s6733_s25 + $0xc] sm:$0xe] }
  0x52   : > { %v649_v24 = vsel %vm6764_vm2, %v644_v20, %v648_v33  ;;  %v480_v23 = vrot.slane %v478_v41, 5  ;;  %v475_v45 = vor.u32 %v474_v21, %v470_v2  ;;  %v653_v50 = vrot.slane %v651_v12, 4  ;;  %v1271_v20 = vld [vmem:[%s6733_s25 + $0x18] sm:$0xe] }
  0x53   : > { %v5280_v35 = vcombine.low %v639_v58, %v649_v24  ;;  %v466_v42 = vrot.slane %v465_v11, 4  ;;  %v656_v62 = vrot.slane %v654_v43, 5  ;;  %v662_v29 = vrot.slane %v660_v46, 5 }
  0x54   : > { %v666_v38 = vrot.slane %v664_v63, 4  ;;  %v670_v48 = vshll.u32 %v7059_v3, 16  ;;  %v476_v58 = vrot.slane %v475_v45, 4  ;;  %v5314_v41 = vrot.slane %v1269_v10, 9 }
  0x55   : > { %6098 = vmatprep.mubr.bf16.mxu1 %v5280_v35  ;;  %v471_v33 = vsel %vm6764_vm2, %v466_v42, %v470_v2  ;;  %v1322_v12 = vrot.slane %v6742_v5, 5  ;;  %v657_v11 = vor.u32 %v656_v62, %v653_v50  ;;  %v5315_v24 = vrot.slane %v1270_v49, 9 }
  0x56   : > { %v667_v21 = vor.u32 %v666_v38, %v662_v29  ;;  %v672_v43 = vrot.slane %v670_v48, 5  ;;  %v481_v46 = vsel %vm6764_vm2, %v476_v58, %v480_v23  ;;  %v1329_v35 = vrot.slane %v6769_v32, 5 }
  0x57   : > { %v1323_v63 = vsel %vm7075_vm5, %v5314_v41, %v1322_v12  ;;  %v1324_v3 = vrot.slane %v1322_v12, 4  ;;  %v5273_v37 = vcombine.low %v471_v33, %v481_v46  ;;  %v658_v2 = vrot.slane %v657_v11, 4  ;;  %v1273_v12 = vld [vmem:[%s6733_s25 + $0x30] sm:$0xe]  ;;  %v1275_v46 = vld [vmem:[%s6733_s25 + $0x48] sm:$0xe] }
  0x58   : > { %v668_v42 = vrot.slane %v667_v21, 4  ;;  %v5290_v10 = vcombine.low %v6739_v4, %v6742_v5  ;;  %v9475_v38 = vrot.slane %v6745_v6, 5  ;;  %v1331_v45 = vrot.slane %v1329_v35, 4 }
  0x59   : > { %v5316_v23 = vrot.slane %v1271_v20, 9  ;;  %6083 = vmatmul.mubr.bf16.gmra.mxu0 %v5273_v37  ;;  %v663_v50 = vsel %vm6764_vm2, %v658_v2, %v662_v29  ;;  %v1336_v33 = vrot.slane %v6806_v19, 5  ;;  %v1330_v4 = vsel %vm7075_vm5, %v5315_v24, %v1329_v35  ;;  %v1274_v24 = vld [vmem:[%s6733_s25 + $0x3c] sm:$0xe] }
  0x5a   : > { %v1326_v48 = vsel %vm7075_vm5, %v1324_v3, %v9475_v38  ;;  %v673_v49 = vsel %vm6764_vm2, %v668_v42, %v672_v43  ;;  %v9476_v5 = vrot.slane %v6775_v40, 5  ;;  %v1339_v37 = vrot.slane %v6811_v25, 5  ;;  %v1272_v3 = vld [vmem:[%s6733_s25 + $0x24] sm:$0xe]  ;;  %v6558_v25 = vld [vmem:[%s9439_s1 + $0x130] sm:$0xff]  }
  0x5b   : > { %v5346_v62 = vcombine.low %v1323_v63, %v1326_v48  ;;  %v5281_v58 = vcombine.low %v663_v50, %v673_v49  ;;  %v1337_v29 = vsel %vm7075_vm5, %v5316_v23, %v1336_v33  ;;  %v1338_v20 = vrot.slane %v1336_v33, 4  ;;  %v6557_v23 = vld [vmem:[%s9439_s1 + $0xf0] sm:$0xff]  }
  0x5c   : > { %v1333_v6 = vsel %vm7075_vm5, %v1331_v45, %v9476_v5  ;;  %v1343_v41 = vrot.slane %v6847_v0, 5  ;;  %v5317_v21 = vrot.slane %v1272_v3, 9  ;;  %v1350_v43 = vrot.slane %v6894_v60, 5  ;;  %v7150_v3 = vld [vmem:[%s6733_s25 + $0x68] sm:$0x1] }
  0x5d   : > { %6166 = vmatprep.mubr.bf16.mxu0 %v5346_v62  ;;  %6099 = vmatmul.mubr.bf16.gmra.mxu1 %v5281_v58  ;;  %v5347_v11 = vcombine.low %v1330_v4, %v1333_v6  ;;  %v1340_v40 = vsel %vm7075_vm5, %v1338_v20, %v1339_v37  ;;  %v1346_v2 = vrot.slane %v6850_v8, 5  ;;  %v5318_v42 = vrot.slane %v1273_v12, 9  ;;  %v1276_v37 = vld [vmem:[%s6733_s25 + $0x54] sm:$0xe]  ;;  %v7174_v12 = vld [vmem:[%s6733_s25 + $0x60] sm:$0xe] }
  0x5e   : > { %6118 = vmatprep.mubr.bf16.mxu1 %v5290_v10  ;;  %v5348_v63 = vcombine.low %v1337_v29, %v1340_v40  ;;  %v1345_v35 = vrot.slane %v1343_v41, 4  ;;  %v1352_v38 = vrot.slane %v1350_v43, 4  ;;  %v1353_v10 = vrot.slane %v6902_v16, 5 }
  0x5f   : > { %v1357_v48 = vrot.slane %v6938_v54, 5  ;;  %v5292_v45 = vcombine.low %v6798_v14, %v6806_v19  ;;  %v1364_v50 = vrot.slane %v6987_v17, 5  ;;  %v5319_v49 = vrot.slane %v1274_v24, 9  ;;  %v6566_v24 = vld [vmem:[%s9439_s1 + $0x120] sm:$0xff]  }
  0x60   : > { %v1360_v8 = vrot.slane %v6945_v7, 5  ;;  %v5320_v33 = vrot.slane %v1275_v46, 9  ;;  %v1344_v14 = vsel %vm7075_vm5, %v5317_v21, %v1343_v41  ;;  %v1347_v19 = vsel %vm7075_vm5, %v1345_v35, %v1346_v2  ;;  %v7186_v46 = vld [vmem:[%s6733_s25 + $0x78] sm:$0xe]  ;;  %v6565_v2 = vld [vmem:[%s9439_s1 + $0xe0] sm:$0xff]  }
  0x61   : > { %6167 = vmatmul.mubr.bf16.vlgmr.msra.gmra.mxu0 %v5347_v11  ;;  %v1359_v62 = vrot.slane %v1357_v48, 4  ;;  %v1366_v16 = vrot.slane %v1364_v50, 4  ;;  %v1367_v58 = vrot.slane %v6996_v30, 5  ;;  %v1351_v4 = vsel %vm7075_vm5, %v5318_v42, %v1350_v43  ;;  %v7177_v11 = vld [vmem:[%s6733_s25 + $0x6c] sm:$0xe] }
  0x62   : > { %6247 = vmatpush3.bf16.msra.mxu0 %v7017_v1  ;;  %6170 = vmatprep.mubr.bf16.mxu0 %v5348_v63  ;;  %v1354_v7 = vsel %vm7075_vm5, %v1352_v38, %v1353_v10  ;;  %v6562_v1 = vld [vmem:[%s9439_s1 + $0x128] sm:$0xff]   ;;  %v1371_v5 = vrot.slane %v7032_v34, 5  ;;  %v9477_v6 = vcombine.low %v6760_v26, %v6769_v32  ;;  %v5293_v30 = vcombine.low %v6838_v57, %v6847_v0  ;;  %v1280_v63 = vld [vmem:[%s6733_s25 + $0x84] sm:$0xe]  ;;  %v1281_v42 = vld [vmem:[%s6733_s25 + $0x90] sm:$0xe] }
  0x63   : > { %6248 = vmatprep.subr.bf16.mxu0 %v6558_v25  ;;  %v1381_v29 = vrot.slane %v7150_v3, 5  ;;  %v5349_v20 = vcombine.low %v1344_v14, %v1347_v19  ;;  %v7156_v41 = vsel %vm7075_vm5, %v5319_v49, %v1357_v48  ;;  %v7160_v26 = vsel %vm7075_vm5, %v1359_v62, %v1360_v8  ;;  %v6561_v32 = vld [vmem:[%s9439_s1 + $0xe8] sm:$0xff]   ;;  %v7205_v48 = vld [vmem:[%s6733_s25 + $0x64] sm:$0xf]  ;;  %v1282_v49 = vld [vmem:[%s6733_s25 + $0x9c] sm:$0xe] }
  0x64   : > { %v5350_v57 = vcombine.low %v1351_v4, %v1354_v7  ;;  %v7167_v0 = vsel %vm7075_vm5, %v5320_v33, %v1364_v50  ;;  %v5294_v40 = vcombine.low %v6885_v53, %v6894_v60  ;;  %v5321_v21 = vrot.slane %v1276_v37, 9  ;;  %v7227_v4 = vld [vmem:[%s6733_s25 + $0x74] sm:$0x1] }
  0x65   : > { %6119 = vmatmul.mubr.bf16.vlgmr.msra.gmra.mxu1 %v9477_v6  ;;  %v1374_v43 = vrot.slane %v7041_v55, 5  ;;  %v5295_v35 = vcombine.low %v6935_v51, %v6938_v54  ;;  %v5351_v53 = vcombine.low %v7156_v41, %v7160_v26  ;;  %v5296_v60 = vcombine.low %v6978_v59, %v6987_v17  ;;  %v6651_v54 = vld [vmem:[%s6733_s25 + $0x80] sm:$0x1] }
  0x66   : > { %6199 = vmatpush3.bf16.msra.mxu1 %v7009_v47  ;;  %6122 = vmatprep.mubr.bf16.mxu1 %v5292_v45  ;;  %v7171_v47 = vsel %vm7075_vm5, %v1366_v16, %v1367_v58  ;;  %v5297_v55 = vcombine.low %v7025_v15, %v7032_v34  ;;  %v5322_v10 = vrot.slane %v7174_v12, 9  ;;  %v1378_v45 = vrot.slane %v7205_v48, 5  ;;  %v7223_v16 = vld [vmem:[%s6733_s25 + $0x70] sm:$0xf]  ;;  %v6652_v17 = vld [vmem:[%s6733_s25 + $0x60] sm:$0xf] }
  0x67   : > { %6200 = vmatprep.subr.bf16.mxu1 %v6557_v23  ;;  %6249 = vmatpush3.bf16.msra.mxu0 %v6558_v25  ;;  %v1373_v25 = vrot.slane %v1371_v5, 4  ;;  %v5352_v38 = vcombine.low %v7167_v0, %v7171_v47  ;;  %v5323_v62 = vrot.slane %v7177_v11, 9  ;;  %v1399_v8 = vrot.slane %v6861_v22, 5  ;;  %v1283_v0 = vld [vmem:[%s6733_s25 + $0xa8] sm:$0xe]  ;;  %v7407_v15 = vld [vmem:[%s9439_s1 + $0x1b8] sm:$0xff]  }
  0x68   : > { %6250 = vmatprep.subr.bf16.mxu0 %v6562_v1  ;;  %v1402_v33 = vrot.slane %v6870_v36, 5  ;;  %v7216_v14 = vsel %vm7075_vm5, %v5321_v21, %v1371_v5  ;;  %v1385_v58 = vrot.slane %v7223_v16, 5  ;;  %v1388_v7 = vrot.slane %v7227_v4, 5  ;;  %v6569_v36 = vld [vmem:[%s9439_s1 + $0xd8] sm:$0xff]  }
  0x69   : > { %6171 = vmatmul.mubr.bf16.gmra.mxu0 %v5349_v20  ;;  %v7220_v19 = vsel %vm7075_vm5, %v1373_v25, %v1374_v43  ;;  %v5324_v5 = vrot.slane %v7186_v46, 9  ;;  %v1401_v37 = vrot.slane %v1399_v8, 4  ;;  %v5326_v41 = vrot.slane %v1281_v42, 9  ;;  %v5442_v42 = vld [vmem:[%s6733_s25 + $0xc] sm:$0xf] }
  0x6a   : > { %6201 = vmatpush3.bf16.msra.mxu1 %v6557_v23  ;;  %6174 = vmatprep.mubr.bf16.mxu0 %v5350_v57  ;;  %v5325_v23 = vrot.slane %v1280_v63, 9  ;;  %v1406_v26 = vrot.slane %v6912_v31, 5  ;;  %v1409_v57 = vrot.slane %v6922_v44, 5  ;;  %v1392_v47 = vrot.slane %v6820_v39, 5 }
  0x6b   : > { %6202 = vmatprep.subr.bf16.mxu1 %v6561_v32  ;;  %6251 = vmatpush3.bf16.msra.mxu0 %v6562_v1  ;;  %v6570_v1 = vld [vmem:[%s9439_s1 + $0x118] sm:$0xff]   ;;  %v7251_v21 = vsel %vm7075_vm5, %v1401_v37, %v1402_v33  ;;  %v1413_v63 = vrot.slane %v6957_v28, 5  ;;  %v5328_v33 = vrot.slane %v1283_v0, 9  ;;  %v1420_v37 = vrot.slane %v7012_v52, 5  ;;  %v6573_v0 = vld [vmem:[%s9439_s1 + $0xd0] sm:$0xff]  }
  0x6c   : > { %6252 = vmatprep.subr.bf16.mxu0 %v6566_v24  ;;  %v7239_v6 = vsel %vm7075_vm5, %v5325_v23, %v1399_v8  ;;  %v7259_v44 = vsel %vm7075_vm5, %v5326_v41, %v1406_v26  ;;  %v1408_v43 = vrot.slane %v1406_v26, 4  ;;  %v6574_v23 = vld [vmem:[%s9439_s1 + $0x110] sm:$0xff]   ;;  %v1416_v8 = vrot.slane %v6973_v61, 5  ;;  %v9479_v61 = vld [vmem:[#allocation3_spill] sm:$0xff] }
  0x6d   : > { %6123 = vmatmul.mubr.bf16.gmra.mxu1 %v5293_v30  ;;  %v1380_v30 = vrot.slane %v1378_v45, 4  ;;  %v1415_v20 = vrot.slane %v1413_v63, 4  ;;  %v1423_v50 = vrot.slane %v9479_v61, 5  ;;  %v1379_v61 = vsel %vm7075_vm5, %v5322_v10, %v1378_v45  ;;  %v5445_v45 = vld [vmem:[%s6733_s25 + $0x18] sm:$0xf] }
  0x6e   : > { %6126 = vmatprep.mubr.bf16.mxu1 %v5294_v40  ;;  %6203 = vmatpush3.bf16.msra.mxu1 %v6561_v32  ;;  %v5327_v40 = vrot.slane %v1282_v49, 9  ;;  %v7271_v32 = vld [vmem:[%s6733_s25 + $0x10] sm:$0xf]  ;;  %v7275_v41 = vsel %vm7075_vm5, %v1408_v43, %v1409_v57  ;;  %v1422_v57 = vrot.slane %v1420_v37, 4  ;;  %v2190_v12 = vshrl.u32 %v5442_v42, 16 }
  0x6f   : > { %6204 = vmatprep.subr.bf16.mxu1 %v6565_v2  ;;  %6253 = vmatpush3.bf16.msra.mxu0 %v6566_v24  ;;  %v9478_v24 = vld [vmem:[#allocation2_spill] sm:$0xff]  ;;  %v9481_v43 = vld [vmem:[#allocation4_spill] sm:$0xff]  ;;  %v2193_v10 = vshll.u32 %v5442_v42, 16  ;;  %v1387_v51 = vrot.slane %v1385_v58, 4  ;;  %v2199_v59 = vshll.u32 %v7271_v32, 16  ;;  %v1393_v4 = vsel %vm7075_vm5, %v5324_v5, %v1392_v47 }
  0x70   : > { %6254 = vmatprep.subr.bf16.mxu0 %v6570_v1  ;;  %v7279_v26 = vsel %vm7075_vm5, %v5327_v40, %v1413_v63  ;;  %v9480_v40 = vld [vmem:[#allocation5_spill] sm:$0xff]  ;;  %v7345_v42 = vld [vmem:[%s6733_s25 + $0x14] sm:$0x1]  ;;  %v2192_v63 = vrot.slane %v2190_v12, 4  ;;  %v9483_v5 = vld [vmem:[#allocation6_spill] sm:$0xff] }
  0x71   : > { %6175 = vmatmul.mubr.bf16.gmra.mxu0 %v5351_v53  ;;  %v2195_v49 = vrot.slane %v2193_v10, 5  ;;  %v5448_v53 = vld [vmem:[%s6733_s25 + $0x24] sm:$0xf]  ;;  %v1389_v11 = vsel %vm7075_vm5, %v1387_v51, %v1388_v7 }
  0x72   : > { %6205 = vmatpush3.bf16.msra.mxu1 %v6565_v2  ;;  %6178 = vmatprep.mubr.bf16.mxu0 %v5352_v38  ;;  %v7289_v2 = vsel %vm7075_vm5, %v5328_v33, %v1420_v37  ;;  %v5353_v38 = vcombine.low %v7216_v14, %v7220_v19  ;;  %v1382_v33 = vsel %vm7075_vm5, %v1380_v30, %v1381_v29  ;;  %v6578_v14 = vld [vmem:[%s9439_s1 + $0x108] sm:$0xff]   ;;  %v6582_v30 = vld [vmem:[%s9439_s1 + $0x100] sm:$0xff]   ;;  %v7364_v19 = vrot.slane %v2199_v59, 5 }
  0x73   : > { %6206 = vmatprep.subr.bf16.mxu1 %v6569_v36  ;;  %6255 = vmatpush3.bf16.msra.mxu0 %v6570_v1  ;;  %v7307_v37 = vsel %vm7075_vm5, %v1415_v20, %v1416_v8  ;;  %v7319_v29 = vsel %vm7075_vm5, %v1422_v57, %v1423_v50  ;;  %v6577_v50 = vld [vmem:[%s9439_s1 + $0xc8] sm:$0xff]   ;;  %v7334_v1 = vld [vmem:[%s6733_s25 + $0xb4] sm:$0xe]  ;;  %v5354_v20 = vcombine.low %v1379_v61, %v1382_v33  ;;  %v2203_v8 = vshrl.u32 %v7271_v32, 16  ;;  %v7362_v61 = vld [vmem:[%s6733_s25 + $0x1c] sm:$0xf] }
  0x74   : > { %6256 = vmatprep.subr.bf16.mxu0 %v6574_v23  ;;  %v7349_v57 = vld [vmem:[%s6733_s25 + $0x6c] sm:$0xf]  ;;  %v2214_v33 = vshrl.u32 %v5445_v45, 16  ;;  %v2223_v51 = vshll.u32 %v7362_v61, 16  ;;  %v2227_v39 = vshrl.u32 %v7362_v61, 16  ;;  %v2238_v59 = vshrl.u32 %v5448_v53, 16 }
  0x75   : > { %6127 = vmatmul.mubr.bf16.gmra.mxu1 %v5295_v35  ;;  %v1395_v35 = vrot.slane %v6651_v54, 5  ;;  %v5299_v54 = vcombine.low %v7349_v57, %v7223_v16  ;;  %v2205_v3 = vrot.slane %v2203_v8, 4  ;;  %v2241_v46 = vshll.u32 %v5448_v53, 16  ;;  %v6655_v8 = vld [vmem:[%s6733_s25 + $0x7c] sm:$0xf] }
  0x76   : > { %6130 = vmatprep.mubr.bf16.mxu1 %v5296_v60  ;;  %6207 = vmatpush3.bf16.msra.mxu1 %v6569_v36  ;;  %v5298_v60 = vcombine.low %v6652_v17, %v7205_v48  ;;  %v1394_v36 = vrot.slane %v1392_v47, 4  ;;  %v7359_v48 = vsel %vm7075_vm5, %v5323_v62, %v1385_v58  ;;  %v2217_v17 = vshll.u32 %v5445_v45, 16  ;;  %v6581_v58 = vld [vmem:[%s9439_s1 + $0xc0] sm:$0xff]   ;;  %v7389_v45 = vld [vmem:[%s6733_s25 + $0x28] sm:$0xf] }
  0x77   : > { %6208 = vmatprep.subr.bf16.mxu1 %v6573_v0  ;;  %6257 = vmatpush3.bf16.msra.mxu0 %v6574_v23  ;;  %v9451_v62 = vrot.slane %v9480_v40, 5  ;;  %v7376_v23 = vld [vmem:[%s6733_s25 + $0x20] sm:$0x1]  ;;  %v2216_v12 = vrot.slane %v2214_v33, 4  ;;  %9482 = vst [vmem:[#allocation2_spill] sm:$0xff] %v7389_v45  ;;  %v5355_v34 = vcombine.low %v7359_v48, %v1389_v11  ;;  %v2247_v53 = vshll.u32 %v7389_v45, 16 }
  0x78   : > { %6258 = vmatprep.subr.bf16.mxu0 %v6578_v14  ;;  %v2219_v10 = vrot.slane %v2217_v17, 5  ;;  %v1396_v7 = vsel %vm7075_vm5, %v1394_v36, %v1395_v35  ;;  %v2196_v35 = vor.u32 %v2195_v49, %v2192_v63  ;;  %v7402_v36 = vld [vmem:[%s9439_s1 + $0x178] sm:$0xff]   ;;  %v5451_v63 = vld [vmem:[%s6733_s25 + $0x30] sm:$0xf]  ;;  %v7423_v48 = vld [vmem:[%s6733_s25 + $0x34] sm:$0xf] }
  0x79   : > { %6179 = vmatmul.mubr.bf16.gmra.mxu0 %v5353_v38  ;;  %v2209_v38 = vshll.u32 %v7345_v42, 16  ;;  %v5356_v17 = vcombine.low %v1393_v4, %v1396_v7  ;;  %9485 = vst [vmem:[#allocation5_spill] sm:$0xff] %v7423_v48  ;;  %v7425_v11 = vrot.slane %v2223_v51, 5  ;;  %v2243_v47 = vrot.slane %v2241_v46, 5  ;;  %v7444_v46 = vld [vmem:[%s6733_s25 + $0x40] sm:$0xf] }
  0x7a   : > { %6209 = vmatpush3.bf16.msra.mxu1 %v6573_v0  ;;  %6182 = vmatprep.mubr.bf16.mxu0 %v5354_v20  ;;  %v2206_v20 = vor.u32 %v2205_v3, %v7364_v19  ;;  %v2220_v49 = vor.u32 %v2219_v10, %v2216_v12  ;;  %v6654_v3 = vld [vmem:[%s6733_s25 + $0x78] sm:$0xf]  ;;  %v2229_v12 = vrot.slane %v2227_v39, 4  ;;  %v2240_v10 = vrot.slane %v2238_v59, 4  ;;  %9486 = vst [vmem:[#allocation4_spill] sm:$0xff] %v7444_v46 }
  0x7b   : > { %6210 = vmatprep.subr.bf16.mxu1 %v6577_v50  ;;  %6259 = vmatpush3.bf16.msra.mxu0 %v6578_v14  ;;  %v2233_v14 = vshll.u32 %v7376_v23, 16  ;;  %v5300_v33 = vcombine.low %v6654_v3, %v6655_v8  ;;  %v7416_v25 = vrot.slane %v2209_v38, 5  ;;  %v7428_v0 = vld [vmem:[%s6733_s25 + $0x38] sm:$0x1]  ;;  %v7430_v4 = vrot.slane %v2196_v35, 4 }
  0x7c   : > { %6260 = vmatprep.subr.bf16.mxu0 %v6582_v30  ;;  %v7432_v7 = vrot.slane %v2206_v20, 4  ;;  %v2262_v3 = vshrl.u32 %v5451_v63, 16  ;;  %v5454_v8 = vld [vmem:[%s6733_s25 + $0x3c] sm:$0xf]  ;;  %v7440_v51 = vrot.slane %v2247_v53, 5  ;;  %v2265_v39 = vshll.u32 %v5451_v63, 16 }
  0x7d   : > { %6131 = vmatmul.mubr.bf16.gmra.mxu1 %v5297_v55  ;;  %v1429_v55 = vrot.slane %v9451_v62, 4  ;;  %v7434_v38 = vrot.slane %v2233_v14, 5  ;;  %v2271_v59 = vshll.u32 %v7423_v48, 16  ;;  %v2275_v20 = vshrl.u32 %v7423_v48, 16 }
  0x7e   : > { %6134 = vmatprep.mubr.bf16.mxu1 %v5298_v60  ;;  %6211 = vmatpush3.bf16.msra.mxu1 %v6577_v50  ;;  %v7419_v60 = vld [vmem:[%s6733_s25 + $0x2c] sm:$0x1]  ;;  %v2251_v50 = vshrl.u32 %v7389_v45, 16  ;;  %v2230_v14 = vor.u32 %v2229_v12, %v7425_v11  ;;  %v2264_v53 = vrot.slane %v2262_v3, 4  ;;  %v2267_v63 = vrot.slane %v2265_v39, 5 }
  0x7f   : > { %6212 = vmatprep.subr.bf16.mxu1 %v6581_v58  ;;  %9484 = vst [vmem:[#allocation3_spill] sm:$0xff] %v7419_v60  ;;  %6261 = vmatpush3.bf16.msra.mxu0 %v6582_v30  ;;  %v7438_v30 = vrot.slane %v2220_v49, 4  ;;  %v2286_v49 = vshrl.u32 %v5454_v8, 16  ;;  %v2289_v62 = vshll.u32 %v5454_v8, 16  ;;  %v2277_v48 = vrot.slane %v2275_v20, 4 }
  0x80   : > { %6342 = vmatprep.subr.bf16.mxu0 %v7407_v15  ;;  %v2253_v35 = vrot.slane %v2251_v50, 4  ;;  %v7454_v50 = vrot.slane %v2271_v59, 5  ;;  %v7457_v45 = vld [vmem:[%s6733_s25 + $0x44] sm:$0x1]  ;;  %v2299_v12 = vshrl.u32 %v7444_v46, 16  ;;  %v9487_v16 = vrot.slane %v9480_v40, 5 }
  0x81   : > { %6183 = vmatmul.mubr.bf16.gmra.mxu0 %v5355_v34  ;;  %v2257_v34 = vshll.u32 %v7419_v60, 16  ;;  %v9488_v57 = vrot.slane %v7334_v1, 9  ;;  %v7478_v39 = vld [vmem:[%s6733_s25 + $0x4c] sm:$0xf]  ;;  %v2288_v59 = vrot.slane %v2286_v49, 4  ;;  %v2291_v20 = vrot.slane %v2289_v62, 5 }
  0x82   : > { %6213 = vmatpush3.bf16.msra.mxu1 %v6581_v58  ;;  %6186 = vmatprep.mubr.bf16.mxu0 %v5356_v17  ;;  %v2244_v58 = vor.u32 %v2243_v47, %v2240_v10  ;;  %v2281_v17 = vshll.u32 %v7428_v0, 16  ;;  %v2295_v47 = vshll.u32 %v7444_v46, 16  ;;  %v5457_v10 = vld [vmem:[%s6733_s25 + $0x48] sm:$0xf]  ;;  %v2254_v8 = vor.u32 %v2253_v35, %v7440_v51 }
  0x83   : > { %6294 = vmatprep.subr.bf16.mxu1 %v7402_v36  ;;  %v2301_v1 = vrot.slane %v2299_v12, 4  ;;  %v7482_v46 = vrot.slane %v2230_v14, 4  ;;  %v2202_v62 = vsel %vm6764_vm2, %v7430_v4, %v7364_v19  ;;  %v2212_v35 = vsel %vm6764_vm2, %v7432_v7, %v7416_v25  ;;  %v5460_v4 = vld [vmem:[%s6733_s25 + $0x54] sm:$0xf] }
  0x84   : > { %v7480_v60 = vrot.slane %v2295_v47, 5  ;;  %v2313_v14 = vshll.u32 %v5457_v10, 16  ;;  %v2305_v49 = vshll.u32 %v7457_v45, 16  ;;  %v2323_v19 = vshrl.u32 %v7478_v39, 16 }
  0x85   : > { %6135 = vmatmul.mubr.bf16.gmra.mxu1 %v5299_v54  ;;  %v7468_v54 = vsel %vm7075_vm5, %v9488_v57, %v9487_v16  ;;  %v7484_v16 = vrot.slane %v2244_v58, 4  ;;  %v7486_v57 = vrot.slane %v2257_v34, 5  ;;  %v2319_v58 = vshll.u32 %v7478_v39, 16 }
  0x86   : > { %6138 = vmatprep.mubr.bf16.mxu1 %v5300_v33  ;;  %v9489_v33 = vrot.slane %v9483_v5, 5  ;;  %v2310_v5 = vshrl.u32 %v5457_v10, 16  ;;  %v9491_v34 = vcombine.low %v7259_v44, %v7275_v41  ;;  %v7507_v47 = vrot.slane %v2254_v8, 4  ;;  %v7513_v10 = vld [vmem:[%s6733_s25 + $0x58] sm:$0xf] }
  0x87   : > { %v7509_v12 = vrot.slane %v2281_v17, 5  ;;  %v2292_v25 = vor.u32 %v2291_v20, %v2288_v59  ;;  %v2302_v7 = vor.u32 %v2301_v1, %v7480_v60  ;;  %v9492_v44 = vcombine.low %v6854_v13, %v6861_v22  ;;  %v7519_v41 = vld [vmem:[%s6733_s25 + $0x50] sm:$0x1] }
  0x88   : > { %v7474_v3 = vsel %vm7075_vm5, %v1429_v55, %v9489_v33  ;;  %v9490_v55 = vcombine.low %v7239_v6, %v7251_v21  ;;  %v2268_v6 = vor.u32 %v2267_v63, %v2264_v53  ;;  %v2278_v21 = vor.u32 %v2277_v48, %v7454_v50 }
  0x89   : > { %v2312_v48 = vrot.slane %v2310_v5, 4  ;;  %v2315_v53 = vrot.slane %v2313_v14, 5  ;;  %v7521_v63 = vrot.slane %v2319_v58, 5  ;;  %v2325_v17 = vrot.slane %v2323_v19, 4  ;;  %v5463_v5 = vld [vmem:[%s6733_s25 + $0x60] sm:$0xf] }
  0x8a   : > { %6187 = vmatmul.mubr.bf16.gmra.mxu0 %v9490_v55  ;;  %v9493_v33 = vcombine.low %v6906_v18, %v6912_v31  ;;  %v2334_v8 = vshrl.u32 %v5460_v4, 16  ;;  %v2337_v59 = vshll.u32 %v5460_v4, 16  ;;  %v7526_v20 = vrot.slane %v2268_v6, 4  ;;  %v7543_v31 = vld [vmem:[%s6733_s25 + $0x64] sm:$0xf] }
  0x8b   : > { %6190 = vmatprep.mubr.bf16.mxu0 %v9491_v34  ;;  %v7528_v1 = vrot.slane %v2278_v21, 4  ;;  %v7530_v13 = vrot.slane %v2305_v49, 5  ;;  %v2343_v22 = vshll.u32 %v7513_v10, 16  ;;  %v5361_v55 = vcombine.low %v7468_v54, %v7474_v3  ;;  %v7539_v34 = vld [vmem:[%s6733_s25 + $0x5c] sm:$0x1] }
  0x8c   : > { %v5506_v14 = vcombine.low %v2202_v62, %v2212_v35  ;;  %v7536_v58 = vrot.slane %v2292_v25, 4  ;;  %v2347_v18 = vshrl.u32 %v7513_v10, 16  ;;  %v7545_v6 = vrot.slane %v2302_v7, 4 }
  0x8d   : > { %6139 = vmatmul.mubr.bf16.gmra.mxu1 %v9492_v44  ;;  %v2329_v21 = vshll.u32 %v7519_v41, 16  ;;  %v2358_v49 = vshrl.u32 %v5463_v5, 16  ;;  %v2361_v19 = vshll.u32 %v5463_v5, 16  ;;  %v9494_v4 = vcombine.low %v7279_v26, %v7307_v37 }
  0x8e   : > { %6142 = vmatprep.mubr.bf16.mxu1 %v9493_v33  ;;  %v2316_v54 = vor.u32 %v2315_v53, %v2312_v48  ;;  %v2326_v3 = vor.u32 %v2325_v17, %v7521_v63  ;;  %v2336_v62 = vrot.slane %v2334_v8, 4  ;;  %v2339_v35 = vrot.slane %v2337_v59, 5  ;;  %v7583_v8 = vld [vmem:[%s6733_s25 + $0x70] sm:$0xf] }
  0x8f   : > { %v9495_v25 = vcombine.low %v7289_v2, %v7319_v29  ;;  %v7555_v7 = vrot.slane %v2343_v22, 5  ;;  %v2349_v44 = vrot.slane %v2347_v18, 4  ;;  %v2353_v33 = vshll.u32 %v7539_v34, 16 }
  0x90   : > { %v2367_v26 = vshll.u32 %v7543_v31, 16  ;;  %v2226_v37 = vsel %vm6764_vm2, %v7438_v30, %v7425_v11  ;;  %v2236_v2 = vsel %vm6764_vm2, %v7482_v46, %v7434_v38  ;;  %v2360_v29 = vrot.slane %v2358_v49, 4  ;;  %v5466_v46 = vld [vmem:[%s6733_s25 + $0x6c] sm:$0xf] }
  0x91   : > { %v2363_v48 = vrot.slane %v2361_v19, 5  ;;  %v9496_v53 = vcombine.low %v6948_v9, %v6957_v28  ;;  %v2250_v17 = vsel %vm6764_vm2, %v7484_v16, %v7440_v51  ;;  %v2260_v11 = vsel %vm6764_vm2, %v7507_v47, %v7486_v57  ;;  %v7591_v16 = vld [vmem:[%s6733_s25 + $0x68] sm:$0x1] }
  0x92   : > { %6191 = vmatmul.mubr.bf16.gmra.mxu0 %v9494_v4  ;;  %v7578_v30 = vrot.slane %v2329_v21, 5  ;;  %v2371_v38 = vshrl.u32 %v7543_v31, 16  ;;  %v9497_v9 = vcombine.low %v9478_v24, %v7012_v52  ;;  %v7588_v28 = vrot.slane %v2316_v54, 4  ;;  %v6583_v52 = vld [vmem:[%s6733_s25 + $0xc] sm:$0xff]  }
  0x93   : > { %6194 = vmatprep.mubr.bf16.mxu0 %v9495_v25  ;;  %v2340_v51 = vor.u32 %v2339_v35, %v2336_v62  ;;  %v2382_v59 = vshrl.u32 %v5466_v46, 16  ;;  %v2385_v57 = vshll.u32 %v5466_v46, 16  ;;  %v7593_v47 = vrot.slane %v2326_v3, 4  ;;  %v7604_v62 = vld [vmem:[%s6733_s25 + $0x74] sm:$0x1] }
  0x94   : > { %v2350_v22 = vor.u32 %v2349_v44, %v7555_v7  ;;  %v7596_v5 = vrot.slane %v2353_v33, 5  ;;  %v2391_v18 = vshll.u32 %v7583_v8, 16  ;;  %v2364_v24 = vor.u32 %v2363_v48, %v2360_v29  ;;  %v5469_v25 = vld [vmem:[%s6733_s25 + $0x78] sm:$0xf]  ;;  %v7608_v44 = vld [vmem:[%s6733_s25 + $0x7c] sm:$0xf] }
  0x95   : > { %6143 = vmatmul.mubr.bf16.gmra.mxu1 %v9496_v53  ;;  %v7600_v21 = vrot.slane %v2367_v26, 5  ;;  %v2373_v49 = vrot.slane %v2371_v38, 4  ;;  %v2395_v19 = vshrl.u32 %v7583_v8, 16  ;;  %v5507_v4 = vcombine.low %v2226_v37, %v2236_v2  ;;  %v7615_v26 = vld [vmem:[%s6733_s25 + $0x80] sm:$0x1] }
  0x96   : > { %6146 = vmatprep.mubr.bf16.mxu1 %v9497_v9  ;;  %v5508_v54 = vcombine.low %v2250_v17, %v2260_v11  ;;  %v2384_v3 = vrot.slane %v2382_v59, 4  ;;  %v2387_v35 = vrot.slane %v2385_v57, 5  ;;  %v7610_v33 = vrot.slane %v2340_v51, 4 }
  0x97   : > { %v7612_v53 = vrot.slane %v2391_v18, 5  ;;  %v2397_v29 = vrot.slane %v2395_v19, 4  ;;  %v2406_v48 = vshrl.u32 %v5469_v25, 16  ;;  %v2377_v37 = vshll.u32 %v7591_v16, 16  ;;  %v5472_v19 = vld [vmem:[%s6733_s25 + $0x84] sm:$0xf] }
  0x98   : > { %v2409_v2 = vshll.u32 %v5469_v25, 16  ;;  %v2415_v17 = vshll.u32 %v7608_v44, 16  ;;  %v2419_v11 = vshrl.u32 %v7608_v44, 16  ;;  %v7620_v38 = vrot.slane %v2350_v22, 4  ;;  %v6587_v25 = vld [vmem:[%s6733_s25 + $0x24] sm:$0xff]  }
  0x99   : > { %v7622_v46 = vrot.slane %v2364_v24, 4  ;;  %v2408_v9 = vrot.slane %v2406_v48, 4  ;;  %v9498_v51 = vcombine.low %v9481_v43, %v9480_v40  ;;  %v2274_v22 = vsel %vm6764_vm2, %v7526_v20, %v7454_v50 }
  0x9a   : > { %6195 = vmatmul.mubr.bf16.gmra.mxu0 %v5361_v55  ;;  %v2374_v55 = vor.u32 %v2373_v49, %v7600_v21  ;;  %v2411_v59 = vrot.slane %v2409_v2, 5  ;;  %v7628_v57 = vrot.slane %v2415_v17, 5  ;;  %v2421_v18 = vrot.slane %v2419_v11, 4  ;;  %v7677_v17 = vld [vmem:[%s6733_s25 + $0x8c] sm:$0x1] }
  0x9b   : > { %6262 = vmatprep.mubr.bf16.mxu0 %v5506_v14  ;;  %v2388_v14 = vor.u32 %v2387_v35, %v2384_v3  ;;  %v2398_v24 = vor.u32 %v2397_v29, %v7612_v53  ;;  %v2401_v49 = vshll.u32 %v7604_v62, 16  ;;  %v2425_v40 = vshll.u32 %v7615_v26, 16  ;;  %v7651_v3 = vld [vmem:[%s6733_s25 + $0x88] sm:$0xf]  ;;  %v6584_v35 = vld [vmem:[%s6733_s25 + $0x18] sm:$0xff]  }
  0x9c   : > { %v2284_v43 = vsel %vm6764_vm2, %v7528_v1, %v7509_v12  ;;  %v2308_v50 = vsel %vm6764_vm2, %v7545_v6, %v7530_v13  ;;  %v2412_v20 = vor.u32 %v2411_v59, %v2408_v9  ;;  %v6590_v12 = vld [vmem:[%s9439_s1 + $0x1b0] sm:$0xff]   ;;  %v7658_v1 = vrot.slane %v2377_v37, 5  ;;  %v7682_v11 = vld [vmem:[%s9439_s1 + $0x1a8] sm:$0xff]  }
  0x9d   : > { %6147 = vmatmul.mubr.bf16.gmra.mxu1 %v9498_v51  ;;  %v2433_v29 = vshll.u32 %v5472_v19, 16  ;;  %v6589_v13 = vld [vmem:[%s9439_s1 + $0x170] sm:$0xff]   ;;  %v2322_v6 = vsel %vm6764_vm2, %v7588_v28, %v7521_v63  ;;  %v2332_v48 = vsel %vm6764_vm2, %v7593_v47, %v7578_v30  ;;  %v7672_v37 = vrot.slane %v2374_v55, 4 }
  0x9e   : > { %6214 = vmatprep.mubr.bf16.mxu1 %v6583_v52  ;;  %v2298_v52 = vsel %vm6764_vm2, %v7536_v58, %v7480_v60  ;;  %v2422_v60 = vor.u32 %v2421_v18, %v7628_v57  ;;  %v2430_v58 = vshrl.u32 %v5472_v19, 16  ;;  %v7674_v2 = vrot.slane %v2388_v14, 4  ;;  %v5475_v14 = vld [vmem:[%s6733_s25 + $0x90] sm:$0xf]  ;;  %v7705_v59 = vld [vmem:[%s6733_s25 + $0x94] sm:$0xf] }
  0x9f   : > { %v7684_v63 = vrot.slane %v2398_v24, 4  ;;  %v7686_v28 = vrot.slane %v2401_v49, 5  ;;  %v2439_v30 = vshll.u32 %v7651_v3, 16  ;;  %v2443_v47 = vshrl.u32 %v7651_v3, 16  ;;  %9499 = vst [vmem:[#allocation6_spill] sm:$0xff] %v7705_v59 }
  0xa0   : > { %v2356_v55 = vsel %vm6764_vm2, %v7620_v38, %v7596_v5  ;;  %v7699_v9 = vrot.slane %v2412_v20, 4  ;;  %v7701_v51 = vrot.slane %v2425_v40, 5  ;;  %v2435_v18 = vrot.slane %v2433_v29, 5  ;;  %v6593_v5 = vld [vmem:[%s9439_s1 + $0x168] sm:$0xff]  }
  0xa1   : > { %v2457_v38 = vshll.u32 %v5475_v14, 16  ;;  %v2463_v24 = vshll.u32 %v7705_v59, 16  ;;  %v2467_v49 = vshrl.u32 %v7705_v59, 16  ;;  %v5509_v40 = vcombine.low %v2274_v22, %v2284_v43 }
  0xa2   : > { %6263 = vmatmul.mubr.bf16.vlgmr.msra.gmra.mxu0 %v5507_v4  ;;  %v2346_v4 = vsel %vm6764_vm2, %v7610_v33, %v7555_v7  ;;  %v2449_v7 = vshll.u32 %v7677_v17, 16  ;;  %v2454_v33 = vshrl.u32 %v5475_v14, 16  ;;  %v5510_v20 = vcombine.low %v2298_v52, %v2308_v50 }
  0xa3   : > { %6343 = vmatpush3.bf16.msra.mxu0 %v7407_v15  ;;  %6266 = vmatprep.mubr.bf16.mxu0 %v5508_v54  ;;  %v7707_v15 = vrot.slane %v2422_v60, 4  ;;  %v2432_v54 = vrot.slane %v2430_v58, 4  ;;  %v7716_v19 = vrot.slane %v2439_v30, 5  ;;  %v6588_v60 = vld [vmem:[%s6733_s25 + $0x30] sm:$0xff]   ;;  %v6598_v58 = vld [vmem:[%s9439_s1 + $0x1a0] sm:$0xff]   ;;  %v2459_v14 = vrot.slane %v2457_v38, 5 }
  0xa4   : > { %6344 = vmatprep.subr.bf16.mxu0 %v6590_v12  ;;  %v2456_v29 = vrot.slane %v2454_v33, 4  ;;  %v2469_v22 = vrot.slane %v2467_v49, 4  ;;  %v7724_v43 = vcombine.low %v2322_v6, %v2332_v48  ;;  %v7727_v52 = vcombine.low %v2346_v4, %v2356_v55  ;;  %v5478_v30 = vld [vmem:[%s6733_s25 + $0x9c] sm:$0xf]  ;;  %v7749_v4 = vld [vmem:[%s6733_s25 + $0xa4] sm:$0x1] }
  0xa5   : > { %6215 = vmatmul.mubr.bf16.vlgmr.msra.gmra.mxu1 %v6584_v35  ;;  %v2445_v35 = vrot.slane %v2443_v47, 4  ;;  %v2436_v48 = vor.u32 %v2435_v18, %v2432_v54  ;;  %v7746_v47 = vld [vmem:[%s6733_s25 + $0xa0] sm:$0xf]  ;;  %9502 = vst [vmem:[#allocation9_spill] sm:$0xff] %v7749_v4  ;;  %v2478_v55 = vshrl.u32 %v5478_v30, 16  ;;  %v2481_v33 = vshll.u32 %v5478_v30, 16 }
  0xa6   : > { %6295 = vmatpush3.bf16.msra.mxu1 %v7402_v36  ;;  %6218 = vmatprep.mubr.bf16.mxu1 %v6587_v25  ;;  %v7722_v36 = vrot.slane %v2463_v24, 5  ;;  %v2380_v25 = vsel %vm6764_vm2, %v7672_v37, %v7658_v1  ;;  %9501 = vst [vmem:[#allocation8_spill] sm:$0xff] %v7746_v47  ;;  %v6591_v38 = vld [vmem:[%s6733_s25 + $0x3c] sm:$0xff]   ;;  %v2487_v37 = vshll.u32 %v7746_v47, 16  ;;  %v2491_v24 = vshrl.u32 %v7746_v47, 16 }
  0xa7   : > { %6296 = vmatprep.subr.bf16.mxu1 %v6589_v13  ;;  %6345 = vmatpush3.bf16.msra.mxu0 %v6590_v12  ;;  %v7738_v12 = vld [vmem:[%s6733_s25 + $0x98] sm:$0x1]  ;;  %v2446_v1 = vor.u32 %v2445_v35, %v7716_v19  ;;  %v6597_v54 = vld [vmem:[%s9439_s1 + $0x160] sm:$0xff]   ;;  %v2460_v18 = vor.u32 %v2459_v14, %v2456_v29  ;;  %v2480_v30 = vrot.slane %v2478_v55, 4  ;;  %v2483_v49 = vrot.slane %v2481_v33, 5 }
  0xa8   : > { %6346 = vmatprep.subr.bf16.mxu0 %v7682_v11  ;;  %9500 = vst [vmem:[#allocation7_spill] sm:$0xff] %v7738_v12  ;;  %v2473_v35 = vshll.u32 %v7738_v12, 16  ;;  %v2493_v6 = vrot.slane %v2491_v24, 4  ;;  %v2497_v50 = vshll.u32 %v7749_v4, 16  ;;  %v5481_v47 = vld [vmem:[%s6733_s25 + $0xa8] sm:$0xf] }
  0xa9   : > { %v6601_v29 = vld [vmem:[%s9439_s1 + $0x158] sm:$0xff]   ;;  %v7772_v14 = vrot.slane %v2436_v48, 4  ;;  %v2502_v55 = vshrl.u32 %v5481_v47, 16  ;;  %v2505_v33 = vshll.u32 %v5481_v47, 16  ;;  %v7785_v4 = vld [vmem:[%s6733_s25 + $0xb0] sm:$0x1] }
  0xaa   : > { %6267 = vmatmul.mubr.bf16.gmra.mxu0 %v5509_v40  ;;  %6297 = vmatpush3.bf16.msra.mxu1 %v6589_v13  ;;  %v6602_v13 = vld [vmem:[%s9439_s1 + $0x198] sm:$0xff]   ;;  %v2470_v40 = vor.u32 %v2469_v22, %v7722_v36  ;;  %v7774_v22 = vrot.slane %v2449_v7, 5  ;;  %v6592_v48 = vld [vmem:[%s6733_s25 + $0x48] sm:$0xff]   ;;  %v7788_v7 = vrot.slane %v2446_v1, 4  ;;  %v7790_v12 = vrot.slane %v2460_v18, 4 }
  0xab   : > { %6270 = vmatprep.mubr.bf16.mxu0 %v5510_v20  ;;  %6298 = vmatprep.subr.bf16.mxu1 %v6593_v5  ;;  %v7765_v20 = vrot.slane %v2487_v37, 5  ;;  %v2484_v37 = vor.u32 %v2483_v49, %v2480_v30  ;;  %v7792_v59 = vrot.slane %v2473_v35, 5  ;;  %v6605_v49 = vld [vmem:[%s9439_s1 + $0x150] sm:$0xff]   ;;  %v7809_v18 = vrot.slane %v2505_v33, 5 }
  0xac   : > { %6347 = vmatpush3.bf16.msra.mxu0 %v7682_v11  ;;  %v7777_v11 = vld [vmem:[%s6733_s25 + $0xac] sm:$0xf]  ;;  %v2521_v35 = vshll.u32 %v7785_v4, 16 }
  0xad   : > { %6219 = vmatmul.mubr.bf16.gmra.mxu1 %v6588_v60  ;;  %6348 = vmatprep.subr.bf16.mxu0 %v6598_v58  ;;  %9503 = vst [vmem:[#allocation10_spill] sm:$0xff] %v7777_v11  ;;  %v2404_v60 = vsel %vm6764_vm2, %v7684_v63, %v7686_v28  ;;  %v2494_v24 = vor.u32 %v2493_v6, %v7765_v20  ;;  %v2511_v47 = vshll.u32 %v7777_v11, 16  ;;  %v6595_v63 = vld [vmem:[%s6733_s25 + $0x54] sm:$0xff]   ;;  %v7799_v28 = vrot.slane %v2470_v40, 4 }
  0xae   : > { %6222 = vmatprep.mubr.bf16.mxu1 %v6591_v38  ;;  %6299 = vmatpush3.bf16.msra.mxu1 %v6593_v5  ;;  %v6606_v5 = vld [vmem:[%s9439_s1 + $0x190] sm:$0xff]   ;;  %v7801_v6 = vrot.slane %v2497_v50, 5  ;;  %v7803_v38 = vrot.slane %v2502_v55, 4  ;;  %v2515_v1 = vshrl.u32 %v7777_v11, 16  ;;  %v7818_v40 = vrot.slane %v2484_v37, 4 }
  0xaf   : > { %6300 = vmatprep.subr.bf16.mxu1 %v6597_v54  ;;  %v7820_v30 = vrot.slane %v2494_v24, 4  ;;  %v5484_v55 = vld [vmem:[%s6733_s25 + $0xb4] sm:$0xf]  ;;  %v7824_v11 = vld [vmem:[%s6733_s25 + $0xb8] sm:$0xf]  ;;  %v6609_v24 = vld [vmem:[%s9439_s1 + $0x148] sm:$0xff]  }
  0xb0   : > { %6349 = vmatpush3.bf16.msra.mxu0 %v6598_v58  ;;  %v9504_v58 = vsel %vm6764_vm2, %v7622_v46, %v7600_v21  ;;  %9505 = vst [vmem:[#allocation11_spill] sm:$0xff] %v7824_v11  ;;  %v2418_v21 = vsel %vm6764_vm2, %v7699_v9, %v7628_v57  ;;  %v7836_v46 = vrot.slane %v2511_v47, 5  ;;  %v5487_v37 = vld [vmem:[%s6733_s25 + $0xc0] sm:$0xf]  ;;  %v2428_v57 = vsel %vm6764_vm2, %v7707_v15, %v7701_v51  ;;  %v7863_v47 = vld [vmem:[%s6733_s25 + $0xc4] sm:$0xf] }
  0xb1   : > { %6350 = vmatprep.subr.bf16.mxu0 %v6602_v13  ;;  %v5513_v50 = vcombine.low %v9504_v58, %v2380_v25  ;;  %v2526_v25 = vshrl.u32 %v5484_v55, 16  ;;  %v2442_v9 = vsel %vm6764_vm2, %v7772_v14, %v7716_v19  ;;  %9508 = vst [vmem:[#allocation13_spill] sm:$0xff] %v7863_v47  ;;  %v7866_v51 = vld [vmem:[%s6733_s25 + $0xc8] sm:$0x1]  ;;  %v2559_v58 = vshll.u32 %v7863_v47, 16 }
  0xb2   : > { %6271 = vmatmul.mubr.bf16.gmra.mxu0 %v7724_v43  ;;  %6301 = vmatpush3.bf16.msra.mxu1 %v6597_v54  ;;  %v9506_v43 = vsel %vm6764_vm2, %v7674_v2, %v7612_v53  ;;  %v2517_v54 = vrot.slane %v2515_v1, 4  ;;  %v2529_v53 = vshll.u32 %v5484_v55, 16  ;;  %v2535_v2 = vshll.u32 %v7824_v11, 16 }
  0xb3   : > { %6274 = vmatprep.mubr.bf16.mxu0 %v7727_v52  ;;  %v5514_v33 = vcombine.low %v9506_v43, %v2404_v60  ;;  %6302 = vmatprep.subr.bf16.mxu1 %v6601_v29  ;;  %v6610_v52 = vld [vmem:[%s9439_s1 + $0x188] sm:$0xff]   ;;  %v2539_v60 = vshrl.u32 %v7824_v11, 16  ;;  %v2528_v15 = vrot.slane %v2526_v25, 4  ;;  %v9509_v55 = vrot.slane %v7271_v32, 5 }
  0xb4   : > { %6351 = vmatpush3.bf16.msra.mxu0 %v6602_v13  ;;  %v2452_v13 = vsel %vm6764_vm2, %v7788_v7, %v7774_v22  ;;  %v2531_v19 = vrot.slane %v2529_v53, 5  ;;  %v7868_v14 = vrot.slane %v2535_v2, 5  ;;  %v2550_v22 = vshrl.u32 %v5487_v37, 16  ;;  %v6596_v2 = vld [vmem:[%s6733_s25 + $0x60] sm:$0xff]  }
  0xb5   : > { %6223 = vmatmul.mubr.bf16.gmra.mxu1 %v6592_v48  ;;  %6352 = vmatprep.subr.bf16.mxu0 %v6606_v5  ;;  %v7860_v48 = vld [vmem:[%s6733_s25 + $0xbc] sm:$0x1]  ;;  %v2541_v1 = vrot.slane %v2539_v60, 4  ;;  %v2553_v7 = vshll.u32 %v5487_v37, 16  ;;  %v7873_v43 = vrot.slane %v9509_v55, 4  ;;  %v7878_v25 = vrot.slane %v2521_v35, 5 }
  0xb6   : > { %9507 = vst [vmem:[#allocation12_spill] sm:$0xff] %v7860_v48  ;;  %6226 = vmatprep.mubr.bf16.mxu1 %v6595_v63  ;;  %6303 = vmatpush3.bf16.msra.mxu1 %v6601_v29  ;;  %v2508_v63 = vor.u32 %v7809_v18, %v7803_v38  ;;  %v2518_v29 = vor.u32 %v2517_v54, %v7836_v46  ;;  %v2563_v53 = vshrl.u32 %v7863_v47, 16  ;;  %v2545_v60 = vshll.u32 %v7860_v48, 16  ;;  %v6599_v38 = vld [vmem:[%s6733_s25 + $0x6c] sm:$0xff]   ;;  %v7898_v48 = vld [vmem:[%s6733_s25 + $0x18] sm:$0xe] }
  0xb7   : > { %6304 = vmatprep.subr.bf16.mxu1 %v6605_v49  ;;  %v2552_v37 = vrot.slane %v2550_v22, 4  ;;  %v2555_v11 = vrot.slane %v2553_v7, 5  ;;  %v7883_v55 = vrot.slane %v2559_v58, 5  ;;  %v2532_v18 = vor.u32 %v2531_v19, %v2528_v15  ;;  %v6613_v22 = vld [vmem:[%s9439_s1 + $0x140] sm:$0xff]   ;;  %v7895_v58 = vld [vmem:[%s6733_s25 + $0xc] sm:$0xe] }
  0xb8   : > { %6353 = vmatpush3.bf16.msra.mxu0 %v6606_v5  ;;  %v6614_v5 = vld [vmem:[%s9439_s1 + $0x180] sm:$0xff]   ;;  %v2542_v35 = vor.u32 %v2541_v1, %v7868_v14  ;;  %v2565_v54 = vrot.slane %v2563_v53, 4  ;;  %v2569_v47 = vshll.u32 %v7866_v51, 16  ;;  %v5515_v15 = vcombine.low %v2418_v21, %v2428_v57 }
  0xb9   : > { %6354 = vmatprep.subr.bf16.mxu0 %v6610_v52  ;;  %v2556_v7 = vor.u32 %v2555_v11, %v2552_v37  ;;  %v5516_v19 = vcombine.low %v2442_v9, %v2452_v13  ;;  %v7906_v1 = vrot.slane %v2508_v63, 4  ;;  %v7908_v11 = vrot.slane %v2518_v29, 4  ;;  %v6600_v9 = vld [vmem:[%s6733_s25 + $0x78] sm:$0xff]   ;;  %v6603_v37 = vld [vmem:[%s6733_s25 + $0x84] sm:$0xff]  }
  0xba   : > { %6275 = vmatmul.mubr.bf16.gmra.mxu0 %v5513_v50  ;;  %6305 = vmatpush3.bf16.msra.mxu1 %v6605_v49  ;;  %v7903_v49 = vld [vmem:[%s9439_s1 + $0x238] sm:$0xff]   ;;  %v2566_v50 = vor.u32 %v2565_v54, %v7883_v55  ;;  %v7917_v53 = vrot.slane %v2542_v35, 4  ;;  %v7919_v21 = vrot.slane %v2545_v60, 5  ;;  %v7925_v63 = vrot.slane %v2569_v47, 5  ;;  %v5533_v60 = vld [vmem:[%s6733_s25 + $0x30] sm:$0xe] }
  0xbb   : > { %6278 = vmatprep.mubr.bf16.mxu0 %v5514_v33  ;;  %6306 = vmatprep.subr.bf16.mxu1 %v6609_v24  ;;  %v7913_v33 = vld [vmem:[%s9439_s1 + $0x1f8] sm:$0xff]   ;;  %v7923_v13 = vrot.slane %v2556_v7, 4  ;;  %v2964_v29 = vrot.slane %v7345_v42, 5  ;;  %v9510_v35 = vld [vmem:[#allocation2_spill] sm:$0xff]  ;;  %v5549_v47 = vrot.slane %v5533_v60, 9  ;;  %v9513_v60 = vld [vmem:[#allocation3_spill] sm:$0xff] }
  0xbc   : > { %6355 = vmatpush3.bf16.msra.mxu0 %v6610_v52  ;;  %v7915_v52 = vrot.slane %v2532_v18, 4  ;;  %v9511_v7 = vld [vmem:[#allocation5_spill] sm:$0xff]  ;;  %v2985_v18 = vrot.slane %v7428_v0, 5  ;;  %v2500_v0 = vsel %vm6764_vm2, %v7820_v30, %v7801_v6  ;;  %v2999_v30 = vrot.slane %v7519_v41, 5 }
  0xbd   : > { %6227 = vmatmul.mubr.bf16.gmra.mxu1 %v6596_v2  ;;  %6356 = vmatprep.subr.bf16.mxu0 %v6614_v5  ;;  %v2982_v57 = vrot.slane %v9511_v7, 5  ;;  %v9512_v2 = vld [vmem:[#allocation4_spill] sm:$0xff] }
  0xbe   : > { %6230 = vmatprep.mubr.bf16.mxu1 %v6599_v38  ;;  %6307 = vmatpush3.bf16.msra.mxu1 %v6609_v24  ;;  %v7930_v24 = vrot.slane %v2566_v50, 4  ;;  %v2968_v38 = vrot.slane %v7362_v61, 5  ;;  %v2466_v50 = vsel %vm6764_vm2, %v7790_v12, %v7722_v36  ;;  %v2989_v54 = vrot.slane %v9512_v2, 5  ;;  %v5534_v12 = vld [vmem:[%s6733_s25 + $0x3c] sm:$0xe] }
  0xbf   : > { %6308 = vmatprep.subr.bf16.mxu1 %v6613_v22  ;;  %v7952_v7 = vsel %vm7075_vm5, %v5549_v47, %v2982_v57  ;;  %v2984_v36 = vrot.slane %v2982_v57, 4  ;;  %v5550_v2 = vrot.slane %v5534_v12, 9  ;;  %v6604_v47 = vld [vmem:[%s6733_s25 + $0x90] sm:$0xff]   ;;  %v3006_v12 = vrot.slane %v7539_v34, 5 }
  0xc0   : > { %6357 = vmatpush3.bf16.msra.mxu0 %v6614_v5  ;;  %v2476_v5 = vsel %vm6764_vm2, %v7799_v28, %v7792_v59  ;;  %v2490_v59 = vsel %vm6764_vm2, %v7818_v40, %v7765_v20  ;;  %v2991_v28 = vrot.slane %v2989_v54, 4  ;;  %v2996_v20 = vrot.slane %v7478_v39, 5 }
  0xc1   : > { %6438 = vmatprep.subr.bf16.mxu0 %v7903_v49  ;;  %v7966_v57 = vsel %vm7075_vm5, %v2984_v36, %v2985_v18  ;;  %v5518_v18 = vcombine.low %v2490_v59, %v2500_v0  ;;  %v7981_v39 = vsel %vm7075_vm5, %v5550_v2, %v2989_v54  ;;  %v2514_v36 = vsel %vm6764_vm2, %v7906_v1, %v7836_v46  ;;  %v5536_v54 = vld [vmem:[%s6733_s25 + $0x54] sm:$0xe] }
  0xc2   : > { %6279 = vmatmul.mubr.bf16.gmra.mxu0 %v5515_v15  ;;  %6309 = vmatpush3.bf16.msra.mxu1 %v6613_v22  ;;  %v2978_v15 = vrot.slane %v9513_v60, 5  ;;  %v2992_v22 = vrot.slane %v7457_v45, 5  ;;  %v5581_v40 = vcombine.low %v7952_v7, %v7966_v57  ;;  %v5535_v45 = vld [vmem:[%s6733_s25 + $0x48] sm:$0xe]  ;;  %v2524_v46 = vsel %vm6764_vm2, %v7908_v11, %v7878_v25  ;;  %v6624_v7 = vld [vmem:[%s6733_s25 + $0x54] sm:$0xff]  }
  0xc3   : > { %6282 = vmatprep.mubr.bf16.mxu0 %v5516_v19  ;;  %6390 = vmatprep.subr.bf16.mxu1 %v7913_v33  ;;  %v5517_v19 = vcombine.low %v2466_v50, %v2476_v5  ;;  %v2998_v50 = vrot.slane %v2996_v20, 4  ;;  %v6607_v5 = vld [vmem:[%s6733_s25 + $0x9c] sm:$0xff]   ;;  %v3010_v2 = vrot.slane %v7543_v31, 5  ;;  %v2538_v34 = vsel %vm6764_vm2, %v7915_v52, %v7868_v14 }
  0xc4   : > { %v7973_v6 = vsel %vm7075_vm5, %v2991_v28, %v2992_v22  ;;  %v5552_v28 = vrot.slane %v5536_v54, 9  ;;  %v5537_v22 = vld [vmem:[%s6733_s25 + $0x60] sm:$0xe]  ;;  %v3013_v25 = vrot.slane %v7591_v16, 5  ;;  %v2548_v11 = vsel %vm6764_vm2, %v7917_v53, %v7919_v21 }
  0xc5   : > { %6231 = vmatmul.mubr.bf16.gmra.mxu1 %v6600_v9  ;;  %v3003_v9 = vrot.slane %v7513_v10, 5  ;;  %v5582_v41 = vcombine.low %v7981_v39, %v7973_v6  ;;  %v7996_v59 = vsel %vm7075_vm5, %v2998_v50, %v2999_v30  ;;  %v3017_v14 = vrot.slane %v7583_v8, 5  ;;  %v5763_v6 = vld [vmem:[%s6733_s25 + $0x24] sm:$0xe] }
  0xc6   : > { %6234 = vmatprep.mubr.bf16.mxu1 %v6603_v37  ;;  %v5551_v37 = vrot.slane %v5535_v45, 9  ;;  %v3012_v45 = vrot.slane %v3010_v2, 4  ;;  %v5519_v52 = vcombine.low %v2514_v36, %v2524_v46  ;;  %v3020_v8 = vrot.slane %v7604_v62, 5  ;;  %v5539_v36 = vld [vmem:[%s6733_s25 + $0x78] sm:$0xe] }
  0xc7   : > { %v3005_v0 = vrot.slane %v3003_v9, 4  ;;  %v8023_v31 = vsel %vm7075_vm5, %v5552_v28, %v3003_v9  ;;  %v3019_v9 = vrot.slane %v3017_v14, 4  ;;  %v3024_v54 = vrot.slane %v7608_v44, 5 }
  0xc8   : > { %v7992_v10 = vsel %vm7075_vm5, %v5551_v37, %v2996_v20  ;;  %v5553_v20 = vrot.slane %v5537_v22, 9  ;;  %v8035_v53 = vsel %vm7075_vm5, %v3012_v45, %v3013_v25  ;;  %v5520_v37 = vcombine.low %v2538_v34, %v2548_v11 }
  0xc9   : > { %v8051_v46 = vsel %vm7075_vm5, %v3019_v9, %v3020_v8  ;;  %v5555_v62 = vrot.slane %v5539_v36, 9  ;;  %v3031_v28 = vrot.slane %v7651_v3, 5  ;;  %v3026_v44 = vrot.slane %v3024_v54, 4  ;;  %v6615_v8 = vld [vmem:[%s6733_s25 + $0x18] sm:$0xff]   ;;  %v9518_v36 = vld [vmem:[#allocation8_spill] sm:$0xff] }
  0xca   : > { %6283 = vmatmul.mubr.bf16.gmra.mxu0 %v5517_v19  ;;  %v8014_v19 = vsel %vm7075_vm5, %v3005_v0, %v3006_v12  ;;  %v8030_v16 = vsel %vm7075_vm5, %v5553_v20, %v3010_v2  ;;  %v3027_v0 = vrot.slane %v7615_v26, 5  ;;  %v3034_v26 = vrot.slane %v7677_v17, 5  ;;  %v5540_v20 = vld [vmem:[%s6733_s25 + $0x84] sm:$0xe] }
  0xcb   : > { %6286 = vmatprep.mubr.bf16.mxu0 %v5518_v18  ;;  %v5538_v18 = vld [vmem:[%s6733_s25 + $0x6c] sm:$0xe]  ;;  %v2562_v2 = vsel %vm6764_vm2, %v7923_v13, %v7883_v55  ;;  %v8063_v34 = vsel %vm7075_vm5, %v5555_v62, %v3024_v54  ;;  %v2572_v3 = vsel %vm6764_vm2, %v7930_v24, %v7925_v63  ;;  %v5556_v25 = vrot.slane %v5540_v20, 9  ;;  %v9516_v63 = vld [vmem:[#allocation6_spill] sm:$0xff] }
  0xcc   : > { %v5554_v21 = vrot.slane %v5538_v18, 9  ;;  %v8072_v17 = vsel %vm7075_vm5, %v3026_v44, %v3027_v0  ;;  %v3033_v11 = vrot.slane %v3031_v28, 4  ;;  %v9514_v45 = vrot.slane %v7271_v32, 5  ;;  %v5541_v18 = vld [vmem:[%s6733_s25 + $0x90] sm:$0xe]  ;;  %v6627_v62 = vld [vmem:[%s6733_s25 + $0x60] sm:$0xff]  }
  0xcd   : > { %6235 = vmatmul.mubr.bf16.gmra.mxu1 %v6604_v47  ;;  %v6608_v47 = vld [vmem:[%s6733_s25 + $0xa8] sm:$0xff]   ;;  %v9515_v55 = vrot.slane %v7895_v58, 9  ;;  %v3038_v24 = vrot.slane %v9516_v63, 5  ;;  %v8089_v32 = vsel %vm7075_vm5, %v5556_v25, %v3031_v28  ;;  %v3045_v54 = vrot.slane %v9518_v36, 5 }
  0xce   : > { %6238 = vmatprep.mubr.bf16.mxu1 %v6607_v5  ;;  %v6611_v5 = vld [vmem:[%s6733_s25 + $0xb4] sm:$0xff]   ;;  %v8047_v12 = vsel %vm7075_vm5, %v5554_v21, %v3017_v14  ;;  %v5532_v14 = vld [vmem:[%s6733_s25 + $0x24] sm:$0xe]  ;;  %v9517_v21 = vld [vmem:[#allocation7_spill] sm:$0xff]  ;;  %v8093_v58 = vsel %vm7075_vm5, %v3033_v11, %v3034_v26  ;;  %v5521_v0 = vcombine.low %v2562_v2, %v2572_v3  ;;  %v2965_v28 = vsel %vm7075_vm5, %v7873_v43, %v2964_v29 }
  0xcf   : > { %v2962_v13 = vsel %vm7075_vm5, %v9515_v55, %v9514_v45  ;;  %v3041_v9 = vrot.slane %v9517_v21, 5  ;;  %v3040_v44 = vrot.slane %v3038_v24, 4  ;;  %v6612_v45 = vld [vmem:[%s6733_s25 + $0xc0] sm:$0xff]   ;;  %v2970_v26 = vrot.slane %v2968_v38, 4  ;;  %v5542_v2 = vld [vmem:[%s6733_s25 + $0x9c] sm:$0xe] }
  0xd0   : > { %v3047_v3 = vrot.slane %v3045_v54, 4  ;;  %v5558_v11 = vrot.slane %v5542_v2, 9  ;;  %v9520_v55 = vld [vmem:[#allocation10_spill] sm:$0xff]  ;;  %v5543_v63 = vld [vmem:[%s6733_s25 + $0xa8] sm:$0xe]  ;;  %v5578_v21 = vcombine.low %v2962_v13, %v2965_v28  ;;  %v9524_v28 = vrot.slane %v7898_v48, 9 }
  0xd1   : > { %v8114_v25 = vsel %vm7075_vm5, %v3040_v44, %v3041_v9  ;;  %v3052_v42 = vrot.slane %v9520_v55, 5  ;;  %v8237_v43 = vld [vmem:[%s6733_s25 + $0x34] sm:$0xf] }
  0xd2   : > { %6287 = vmatmul.mubr.bf16.gmra.mxu0 %v5519_v52  ;;  %v8127_v9 = vsel %vm7075_vm5, %v5558_v11, %v3045_v54  ;;  %v5544_v54 = vld [vmem:[%s6733_s25 + $0xb4] sm:$0xe]  ;;  %v3886_v39 = vshll.u32 %v8237_v43, 16 }
  0xd3   : > { %6290 = vmatprep.mubr.bf16.mxu0 %v5520_v37  ;;  %v5557_v37 = vrot.slane %v5541_v18, 9  ;;  %v5548_v18 = vrot.slane %v5532_v14, 9  ;;  %v3054_v36 = vrot.slane %v3052_v42, 4  ;;  %v9521_v14 = vrot.slane %v9510_v35, 5 }
  0xd4   : > { %v5560_v55 = vrot.slane %v5544_v54, 9 }
  0xd5   : > { %6239 = vmatmul.mubr.bf16.gmra.mxu1 %v6608_v47  ;;  %v9519_v47 = vld [vmem:[#allocation9_spill] sm:$0xff]  ;;  %v2977_v44 = vrot.slane %v9521_v14, 4  ;;  %v9526_v61 = vmov %v9521_v14  ;;  %v3069_v14 = vrot.slane %v7866_v51, 5  ;;  %v5680_v51 = vld [vmem:[%s6733_s25 + $0x30] sm:$0xf] }
  0xd6   : > { %6242 = vmatprep.mubr.bf16.mxu1 %v6611_v5  ;;  %v3048_v20 = vrot.slane %v9519_v47, 5  ;;  %v8109_v5 = vsel %vm7075_vm5, %v5557_v37, %v3038_v24  ;;  %v3055_v24 = vrot.slane %v7785_v4, 5  ;;  %v5559_v37 = vrot.slane %v5543_v63, 9 }
  0xd7   : > { %v9525_v63 = vrot.slane %v7376_v23, 5  ;;  %v2976_v48 = vsel %vm7075_vm5, %v5548_v18, %v9526_v61  ;;  %v2979_v23 = vsel %vm7075_vm5, %v2977_v44, %v2978_v15  ;;  %v8207_v61 = vld [vmem:[%s6733_s25 + $0x28] sm:$0xf] }
  0xd8   : > { %v8121_v29 = vsel %vm7075_vm5, %v3047_v3, %v3048_v20  ;;  %v9522_v20 = vld [vmem:[#allocation11_spill] sm:$0xff]  ;;  %v8136_v4 = vsel %vm7075_vm5, %v5559_v37, %v3052_v42  ;;  %v8140_v13 = vsel %vm7075_vm5, %v3054_v36, %v3055_v24  ;;  %v2969_v3 = vsel %vm7075_vm5, %v9524_v28, %v2968_v38  ;;  %v5545_v37 = vld [vmem:[%s6733_s25 + $0xc0] sm:$0xe]  ;;  %v9527_v38 = vld [vmem:[#allocation13_spill] sm:$0xff] }
  0xd9   : > { %v3059_v2 = vrot.slane %v9522_v20, 5  ;;  %v2972_v24 = vsel %vm7075_vm5, %v2970_v26, %v9525_v63  ;;  %v3066_v36 = vrot.slane %v9527_v38, 5  ;;  %v5561_v18 = vrot.slane %v5545_v37, 9  ;;  %v6622_v20 = vld [vmem:[%s9439_s1 + $0x230] sm:$0xff]   ;;  %v5677_v63 = vld [vmem:[%s6733_s25 + $0x24] sm:$0xf] }
  0xda   : > { %6291 = vmatmul.mubr.bf16.gmra.mxu0 %v5521_v0  ;;  %v5579_v15 = vcombine.low %v2969_v3, %v2972_v24  ;;  %v5580_v54 = vcombine.low %v2976_v48, %v2979_v23  ;;  %v6621_v28 = vld [vmem:[%s9439_s1 + $0x1f0] sm:$0xff]   ;;  %v6620_v48 = vld [vmem:[%s6733_s25 + $0x3c] sm:$0xff]   ;;  %v3853_v37 = vshrl.u32 %v5677_v63, 16  ;;  %v6623_v38 = vld [vmem:[%s6733_s25 + $0x48] sm:$0xff]   ;;  %v3862_v23 = vshll.u32 %v8207_v61, 16 }
  0xdb   : > { %6358 = vmatprep.mubr.bf16.mxu0 %v6615_v8  ;;  %v9523_v8 = vld [vmem:[#allocation12_spill] sm:$0xff]  ;;  %v3061_v42 = vrot.slane %v3059_v2, 4  ;;  %v8171_v26 = vsel %vm7075_vm5, %v5560_v55, %v3059_v2  ;;  %v3068_v60 = vrot.slane %v3066_v36, 4  ;;  %v8184_v44 = vsel %vm7075_vm5, %v5561_v18, %v3066_v36  ;;  %v5674_v2 = vld [vmem:[%s6733_s25 + $0x18] sm:$0xf]  ;;  %v6626_v55 = vld [vmem:[%s9439_s1 + $0x228] sm:$0xff]  }
  0xdc   : > { %v3062_v0 = vrot.slane %v9523_v8, 5  ;;  %v3832_v24 = vshll.u32 %v5674_v2, 16  ;;  %v6625_v36 = vld [vmem:[%s9439_s1 + $0x1e8] sm:$0xff]   ;;  %v5676_v18 = vld [vmem:[%s6733_s25 + $0x20] sm:$0x1]  ;;  %v3855_v11 = vrot.slane %v3853_v37, 4 }
  0xdd   : > { %6243 = vmatmul.mubr.bf16.gmra.mxu1 %v6612_v45  ;;  %v6616_v45 = vld [vmem:[%s6733_s25 + $0x24] sm:$0xff]   ;;  %v8189_v8 = vsel %vm7075_vm5, %v3068_v60, %v3069_v14  ;;  %v3856_v14 = vshll.u32 %v5677_v63, 16  ;;  %v8227_v63 = vld [vmem:[%s6733_s25 + $0x2c] sm:$0x1]  ;;  %v3877_v37 = vshrl.u32 %v5680_v51, 16 }
  0xde   : > { %6310 = vmatprep.mubr.bf16.mxu1 %v5578_v21  ;;  %v6619_v21 = vld [vmem:[%s6733_s25 + $0x30] sm:$0xff]   ;;  %v8175_v35 = vsel %vm7075_vm5, %v3061_v42, %v3062_v0  ;;  %v8192_v0 = vld [vmem:[%s6733_s25 + $0x1c] sm:$0xf]  ;;  %v3829_v42 = vshrl.u32 %v5674_v2, 16 }
  0xdf   : > { %v4600_v3 = vrot.slane %v8192_v0, 5  ;;  %v3858_v47 = vrot.slane %v3856_v14, 5 }
  0xe0   : > { %v3831_v60 = vrot.slane %v3829_v42, 4  ;;  %v6629_v42 = vld [vmem:[%s9439_s1 + $0x1e0] sm:$0xff]  }
  0xe2   : > { %6359 = vmatmul.mubr.bf16.vlgmr.msra.gmra.mxu0 %v6616_v45  ;;  %v3842_v45 = vshrl.u32 %v8192_v0, 16 }
  0xe3   : > { %6439 = vmatpush3.bf16.msra.mxu0 %v7903_v49  ;;  %6362 = vmatprep.mubr.bf16.mxu0 %v6619_v21  ;;  %v3838_v49 = vshll.u32 %v8192_v0, 16  ;;  %v3866_v21 = vshrl.u32 %v8207_v61, 16 }
  0xe4   : > { %6440 = vmatprep.subr.bf16.mxu0 %v6622_v20 }
  0xe5   : > { %6311 = vmatmul.mubr.bf16.vlgmr.msra.gmra.mxu1 %v5579_v15  ;;  %v5762_v15 = vld [vmem:[%s6733_s25 + $0x18] sm:$0xe]  ;;  %v8222_v2 = vrot.slane %v3838_v49, 5  ;;  %v3848_v49 = vshll.u32 %v5676_v18, 16  ;;  %v3868_v0 = vrot.slane %v3866_v21, 4 }
  0xe6   : > { %6391 = vmatpush3.bf16.msra.mxu1 %v7913_v33  ;;  %6314 = vmatprep.mubr.bf16.mxu1 %v5580_v54  ;;  %v6630_v33 = vld [vmem:[%s9439_s1 + $0x220] sm:$0xff]   ;;  %v3844_v54 = vrot.slane %v3842_v45, 4  ;;  %v8234_v45 = vrot.slane %v3862_v23, 5  ;;  %v6634_v23 = vld [vmem:[%s9439_s1 + $0x218] sm:$0xff]  }
  0xe7   : > { %6392 = vmatprep.subr.bf16.mxu1 %v6621_v28  ;;  %6441 = vmatpush3.bf16.msra.mxu0 %v6622_v20  ;;  %v3834_v20 = vrot.slane %v3832_v24, 5 }
  0xe8   : > { %6442 = vmatprep.subr.bf16.mxu0 %v6626_v55  ;;  %v3845_v21 = vor.u32 %v3844_v54, %v8222_v2  ;;  %v3869_v54 = vor.u32 %v3868_v0, %v8234_v45 }
  0xea   : > { %6363 = vmatmul.mubr.bf16.gmra.mxu0 %v6620_v48  ;;  %6393 = vmatpush3.bf16.msra.mxu1 %v6621_v28  ;;  %v5778_v48 = vrot.slane %v5762_v15, 9  ;;  %v4603_v28 = vrot.slane %v5676_v18, 5  ;;  %v4602_v18 = vrot.slane %v4600_v3, 4  ;;  %v3872_v15 = vshll.u32 %v8227_v63, 16 }
  0xeb   : > { %6366 = vmatprep.mubr.bf16.mxu0 %v6623_v38  ;;  %6394 = vmatprep.subr.bf16.mxu1 %v6625_v36  ;;  %v3880_v38 = vshll.u32 %v5680_v51, 16  ;;  %v4607_v51 = vrot.slane %v8207_v61, 5  ;;  %v3890_v61 = vshrl.u32 %v8237_v43, 16 }
  0xec   : > { %6443 = vmatpush3.bf16.msra.mxu0 %v6626_v55  ;;  %v3835_v55 = vor.u32 %v3834_v20, %v3831_v60  ;;  %v6633_v60 = vld [vmem:[%s9439_s1 + $0x1d8] sm:$0xff]   ;;  %v8260_v20 = vrot.slane %v3848_v49, 5  ;;  %v6638_v49 = vld [vmem:[%s9439_s1 + $0x210] sm:$0xff]  }
  0xed   : > { %v8232_v24 = vpop.f32.mrf.mxu0  ;;  %6315 = vmatmul.mubr.bf16.gmra.mxu1 %v5581_v40  ;;  %6444 = vmatprep.subr.bf16.mxu0 %v6630_v33  ;;  %v8242_v14 = vpop.f32.mrf.mxu1  ;;  %v3859_v40 = vor.u32 %v3858_v47, %v3855_v11  ;;  %v3879_v47 = vrot.slane %v3877_v37, 4  ;;  %v3882_v11 = vrot.slane %v3880_v38, 5  ;;  %v8287_v37 = vld [vmem:[%s6733_s25 + $0x40] sm:$0xf]  ;;  %v4609_v50 = vrot.slane %v4607_v51, 4 }
  0xee   : > { %9528 = vst [vmem:[#allocation2_spill] sm:$0xff] %v8242_v14  ;;  %6318 = vmatprep.mubr.bf16.mxu1 %v5582_v41  ;;  %6395 = vmatpush3.bf16.msra.mxu1 %v6625_v36  ;;  %v8267_v41 = vsel %vm7075_vm5, %v5778_v48, %v4600_v3  ;;  %v5683_v36 = vld [vmem:[%s6733_s25 + $0x3c] sm:$0xf]  ;;  %v8276_v0 = vrot.slane %v3835_v55, 4  ;;  %v8282_v3 = vsel %vm7075_vm5, %v4602_v18, %v4603_v28  ;;  %v8284_v48 = vrot.slane %v3872_v15, 5  ;;  %v6637_v55 = vld [vmem:[%s9439_s1 + $0x1d0] sm:$0xff]  }
  0xef   : > { %v8253_v57 = vpop.f32.mrf.mxu0  ;;  %6396 = vmatprep.subr.bf16.mxu1 %v6629_v42  ;;  %v8271_v52 = vpop.f32.mrf.mxu1  ;;  %v8294_v22 = vrot.slane %v3859_v40, 4  ;;  %v4610_v28 = vrot.slane %v8227_v63, 5  ;;  %v3870_v18 = vrot.slane %v3869_v54, 4  ;;  %v8298_v15 = vld [vmem:[%s6733_s25 + $0x38] sm:$0x1]  ;;  %v3904_v30 = vshll.u32 %v5683_v36, 16 }
  0xf0   : > { %6445 = vmatpush3.bf16.msra.mxu0 %v6630_v33  ;;  %9529 = vst [vmem:[#allocation5_spill] sm:$0xff] %v8271_v52  ;;  %v8278_v33 = vrot.slane %v3845_v21, 4  ;;  %v5779_v21 = vrot.slane %v5763_v6, 9  ;;  %v3883_v1 = vor.u32 %v3882_v11, %v3879_v47  ;;  %v8302_v52 = vrot.slane %v3890_v61, 4  ;;  %v5764_v40 = vld [vmem:[%s6733_s25 + $0x30] sm:$0xe] }
  0xf1   : > { %6446 = vmatprep.subr.bf16.mxu0 %v6634_v23  ;;  %v8289_v38 = vpop.f32.mrf.mxu0  ;;  %v3910_v6 = vshll.u32 %v8287_v37, 16  ;;  %v3914_v63 = vshrl.u32 %v8287_v37, 16  ;;  %v8310_v54 = vpop.f32.mrf.mxu1  ;;  %v9532_v11 = vcombine.low %v8023_v31, %v8014_v19  ;;  %v6628_v61 = vld [vmem:[%s6733_s25 + $0x6c] sm:$0xff]   ;;  %v8343_v19 = vsel %vm7075_vm5, %v4609_v50, %v4610_v28  ;;  %v8361_v28 = vld [vmem:[%s6733_s25 + $0x44] sm:$0x1] }
  0xf2   : > { %6367 = vmatmul.mubr.bf16.gmra.mxu0 %v6624_v7  ;;  %6397 = vmatpush3.bf16.msra.mxu1 %v6629_v42  ;;  %v8300_v7 = vrot.slane %v3886_v39, 5  ;;  %v3901_v42 = vshrl.u32 %v5683_v36, 16  ;;  %9531 = vst [vmem:[#allocation4_spill] sm:$0xff] %v8310_v54  ;;  %v3841_v39 = vsel %vm6764_vm2, %v8276_v0, %v8222_v2  ;;  %v3851_v47 = vsel %vm6764_vm2, %v8278_v33, %v8260_v20  ;;  %v6631_v36 = vld [vmem:[%s6733_s25 + $0x78] sm:$0xff]   ;;  %v8354_v33 = vld [vmem:[%s6733_s25 + $0x4c] sm:$0xf] }
  0xf3   : > { %6370 = vmatprep.mubr.bf16.mxu0 %v6627_v62  ;;  %6398 = vmatprep.subr.bf16.mxu1 %v6633_v60  ;;  %v9530_v62 = vcombine.low %v7992_v10, %v7996_v59  ;;  %v4614_v59 = vrot.slane %v8237_v43, 5  ;;  %v3865_v2 = vsel %vm6764_vm2, %v8294_v22, %v8234_v45  ;;  %v8339_v20 = vsel %vm7075_vm5, %v5779_v21, %v4607_v51  ;;  %v5686_v43 = vld [vmem:[%s6733_s25 + $0x48] sm:$0xf]  ;;  %v8365_v54 = vpop.f32.mrf.mxu1  ;;  %v5765_v14 = vld [vmem:[%s6733_s25 + $0x3c] sm:$0xe] }
  0xf4   : > { %6447 = vmatpush3.bf16.msra.mxu0 %v6634_v23  ;;  %v6642_v23 = vld [vmem:[%s9439_s1 + $0x208] sm:$0xff]   ;;  %v3896_v31 = vshll.u32 %v8298_v15, 16  ;;  %v3875_v22 = vsel %vm6764_vm2, %v3870_v18, %v8284_v48  ;;  %v5780_v45 = vrot.slane %v5764_v40, 9  ;;  %v3903_v0 = vrot.slane %v3901_v42, 4  ;;  %9534 = vst [vmem:[#allocation6_spill] sm:$0xff] %v8365_v54  ;;  %v6645_v42 = vld [vmem:[%s9439_s1 + $0x1c0] sm:$0xff]  }
  0xf5   : > { %6319 = vmatmul.mubr.bf16.gmra.mxu1 %v9530_v62  ;;  %6448 = vmatprep.subr.bf16.mxu0 %v6638_v49  ;;  %v8331_v62 = vpop.f32.mrf.mxu0  ;;  %v3906_v51 = vrot.slane %v3904_v30, 5  ;;  %v8356_v50 = vrot.slane %v3883_v1, 4  ;;  %v3893_v21 = vor.u32 %v8302_v52, %v8300_v7  ;;  %v3916_v10 = vrot.slane %v3914_v63, 4  ;;  %v6646_v30 = vld [vmem:[%s9439_s1 + $0x200] sm:$0xff]  }
  0xf6   : > { %6322 = vmatprep.mubr.bf16.mxu1 %v9532_v11  ;;  %6399 = vmatpush3.bf16.msra.mxu1 %v6633_v60  ;;  %9533 = vst [vmem:[#allocation3_spill] sm:$0xff] %v8331_v62  ;;  %v6641_v60 = vld [vmem:[%s9439_s1 + $0x1c8] sm:$0xff]   ;;  %v8363_v11 = vrot.slane %v3910_v6, 5  ;;  %v4616_v48 = vrot.slane %v4614_v59, 4  ;;  %v3925_v1 = vshrl.u32 %v5686_v43, 16  ;;  %v3928_v18 = vshll.u32 %v5686_v43, 16 }
  0xf7   : > { %6400 = vmatprep.subr.bf16.mxu1 %v6637_v55  ;;  %v8376_v40 = vcombine.low %v3841_v39, %v3851_v47  ;;  %v3938_v63 = vshrl.u32 %v8354_v33, 16  ;;  %v8384_v43 = vrot.slane %v3896_v31, 5  ;;  %v3920_v54 = vshll.u32 %v8361_v28, 16  ;;  %v5689_v39 = vld [vmem:[%s6733_s25 + $0x54] sm:$0xf]  ;;  %v6632_v6 = vld [vmem:[%s6733_s25 + $0x84] sm:$0xff]  }
  0xf8   : > { %6449 = vmatpush3.bf16.msra.mxu0 %v6638_v49  ;;  %v4617_v49 = vrot.slane %v8298_v15, 5  ;;  %v8371_v52 = vpop.f32.mrf.mxu0  ;;  %v3934_v15 = vshll.u32 %v8354_v33, 16  ;;  %v4621_v31 = vrot.slane %v8287_v37, 5  ;;  %v9538_v37 = vcombine.low %v8047_v12, %v8051_v46  ;;  %v6635_v47 = vld [vmem:[%s6733_s25 + $0x90] sm:$0xff]  }
  0xf9   : > { %6450 = vmatprep.subr.bf16.mxu0 %v6642_v23  ;;  %9535 = vst [vmem:[#allocation7_spill] sm:$0xff] %v8371_v52 }
  0xfa   : > { %6371 = vmatmul.mubr.bf16.gmra.mxu0 %v6628_v61  ;;  %6401 = vmatpush3.bf16.msra.mxu1 %v6637_v55  ;;  %v8382_v61 = vcombine.low %v3865_v2, %v3875_v22  ;;  %v3907_v55 = vor.u32 %v3906_v51, %v3903_v0  ;;  %v3917_v2 = vor.u32 %v3916_v10, %v8363_v11  ;;  %v8400_v22 = vld [vmem:[%s6733_s25 + $0x58] sm:$0xf]  ;;  %v8407_v51 = vrot.slane %v3893_v21, 4 }
  0xfb   : > { %6374 = vmatprep.mubr.bf16.mxu0 %v6631_v36  ;;  %6402 = vmatprep.subr.bf16.mxu1 %v6641_v60  ;;  %v8395_v36 = vsel %vm7075_vm5, %v5780_v45, %v4614_v59  ;;  %v9536_v0 = vcombine.low %v8030_v16, %v8035_v53  ;;  %v8411_v59 = vsel %vm7075_vm5, %v4616_v48, %v4617_v49  ;;  %v3927_v45 = vrot.slane %v3925_v1, 4  ;;  %v8418_v16 = vpop.f32.mrf.mxu0  ;;  %v5688_v1 = vld [vmem:[%s6733_s25 + $0x50] sm:$0x1] }
  0xfc   : > { %6451 = vmatpush3.bf16.msra.mxu0 %v6642_v23  ;;  %v8405_v23 = vpop.f32.mrf.mxu1  ;;  %v3930_v10 = vrot.slane %v3928_v18, 5  ;;  %9539 = vst [vmem:[#allocation9_spill] sm:$0xff] %v8418_v16  ;;  %v5781_v53 = vrot.slane %v5765_v14, 9  ;;  %v3940_v21 = vrot.slane %v3938_v63, 4  ;;  %v3908_v48 = vrot.slane %v3907_v55, 4 }
  0xfd   : > { %6323 = vmatmul.mubr.bf16.gmra.mxu1 %v9536_v0  ;;  %9537 = vst [vmem:[#allocation8_spill] sm:$0xff] %v8405_v23  ;;  %6452 = vmatprep.subr.bf16.mxu0 %v6646_v30  ;;  %v8420_v0 = vrot.slane %v3934_v15, 5  ;;  %v3949_v23 = vshrl.u32 %v5689_v39, 16  ;;  %v3922_v49 = vrot.slane %v3920_v54, 5  ;;  %v3952_v18 = vshll.u32 %v5689_v39, 16  ;;  %v8436_v39 = vpop.f32.mrf.mxu0 }
  0xfe   : > { %6326 = vmatprep.mubr.bf16.mxu1 %v9538_v37  ;;  %6403 = vmatpush3.bf16.msra.mxu1 %v6641_v60  ;;  %v3958_v52 = vshll.u32 %v8400_v22, 16  ;;  %v3918_v12 = vrot.slane %v3917_v2, 4  ;;  %v4623_v46 = vrot.slane %v4621_v31, 4  ;;  %v4624_v37 = vrot.slane %v8361_v28, 5  ;;  %v8426_v60 = vpop.f32.mrf.mxu1  ;;  %v5692_v55 = vld [vmem:[%s6733_s25 + $0x60] sm:$0xf] }
  0xff   : > { %6404 = vmatprep.subr.bf16.mxu1 %v6645_v42  ;;  %v3962_v14 = vshrl.u32 %v8400_v22, 16  ;;  %9540 = vst [vmem:[#allocation10_spill] sm:$0xff] %v8426_v60  ;;  %v3899_v15 = vsel %vm6764_vm2, %v8407_v51, %v8384_v43  ;;  %v3931_v63 = vor.u32 %v3930_v10, %v3927_v45  ;;  %v3941_v28 = vor.u32 %v3940_v21, %v8420_v0  ;;  %v5766_v60 = vld [vmem:[%s6733_s25 + $0x48] sm:$0xe] }
 0x100   : > { %6453 = vmatpush3.bf16.msra.mxu0 %v6646_v30  ;;  %v4628_v30 = vrot.slane %v8354_v33, 5  ;;  %v3944_v2 = vshll.u32 %v5688_v1, 16  ;;  %v3951_v16 = vrot.slane %v3949_v23, 4  ;;  %v3954_v62 = vrot.slane %v3952_v18, 5  ;;  %v8461_v10 = vpop.f32.mrf.mxu1 }
 0x101   : > { %v3913_v43 = vsel %vm6764_vm2, %v3908_v48, %v8363_v11  ;;  %v8445_v33 = vsel %vm7075_vm5, %v5781_v53, %v4621_v31  ;;  %v3923_v51 = vsel %vm6764_vm2, %v3918_v12, %v3922_v49  ;;  %v8453_v23 = vsel %vm7075_vm5, %v4623_v46, %v4624_v37  ;;  %9542 = vst [vmem:[#allocation11_spill] sm:$0xff] %v8461_v10  ;;  %v8464_v49 = vld [vmem:[%s6733_s25 + $0x64] sm:$0xf]  ;;  %v6636_v12 = vld [vmem:[%s6733_s25 + $0x9c] sm:$0xff]   ;;  %v8470_v46 = vpop.f32.mrf.mxu0 }
 0x102   : > { %6375 = vmatmul.mubr.bf16.gmra.mxu0 %v6632_v6  ;;  %6405 = vmatpush3.bf16.msra.mxu1 %v6645_v42  ;;  %v8447_v6 = vrot.slane %v3958_v52, 5  ;;  %v3964_v42 = vrot.slane %v3962_v14, 4  ;;  %v3973_v45 = vshrl.u32 %v5692_v55, 16  ;;  %v3976_v11 = vshll.u32 %v5692_v55, 16  ;;  %v6639_v55 = vld [vmem:[%s6733_s25 + $0xa8] sm:$0xff]  }
 0x103   : > { %6378 = vmatprep.mubr.bf16.mxu0 %v6635_v47  ;;  %v8456_v47 = vld [vmem:[%s6733_s25 + $0x5c] sm:$0x1]  ;;  %v9541_v31 = vcombine.low %v8063_v34, %v8072_v17  ;;  %v3932_v52 = vrot.slane %v3931_v63, 4  ;;  %v5782_v53 = vrot.slane %v5766_v60, 9  ;;  %v4630_v21 = vrot.slane %v4628_v30, 4 }
 0x104   : > { %v4631_v48 = vrot.slane %v5688_v1, 5  ;;  %v9543_v18 = vcombine.low %v8089_v32, %v8093_v58  ;;  %v3942_v37 = vrot.slane %v3941_v28, 4  ;;  %v3946_v14 = vrot.slane %v3944_v2, 5  ;;  %v5767_v63 = vld [vmem:[%s6733_s25 + $0x54] sm:$0xe]  ;;  %v8488_v28 = vpop.f32.mrf.mxu1 }
 0x105   : > { %6327 = vmatmul.mubr.bf16.gmra.mxu1 %v9541_v31  ;;  %v3955_v34 = vor.u32 %v3954_v62, %v3951_v16  ;;  %v4635_v17 = vrot.slane %v8400_v22, 5  ;;  %v3965_v60 = vor.u32 %v3964_v42, %v8447_v6  ;;  %v3968_v1 = vshll.u32 %v8456_v47, 16  ;;  %9545 = vst [vmem:[#allocation12_spill] sm:$0xff] %v8488_v28  ;;  %v5768_v62 = vld [vmem:[%s6733_s25 + $0x60] sm:$0xe] }
 0x106   : > { %6330 = vmatprep.mubr.bf16.mxu1 %v9543_v18  ;;  %v3975_v31 = vrot.slane %v3973_v45, 4  ;;  %v3978_v54 = vrot.slane %v3976_v11, 5  ;;  %v9544_v32 = vsel %vm6764_vm2, %v8356_v50, %v8300_v7  ;;  %v3982_v22 = vshll.u32 %v8464_v49, 16 }
 0x107   : > { %v8482_v58 = vcombine.low %v9544_v32, %v3899_v15  ;;  %v3986_v16 = vshrl.u32 %v8464_v49, 16  ;;  %v8490_v2 = vcombine.low %v3913_v43, %v3923_v51  ;;  %v3937_v42 = vsel %vm6764_vm2, %v3932_v52, %v8420_v0  ;;  %v5695_v15 = vld [vmem:[%s6733_s25 + $0x6c] sm:$0xf]  ;;  %v8508_v32 = vld [vmem:[%s6733_s25 + $0x70] sm:$0xf] }
 0x108   : > { %v8497_v7 = vsel %vm7075_vm5, %v5782_v53, %v4628_v30  ;;  %v8501_v50 = vsel %vm7075_vm5, %v4630_v21, %v4631_v48  ;;  %v8504_v45 = vpop.f32.mrf.mxu0  ;;  %v3956_v43 = vrot.slane %v3955_v34, 4  ;;  %v5783_v51 = vrot.slane %v5767_v63, 9  ;;  %v5694_v53 = vld [vmem:[%s6733_s25 + $0x68] sm:$0x1] }
 0x109   : > { %9546 = vst [vmem:[#allocation13_spill] sm:$0xff] %v8504_v45  ;;  %v4637_v11 = vrot.slane %v4635_v17, 4  ;;  %v4638_v18 = vrot.slane %v8456_v47, 5  ;;  %v3947_v0 = vsel %vm6764_vm2, %v3942_v37, %v3946_v14  ;;  %v3966_v30 = vrot.slane %v3965_v60, 4  ;;  %v5770_v45 = vld [vmem:[%s6733_s25 + $0x78] sm:$0xe] }
 0x10a   : > { %6379 = vmatmul.mubr.bf16.gmra.mxu0 %v6636_v12  ;;  %v3970_v52 = vrot.slane %v3968_v1, 5  ;;  %v3979_v21 = vor.u32 %v3978_v54, %v3975_v31  ;;  %v8513_v48 = vrot.slane %v3982_v22, 5  ;;  %v3988_v12 = vrot.slane %v3986_v16, 4  ;;  %v6640_v31 = vld [vmem:[%s6733_s25 + $0xb4] sm:$0xff]  }
 0x10b   : > { %6382 = vmatprep.mubr.bf16.mxu0 %v6639_v55  ;;  %v3997_v34 = vshrl.u32 %v5695_v15, 16  ;;  %v4000_v63 = vshll.u32 %v5695_v15, 16  ;;  %v9547_v47 = vcombine.low %v8109_v5, %v8114_v25  ;;  %v4642_v14 = vrot.slane %v8464_v49, 5  ;;  %v8530_v5 = vpop.f32.mrf.mxu0 }
 0x10c   : > { %v4006_v54 = vshll.u32 %v8508_v32, 16  ;;  %v4010_v60 = vshrl.u32 %v8508_v32, 16  ;;  %v9549_v1 = vcombine.low %v8127_v9, %v8121_v29  ;;  %9550 = vst [vmem:[#allocation15_spill] sm:$0xff] %v8530_v5  ;;  %v8532_v25 = vcombine.low %v3937_v42, %v3947_v0  ;;  %v5698_v29 = vld [vmem:[%s6733_s25 + $0x78] sm:$0xf]  ;;  %v6643_v9 = vld [vmem:[%s6733_s25 + $0xc0] sm:$0xff]  }
 0x10d   : > { %6331 = vmatmul.mubr.bf16.gmra.mxu1 %v9547_v47  ;;  %v8519_v55 = vpop.f32.mrf.mxu1  ;;  %v3961_v22 = vsel %vm6764_vm2, %v3956_v43, %v8447_v6  ;;  %v8539_v49 = vsel %vm7075_vm5, %v5783_v51, %v4635_v17  ;;  %v8543_v16 = vsel %vm7075_vm5, %v4637_v11, %v4638_v18  ;;  %v3971_v15 = vsel %vm6764_vm2, %v3966_v30, %v3970_v52  ;;  %v8556_v43 = vld [vmem:[%s6733_s25 + $0x74] sm:$0x1]  ;;  %v8613_v5 = vld [vmem:[%s6733_s25 + $0x8c] sm:$0x1] }
 0x10e   : > { %9548 = vst [vmem:[#allocation14_spill] sm:$0xff] %v8519_v55  ;;  %6334 = vmatprep.mubr.bf16.mxu1 %v9549_v1  ;;  %v8549_v47 = vrot.slane %v3979_v21, 4  ;;  %v3992_v42 = vshll.u32 %v5694_v53, 16  ;;  %v5784_v0 = vrot.slane %v5768_v62, 9  ;;  %v8552_v1 = vld [vmem:[%s6733_s25 + $0x7c] sm:$0xf]  ;;  %v3989_v6 = vor.u32 %v3988_v12, %v8513_v48  ;;  %v8562_v21 = vpop.f32.mrf.mxu0 }
 0x10f   : > { %v4645_v17 = vrot.slane %v5694_v53, 5  ;;  %v3999_v51 = vrot.slane %v3997_v34, 4  ;;  %v4002_v11 = vrot.slane %v4000_v63, 5  ;;  %v8558_v18 = vpop.f32.mrf.mxu1  ;;  %v4644_v37 = vrot.slane %v4642_v14, 4  ;;  %9552 = vst [vmem:[#allocation17_spill] sm:$0xff] %v8562_v21 }
 0x110   : > { %9551 = vst [vmem:[#allocation16_spill] sm:$0xff] %v8558_v18  ;;  %v8560_v55 = vrot.slane %v4006_v54, 5  ;;  %v4012_v30 = vrot.slane %v4010_v60, 4  ;;  %v4021_v52 = vshrl.u32 %v5698_v29, 16  ;;  %v5769_v53 = vld [vmem:[%s6733_s25 + $0x6c] sm:$0xe]  ;;  %v8569_v18 = vcombine.low %v3961_v22, %v3971_v15 }
 0x111   : > { %v4024_v12 = vshll.u32 %v5698_v29, 16  ;;  %v4030_v34 = vshll.u32 %v8552_v1, 16  ;;  %v4034_v63 = vshrl.u32 %v8552_v1, 16  ;;  %v8571_v54 = vrot.slane %v3992_v42, 5  ;;  %v5701_v62 = vld [vmem:[%s6733_s25 + $0x84] sm:$0xf]  ;;  %v8592_v42 = vpop.f32.mrf.mxu1 }
 0x112   : > { %6383 = vmatmul.mubr.bf16.gmra.mxu0 %v6640_v31  ;;  %9553 = vst [vmem:[#allocation18_spill] sm:$0xff] %v8569_v18  ;;  %v8575_v60 = vsel %vm7075_vm5, %v5784_v0, %v4642_v14  ;;  %v4016_v31 = vshll.u32 %v8556_v43, 16  ;;  %v8583_v28 = vrot.slane %v3989_v6, 4  ;;  %v4649_v22 = vrot.slane %v8508_v32, 5  ;;  %v8587_v15 = vld [vmem:[%s6733_s25 + $0x88] sm:$0xf] }
 0x113   : > { %6386 = vmatprep.mubr.bf16.mxu0 %v6643_v9  ;;  %v4003_v9 = vor.u32 %v4002_v11, %v3999_v51  ;;  %v9554_v14 = vcombine.low %v8136_v4, %v8140_v13  ;;  %9555 = vst [vmem:[#allocation19_spill] sm:$0xff] %v8592_v42  ;;  %v6644_v0 = vld [vmem:[%s6733_s25 + $0xcc] sm:$0xff]   ;;  %v8597_v10 = vsel %vm7075_vm5, %v4644_v37, %v4645_v17  ;;  %v5785_v6 = vrot.slane %v5769_v53, 9  ;;  %v8600_v11 = vpop.f32.mrf.mxu0  ;;  %v8606_v4 = vld [vmem:[%s6733_s25 + $0x80] sm:$0x1] }
 0x114   : > { %v4013_v29 = vor.u32 %v4012_v30, %v8560_v55  ;;  %v4023_v51 = vrot.slane %v4021_v52, 4  ;;  %9556 = vst [vmem:[#allocation20_spill] sm:$0xff] %v8600_v11  ;;  %v9557_v32 = vcombine.low %v8171_v26, %v8175_v35  ;;  %v4026_v13 = vrot.slane %v4024_v12, 5 }
 0x115   : > { %6335 = vmatmul.mubr.bf16.gmra.mxu1 %v9554_v14  ;;  %v8608_v14 = vrot.slane %v4030_v34, 5  ;;  %v4036_v42 = vrot.slane %v4034_v63, 4  ;;  %v4045_v21 = vshrl.u32 %v5701_v62, 16  ;;  %v4018_v37 = vrot.slane %v4016_v31, 5 }
 0x116   : > { %6338 = vmatprep.mubr.bf16.mxu1 %v9557_v32  ;;  %v4652_v17 = vrot.slane %v8556_v43, 5  ;;  %v4048_v30 = vshll.u32 %v5701_v62, 16  ;;  %v4054_v52 = vshll.u32 %v8587_v15, 16  ;;  %v4004_v53 = vrot.slane %v4003_v9, 4  ;;  %v8616_v32 = vpop.f32.mrf.mxu1 }
 0x117   : > { %v4651_v11 = vrot.slane %v4649_v22, 4  ;;  %v4047_v26 = vrot.slane %v4045_v21, 4  ;;  %v4058_v35 = vshrl.u32 %v8587_v15, 16  ;;  %v4014_v12 = vrot.slane %v4013_v29, 4 }
 0x118   : > { %v4040_v34 = vshll.u32 %v8606_v4, 16  ;;  %v4050_v63 = vrot.slane %v4048_v30, 5  ;;  %v8619_v31 = vrot.slane %v4054_v52, 5  ;;  %v4027_v62 = vor.u32 %v4026_v13, %v4023_v51  ;;  %v5771_v52 = vld [vmem:[%s6733_s25 + $0x84] sm:$0xe] }
 0x119   : > { %v8621_v43 = vpop.f32.mrf.mxu0  ;;  %v4037_v9 = vor.u32 %v4036_v42, %v8608_v14  ;;  %v4656_v21 = vrot.slane %v8552_v1, 5  ;;  %v4060_v18 = vrot.slane %v4058_v35, 4  ;;  %v9558_v29 = vcombine.low %v8267_v41, %v8282_v3 }
 0x11a   : > { %6387 = vmatmul.mubr.bf16.gmra.mxu0 %v6644_v0  ;;  %v3995_v30 = vsel %vm6764_vm2, %v8583_v28, %v8571_v54  ;;  %v8637_v51 = vsel %vm7075_vm5, %v5785_v6, %v4649_v22  ;;  %v4064_v42 = vshll.u32 %v8613_v5, 16  ;;  %v4009_v41 = vsel %vm6764_vm2, %v4004_v53, %v8560_v55  ;;  %v5704_v54 = vld [vmem:[%s6733_s25 + $0x90] sm:$0xf] }
 0x11b   : > { %6454 = vmatprep.mubr.bf16.mxu0 %v9558_v29  ;;  %v8640_v1 = vpop.f32.mrf.mxu0  ;;  %v4051_v3 = vor.u32 %v4050_v63, %v4047_v26  ;;  %v4061_v13 = vor.u32 %v4060_v18, %v8619_v31  ;;  %v4663_v28 = vrot.slane %v8587_v15, 5  ;;  %v9560_v22 = vcombine.low %v8184_v44, %v8189_v8 }
 0x11c   : > { %v4019_v6 = vsel %vm6764_vm2, %v4014_v12, %v4018_v37  ;;  %v8658_v55 = vsel %vm7075_vm5, %v4651_v11, %v4652_v17  ;;  %v4042_v53 = vrot.slane %v4040_v34, 5  ;;  %v5786_v18 = vrot.slane %v5770_v45, 9  ;;  %v8667_v12 = vld [vmem:[%s6733_s25 + $0x94] sm:$0xf] }
 0x11d   : > { %v8649_v35 = vpop.f32.mrf.mxu1  ;;  %6339 = vmatmul.mubr.bf16.gmra.mxu1 %v9560_v22  ;;  %v8660_v26 = vpop.f32.mrf.mxu0  ;;  %v4028_v15 = vrot.slane %v4027_v62, 4  ;;  %v4038_v63 = vrot.slane %v4037_v9, 4  ;;  %v4658_v29 = vrot.slane %v4656_v21, 4  ;;  %v4659_v0 = vrot.slane %v8606_v4, 5 }
 0x11e   : > { %9559 = vst [vmem:[#allocation21_spill] sm:$0xff] %v8649_v35  ;;  %6406 = vmatprep.mubr.bf16.mxu1 %v8376_v40  ;;  %v4066_v8 = vrot.slane %v4064_v42, 5  ;;  %v5787_v37 = vrot.slane %v5771_v52, 9  ;;  %v4069_v11 = vshrl.u32 %v5704_v54, 16  ;;  %v4072_v17 = vshll.u32 %v5704_v54, 16 }
 0x11f   : > { %v8664_v44 = vpop.f32.mrf.mxu1  ;;  %v8669_v34 = vpop.f32.mrf.mxu0  ;;  %v4052_v45 = vrot.slane %v4051_v3, 4  ;;  %v4062_v22 = vrot.slane %v4061_v13, 4  ;;  %v4665_v40 = vrot.slane %v4663_v28, 4  ;;  %v4666_v62 = vrot.slane %v8613_v5, 5  ;;  %v8690_v54 = vld [vmem:[%s6733_s25 + $0x98] sm:$0x1] }
 0x120   : > { %9561 = vst [vmem:[#allocation22_spill] sm:$0xff] %v8664_v44  ;;  %v9563_v4 = vsel %vm6764_vm2, %v8549_v47, %v8513_v48  ;;  %v8681_v52 = vcombine.low %v4009_v41, %v4019_v6  ;;  %v8687_v13 = vsel %vm7075_vm5, %v5786_v18, %v4656_v21  ;;  %v4033_v48 = vsel %vm6764_vm2, %v4028_v15, %v8608_v14  ;;  %v5707_v41 = vld [vmem:[%s6733_s25 + $0x9c] sm:$0xf]  ;;  %v8707_v6 = vld [vmem:[%s6733_s25 + $0xa0] sm:$0xf] }
 0x121   : > { %v8672_v9 = vpop.f32.mrf.mxu1  ;;  %v8679_v42 = vcombine.low %v9563_v4, %v3995_v30  ;;  %v6168_v5 = vpop.f32.mrf.mxu0  ;;  %v4043_v47 = vsel %vm6764_vm2, %v4038_v63, %v4042_v53  ;;  %v8702_v30 = vsel %vm7075_vm5, %v4658_v29, %v4659_v0  ;;  %v4078_v21 = vshll.u32 %v8667_v12, 16  ;;  %v8794_v35 = vld [vmem:[%s6733_s25 + $0xb0] sm:$0x1] }
 0x122   : > { %9562 = vst [vmem:[#allocation23_spill] sm:$0xff] %v8672_v9  ;;  %v9564_v9 = vcombine.low %v8339_v20, %v8343_v19  ;;  %v9566_v20 = vcombine.low %v8395_v36, %v8411_v59  ;;  %v8716_v19 = vsel %vm7075_vm5, %v5787_v37, %v4663_v28  ;;  %v4071_v14 = vrot.slane %v4069_v11, 4  ;;  %v8731_v37 = vld [vmem:[%s6733_s25 + $0x90] sm:$0xe] }
 0x123   : > { %v8709_v18 = vpop.f32.mrf.mxu1  ;;  %v4074_v53 = vrot.slane %v4072_v17, 5  ;;  %v4082_v0 = vshrl.u32 %v8667_v12, 16  ;;  %v1595_v15 = vpop.f32.mrf.mxu0  ;;  %v4057_v63 = vsel %vm6764_vm2, %v4052_v45, %v8619_v31  ;;  %v4067_v29 = vsel %vm6764_vm2, %v4062_v22, %v4066_v8 }
 0x124   : > { %6455 = vmatmul.mubr.bf16.vlgmr.msra.gmra.mxu0 %v9564_v9  ;;  %9565 = vst [vmem:[#allocation24_spill] sm:$0xff] %v8709_v18  ;;  %v8726_v36 = vsel %vm7075_vm5, %v4665_v40, %v4666_v62  ;;  %v4088_v59 = vshll.u32 %v8690_v54, 16  ;;  %v4093_v11 = vshrl.u32 %v5707_v41, 16  ;;  %v4096_v17 = vshll.u32 %v5707_v41, 16 }
 0x125   : > { %6458 = vmatprep.mubr.bf16.mxu0 %v9566_v20  ;;  %v6120_v28 = vpop.f32.mrf.mxu1  ;;  %6407 = vmatmul.mubr.bf16.vlgmr.msra.gmra.mxu1 %v8382_v61  ;;  %v4102_v9 = vshll.u32 %v8707_v6, 16  ;;  %v4106_v31 = vshrl.u32 %v8707_v6, 16  ;;  %v6169_v45 = vpop.f32.mrf.mxu0  ;;  %v8737_v22 = vcombine.low %v4033_v48, %v4043_v47  ;;  %v8741_v40 = vrot.slane %v4078_v21, 5  ;;  %v8755_v61 = vld [vmem:[%s6733_s25 + $0xa4] sm:$0x1] }
 0x126   : > { %v1151_v8 = vadd.f32 %v6120_v28, %v8232_v24  ;;  %6410 = vmatprep.mubr.bf16.mxu1 %v8482_v58  ;;  %v8743_v4 = vcombine.low %v4057_v63, %v4067_v29  ;;  %v4075_v20 = vor.u32 %v4074_v53, %v4071_v14  ;;  %v4084_v24 = vrot.slane %v4082_v0, 4  ;;  %v5710_v28 = vld [vmem:[%s6733_s25 + $0xa8] sm:$0xf]  ;;  %v8760_v14 = vld [vmem:[%s6733_s25 + $0xac] sm:$0xf] }
 0x127   : > { %v1142_v62 = vpop.f32.mrf.mxu1  ;;  %v1598_v48 = vpop.f32.mrf.mxu0  ;;  %v8751_v47 = vrot.slane %v4088_v59, 5  ;;  %v5788_v21 = vrot.slane %v8731_v37, 9  ;;  %v4095_v29 = vrot.slane %v4093_v11, 4  ;;  %v4098_v18 = vrot.slane %v4096_v17, 5 }
 0x128   : > { %v8748_v3 = vadd.f32 %v6168_v5, %v1151_v8  ;;  %v1143_v58 = vadd.f32 %v1142_v62, %v8253_v57  ;;  %v8757_v44 = vrot.slane %v4102_v9, 5  ;;  %v4108_v41 = vrot.slane %v4106_v31, 4  ;;  %v9572_v62 = vld [vmem:[#allocation3_spill] sm:$0xff] }
 0x129   : > { %v6121_v63 = vpop.f32.mrf.mxu1  ;;  %v6172_v5 = vpop.f32.mrf.mxu0  ;;  %v9569_v0 = vcombine.low %v8445_v33, %v8453_v23  ;;  %v4117_v59 = vshrl.u32 %v5710_v28, 16  ;;  %v4120_v37 = vshll.u32 %v5710_v28, 16  ;;  %v9570_v11 = vcombine.low %v8497_v7, %v8501_v50 }
 0x12a   : > { %9567 = vst [vmem:[#allocation25_spill] sm:$0xff] %v8748_v3  ;;  %v8762_v53 = vadd.f32 %v1595_v15, %v1143_v58  ;;  %v1154_v57 = vadd.f32 %v6121_v63, %v8289_v38  ;;  %v8771_v17 = vrot.slane %v4075_v20, 4  ;;  %v4085_v15 = vor.u32 %v4084_v24, %v8741_v40  ;;  %v5773_v58 = vld [vmem:[%s6733_s25 + $0x9c] sm:$0xe] }
 0x12b   : > { %v1145_v8 = vpop.f32.mrf.mxu1  ;;  %v4670_v9 = vrot.slane %v8667_v12, 5  ;;  %v4112_v38 = vshll.u32 %v8755_v61, 16  ;;  %v1611_v23 = vpop.f32.mrf.mxu0  ;;  %v4673_v28 = vrot.slane %v8690_v54, 5  ;;  %v4126_v63 = vshll.u32 %v8760_v14, 16 }
 0x12c   : > { %9568 = vst [vmem:[#allocation26_spill] sm:$0xff] %v8762_v53  ;;  %6459 = vmatmul.mubr.bf16.gmra.mxu0 %v9569_v0  ;;  %v8776_v31 = vadd.f32 %v6169_v45, %v1154_v57  ;;  %v1146_v33 = vadd.f32 %v1145_v8, %v9572_v62  ;;  %v4099_v50 = vor.u32 %v4098_v18, %v4095_v29  ;;  %v4677_v12 = vrot.slane %v8707_v6, 5  ;;  %v9573_v57 = vld [vmem:[#allocation7_spill] sm:$0xff]  ;;  %v9574_v6 = vld [vmem:[#allocation9_spill] sm:$0xff] }
 0x12d   : > { %6462 = vmatprep.mubr.bf16.mxu0 %v9570_v11  ;;  %v6124_v7 = vpop.f32.mrf.mxu1  ;;  %6411 = vmatmul.mubr.bf16.gmra.mxu1 %v8490_v2  ;;  %v4109_v20 = vor.u32 %v4108_v41, %v8757_v44  ;;  %v4130_v45 = vshrl.u32 %v8760_v14, 16  ;;  %v6173_v8 = vpop.f32.mrf.mxu0  ;;  %v4119_v54 = vrot.slane %v4117_v59, 4  ;;  %v4122_v11 = vrot.slane %v4120_v37, 5 }
 0x12e   : > { %9571 = vst [vmem:[#allocation27_spill] sm:$0xff] %v8776_v31  ;;  %v8786_v24 = vadd.f32 %v1598_v48, %v1146_v33  ;;  %v1167_v0 = vadd.f32 %v6124_v7, %v9573_v57  ;;  %6414 = vmatprep.mubr.bf16.mxu1 %v8532_v25  ;;  %v4086_v31 = vrot.slane %v4085_v15, 4  ;;  %v4672_v2 = vrot.slane %v4670_v9, 4 }
 0x12f   : > { %v1158_v62 = vpop.f32.mrf.mxu1  ;;  %v4114_v18 = vrot.slane %v4112_v38, 5  ;;  %v5789_v29 = vrot.slane %v5773_v58, 9  ;;  %v1614_v3 = vpop.f32.mrf.mxu0  ;;  %v8796_v48 = vrot.slane %v4126_v63, 5  ;;  %v4132_v33 = vrot.slane %v4130_v45, 4 }
 0x130   : > { %v8790_v41 = vadd.f32 %v6172_v5, %v1167_v0  ;;  %v1159_v53 = vadd.f32 %v1158_v62, %v9574_v6  ;;  %v4100_v57 = vrot.slane %v4099_v50, 4  ;;  %v4110_v25 = vrot.slane %v4109_v20, 4 }
 0x131   : > { %v6125_v7 = vpop.f32.mrf.mxu1  ;;  %v4679_v59 = vrot.slane %v4677_v12, 4  ;;  %v4680_v37 = vrot.slane %v8755_v61, 5  ;;  %v6176_v38 = vpop.f32.mrf.mxu0  ;;  %v9575_v58 = vcombine.low %v8539_v49, %v8543_v16  ;;  %v8807_v63 = vsel %vm7075_vm5, %v5788_v21, %v4670_v9  ;;  %v5774_v21 = vld [vmem:[%s6733_s25 + $0xa8] sm:$0xe] }
 0x132   : > { %v8799_v15 = vadd.f32 %v1611_v23, %v1159_v53  ;;  %v1170_v5 = vadd.f32 %v6125_v7, %v8436_v39  ;;  %v4123_v50 = vor.u32 %v4122_v11, %v4119_v54  ;;  %v9576_v20 = vcombine.low %v8575_v60, %v8597_v10 }
 0x133   : > { %v1161_v45 = vpop.f32.mrf.mxu1  ;;  %v4081_v39 = vsel %vm6764_vm2, %v8771_v17, %v8741_v40  ;;  %v4091_v49 = vsel %vm6764_vm2, %v4086_v31, %v8751_v47  ;;  %v8821_v16 = vsel %vm7075_vm5, %v4672_v2, %v4673_v28  ;;  %v4136_v61 = vshll.u32 %v8794_v35, 16  ;;  %v1627_v60 = vpop.f32.mrf.mxu0  ;;  %v5713_v17 = vld [vmem:[%s6733_s25 + $0xb4] sm:$0xf]  ;;  %v9577_v47 = vld [vmem:[#allocation18_spill] sm:$0xff]  ;;  %v8850_v2 = vld [vmem:[%s6733_s25 + $0xb8] sm:$0xf] }
 0x134   : > { %6463 = vmatmul.mubr.bf16.gmra.mxu0 %v9575_v58  ;;  %v8825_v53 = vadd.f32 %v6173_v8, %v1170_v5  ;;  %v1162_v10 = vadd.f32 %v1161_v45, %v8470_v46  ;;  %v4133_v9 = vor.u32 %v4132_v33, %v8796_v48  ;;  %v4684_v40 = vrot.slane %v8760_v14, 5  ;;  %v9578_v8 = vld [vmem:[#allocation13_spill] sm:$0xff] }
 0x135   : > { %6466 = vmatprep.mubr.bf16.mxu0 %v9576_v20  ;;  %v6128_v23 = vpop.f32.mrf.mxu1  ;;  %6415 = vmatmul.mubr.bf16.gmra.mxu1 %v9577_v47  ;;  %v4105_v31 = vsel %vm6764_vm2, %v4100_v57, %v8757_v44  ;;  %v4115_v28 = vsel %vm6764_vm2, %v4110_v25, %v4114_v18  ;;  %v8839_v46 = vsel %vm7075_vm5, %v5789_v29, %v4677_v12  ;;  %v6177_v11 = vpop.f32.mrf.mxu0  ;;  %v4124_v62 = vrot.slane %v4123_v50, 4  ;;  %v9579_v57 = vld [vmem:[#allocation15_spill] sm:$0xff]  ;;  %v9583_v47 = vld [vmem:[#allocation20_spill] sm:$0xff] }
 0x136   : > { %v8843_v0 = vsel %vm7075_vm5, %v4679_v59, %v4680_v37  ;;  %v8845_v14 = vadd.f32 %v1614_v3, %v1162_v10  ;;  %v1183_v54 = vadd.f32 %v6128_v23, %v9578_v8  ;;  %6418 = vmatprep.mubr.bf16.mxu1 %v8679_v42  ;;  %v5790_v44 = vrot.slane %v5774_v21, 9 }
 0x137   : > { %v1174_v18 = vpop.f32.mrf.mxu1  ;;  %v4138_v6 = vrot.slane %v4136_v61, 5  ;;  %v4687_v12 = vrot.slane %v8794_v35, 5  ;;  %v4141_v29 = vshrl.u32 %v5713_v17, 16  ;;  %v4144_v33 = vshll.u32 %v5713_v17, 16  ;;  %v1630_v25 = vpop.f32.mrf.mxu0 }
 0x138   : > { %v8853_v7 = vadd.f32 %v6176_v38, %v1183_v54  ;;  %v1175_v3 = vadd.f32 %v1174_v18, %v9579_v57  ;;  %v4134_v59 = vrot.slane %v4133_v9, 4  ;;  %v4686_v37 = vrot.slane %v4684_v40, 4  ;;  %v9580_v38 = vld [vmem:[#allocation17_spill] sm:$0xff] }
 0x139   : > { %v6129_v42 = vpop.f32.mrf.mxu1  ;;  %v8856_v5 = vcombine.low %v4081_v39, %v4091_v49  ;;  %v5820_v58 = vcombine.low %v8807_v63, %v8821_v16  ;;  %v8860_v50 = vcombine.low %v4105_v31, %v4115_v28  ;;  %v4150_v35 = vshll.u32 %v8850_v2, 16  ;;  %v6180_v61 = vpop.f32.mrf.mxu0  ;;  %v5716_v49 = vld [vmem:[%s6733_s25 + $0xc0] sm:$0xf]  ;;  %v8874_v16 = vld [vmem:[%s6733_s25 + $0xc4] sm:$0xf] }
 0x13a   : > { %v8863_v45 = vadd.f32 %v1627_v60, %v1175_v3  ;;  %v1186_v20 = vadd.f32 %v6129_v42, %v9580_v38  ;;  %v9581_v21 = vcombine.low %v8637_v51, %v8658_v55  ;;  %v5821_v39 = vcombine.low %v8839_v46, %v8843_v0  ;;  %v9588_v46 = vld [vmem:[#allocation6_spill] sm:$0xff] }
 0x13b   : > { %v4154_v63 = vshrl.u32 %v8850_v2, 16  ;;  %v1177_v10 = vpop.f32.mrf.mxu1  ;;  %v9582_v60 = vcombine.low %v8687_v13, %v8702_v30  ;;  %v4129_v51 = vsel %vm6764_vm2, %v4124_v62, %v8796_v48  ;;  %v8884_v55 = vsel %vm7075_vm5, %v5790_v44, %v4684_v40  ;;  %v1643_v28 = vpop.f32.mrf.mxu0  ;;  %v8896_v30 = vld [vmem:[%s6733_s25 + $0xbc] sm:$0x1]  ;;  %v5775_v48 = vld [vmem:[%s6733_s25 + $0xb4] sm:$0xe] }
 0x13c   : > { %6467 = vmatmul.mubr.bf16.gmra.mxu0 %v9581_v21  ;;  %v4143_v9 = vrot.slane %v4141_v29, 4  ;;  %v4146_v17 = vrot.slane %v4144_v33, 5  ;;  %v8886_v23 = vadd.f32 %v6177_v11, %v1186_v20  ;;  %v1178_v31 = vadd.f32 %v1177_v10, %v9583_v47  ;;  %v8918_v20 = vld [vmem:[%s6733_s25 + $0xc8] sm:$0x1] }
 0x13d   : > { %6470 = vmatprep.mubr.bf16.mxu0 %v9582_v60  ;;  %v4139_v8 = vsel %vm6764_vm2, %v4134_v59, %v4138_v6  ;;  %v8893_v13 = vsel %vm7075_vm5, %v4686_v37, %v4687_v12  ;;  %v6132_v54 = vpop.f32.mrf.mxu1  ;;  %6419 = vmatmul.mubr.bf16.gmra.mxu1 %v8681_v52  ;;  %v8900_v40 = vrot.slane %v4150_v35, 5  ;;  %v4165_v11 = vshrl.u32 %v5716_v49, 16  ;;  %v6181_v29 = vpop.f32.mrf.mxu0 }
 0x13e   : > { %v4168_v62 = vshll.u32 %v5716_v49, 16  ;;  %v4174_v44 = vshll.u32 %v8874_v16, 16  ;;  %v8903_v18 = vadd.f32 %v1630_v25, %v1178_v31  ;;  %v1199_v6 = vadd.f32 %v6132_v54, %v8621_v43  ;;  %6422 = vmatprep.mubr.bf16.mxu1 %v8737_v22 }
 0x13f   : > { %v4156_v12 = vrot.slane %v4154_v63, 4  ;;  %v4178_v33 = vshrl.u32 %v8874_v16, 16  ;;  %v1190_v57 = vpop.f32.mrf.mxu1  ;;  %v4147_v3 = vor.u32 %v4146_v17, %v4143_v9  ;;  %v4160_v52 = vshll.u32 %v8896_v30, 16  ;;  %v1646_v43 = vpop.f32.mrf.mxu0  ;;  %v5719_v9 = vld [vmem:[%s6733_s25 + $0xcc] sm:$0xf] }
 0x140   : > { %v5791_v59 = vrot.slane %v5775_v48, 9  ;;  %v4691_v37 = vrot.slane %v8850_v2, 5  ;;  %v8910_v42 = vadd.f32 %v6180_v61, %v1199_v6  ;;  %v1191_v25 = vadd.f32 %v1190_v57, %v8640_v1  ;;  %v5776_v48 = vld [vmem:[%s6733_s25 + $0xc0] sm:$0xe] }
 0x141   : > { %v8913_v35 = vcombine.low %v4129_v51, %v4139_v8  ;;  %v5822_v22 = vcombine.low %v8884_v55, %v8893_v13  ;;  %v6133_v38 = vpop.f32.mrf.mxu1  ;;  %v4167_v21 = vrot.slane %v4165_v11, 4  ;;  %v4170_v63 = vrot.slane %v4168_v62, 5  ;;  %v6184_v10 = vpop.f32.mrf.mxu0  ;;  %v8940_v8 = vld [vmem:[%s6733_s25 + $0xd0] sm:$0xf] }
 0x142   : > { %v8920_v49 = vrot.slane %v4174_v44, 5  ;;  %v4180_v2 = vrot.slane %v4178_v33, 4  ;;  %v8922_v61 = vadd.f32 %v1643_v28, %v1191_v25  ;;  %v1202_v1 = vadd.f32 %v6133_v38, %v8660_v26 }
 0x143   : > { %v9584_v60 = vcombine.low %v8716_v19, %v8726_v36  ;;  %v4157_v51 = vor.u32 %v4156_v12, %v8900_v40  ;;  %v4694_v55 = vrot.slane %v8896_v30, 5  ;;  %v1193_v17 = vpop.f32.mrf.mxu1  ;;  %v8931_v47 = vrot.slane %v4147_v3, 4  ;;  %v1659_v13 = vpop.f32.mrf.mxu0 }
 0x144   : > { %v8933_v31 = vrot.slane %v4160_v52, 5  ;;  %v8937_v26 = vsel %vm7075_vm5, %v5791_v59, %v4691_v37  ;;  %v4693_v28 = vrot.slane %v4691_v37, 4  ;;  %v8942_v19 = vadd.f32 %v6181_v29, %v1202_v1  ;;  %v9585_v29 = vld [vmem:[#allocation2_spill] sm:$0xff] }
 0x145   : > { %6471 = vmatmul.mubr.bf16.gmra.mxu0 %v9584_v60  ;;  %v1194_v36 = vadd.f32 %v1193_v17, %v8669_v34  ;;  %v4184_v30 = vshll.u32 %v8918_v20, 16  ;;  %v6136_v54 = vpop.f32.mrf.mxu1  ;;  %6423 = vmatmul.mubr.bf16.gmra.mxu1 %v8743_v4  ;;  %v4171_v11 = vor.u32 %v4170_v63, %v4167_v21  ;;  %v4181_v62 = vor.u32 %v4180_v2, %v8920_v49  ;;  %v6185_v57 = vpop.f32.mrf.mxu0 }
 0x146   : > { %6474 = vmatprep.mubr.bf16.mxu0 %v5820_v58  ;;  %v4698_v58 = vrot.slane %v8874_v16, 5  ;;  %v4189_v44 = vshrl.u32 %v5719_v9, 16  ;;  %v4192_v6 = vshll.u32 %v5719_v9, 16  ;;  %v1215_v33 = vadd.f32 %v6136_v54, %v9585_v29  ;;  %6426 = vmatprep.mubr.bf16.mxu1 %v8856_v5 }
 0x147   : > { %v8950_v12 = vadd.f32 %v1646_v43, %v1194_v36  ;;  %v4198_v34 = vshll.u32 %v8940_v8, 16  ;;  %v4202_v3 = vshrl.u32 %v8940_v8, 16  ;;  %v1206_v16 = vpop.f32.mrf.mxu1  ;;  %v4158_v52 = vrot.slane %v4157_v51, 4  ;;  %v9586_v43 = vld [vmem:[#allocation5_spill] sm:$0xff]  ;;  %v1662_v21 = vpop.f32.mrf.mxu0  ;;  %v9587_v36 = vld [vmem:[#allocation4_spill] sm:$0xff] }
 0x148   : > { %v4695_v4 = vsel %vm7075_vm5, %v4693_v28, %v4694_v55  ;;  %v5792_v59 = vrot.slane %v5776_v48, 9  ;;  %v4701_v37 = vrot.slane %v8918_v20, 5  ;;  %v8959_v25 = vadd.f32 %v6184_v10, %v1215_v33  ;;  %v5721_v20 = vld [vmem:[%s6733_s25 + $0xd4] sm:$0x1] }
 0x149   : > { %v1207_v38 = vadd.f32 %v1206_v16, %v9586_v43  ;;  %v4186_v63 = vrot.slane %v4184_v30, 5  ;;  %v4700_v5 = vrot.slane %v4698_v58, 4  ;;  %v6137_v2 = vpop.f32.mrf.mxu1  ;;  %v4172_v1 = vrot.slane %v4171_v11, 4 }
 0x14a   : > { %v4182_v60 = vrot.slane %v4181_v62, 4  ;;  %v4191_v9 = vrot.slane %v4189_v44, 4  ;;  %v4194_v17 = vrot.slane %v4192_v6, 5  ;;  %v1218_v55 = vadd.f32 %v6137_v2, %v9587_v36  ;;  %v6188_v28 = vpop.f32.mrf.mxu0  ;;  %v5777_v6 = vld [vmem:[%s6733_s25 + $0xcc] sm:$0xe] }
 0x14b   : > { %v8962_v51 = vadd.f32 %v1659_v13, %v1207_v38  ;;  %v8969_v10 = vrot.slane %v4198_v34, 5  ;;  %v4204_v30 = vrot.slane %v4202_v3, 4  ;;  %v1209_v48 = vpop.f32.mrf.mxu1  ;;  %v4153_v13 = vsel %vm6764_vm2, %v8931_v47, %v8900_v40 }
 0x14c   : > { %v4163_v54 = vsel %vm6764_vm2, %v4158_v52, %v8933_v31  ;;  %v4705_v11 = vrot.slane %v8940_v8, 5  ;;  %v8979_v62 = vadd.f32 %v6185_v57, %v1218_v55  ;;  %v1210_v0 = vadd.f32 %v1209_v48, %v9588_v46  ;;  %v9589_v57 = vld [vmem:[#allocation8_spill] sm:$0xff] }
 0x14d   : > { %6475 = vmatmul.mubr.bf16.gmra.mxu0 %v5821_v39  ;;  %v1675_v39 = vpop.f32.mrf.mxu0  ;;  %v4699_v44 = vsel %vm7075_vm5, %v5792_v59, %v4698_v58  ;;  %v6140_v29 = vpop.f32.mrf.mxu1  ;;  %6427 = vmatmul.mubr.bf16.gmra.mxu1 %v8860_v50  ;;  %v5823_v40 = vcombine.low %v8937_v26, %v4695_v4  ;;  %v4177_v47 = vsel %vm6764_vm2, %v4172_v1, %v8920_v49  ;;  %v4208_v8 = vshll.u32 %v5721_v20, 16  ;;  %v9592_v48 = vld [vmem:[#allocation12_spill] sm:$0xff] }
 0x14e   : > { %6478 = vmatprep.mubr.bf16.mxu0 %v5822_v22  ;;  %v4702_v22 = vsel %vm7075_vm5, %v4700_v5, %v4701_v37  ;;  %v4195_v31 = vor.u32 %v4194_v17, %v4191_v9  ;;  %v8992_v33 = vadd.f32 %v1662_v21, %v1210_v0  ;;  %v1231_v34 = vadd.f32 %v6140_v29, %v9589_v57  ;;  %v9590_v37 = vld [vmem:[#allocation10_spill] sm:$0xff]  ;;  %v9591_v9 = vld [vmem:[#allocation11_spill] sm:$0xff] }
 0x14f   : > { %v6189_v58 = vpop.f32.mrf.mxu0  ;;  %6430 = vmatprep.mubr.bf16.mxu1 %v8913_v35  ;;  %v4187_v3 = vsel %vm6764_vm2, %v4182_v60, %v4186_v63  ;;  %v4205_v50 = vor.u32 %v4204_v30, %v8969_v10  ;;  %v1222_v16 = vpop.f32.mrf.mxu1  ;;  %v5824_v26 = vcombine.low %v4699_v44, %v4702_v22  ;;  %v5793_v52 = vrot.slane %v5777_v6, 9  ;;  %v9593_v44 = vld [vmem:[#allocation14_spill] sm:$0xff] }
 0x150   : > { %v4707_v4 = vrot.slane %v4705_v11, 4  ;;  %v4708_v59 = vrot.slane %v5721_v20, 5  ;;  %v8999_v49 = vadd.f32 %v6188_v28, %v1231_v34  ;;  %v1223_v43 = vadd.f32 %v1222_v16, %v9590_v37  ;;  %v9596_v37 = vld [vmem:[#allocation21_spill] sm:$0xff] }
 0x151   : > { %v1678_v38 = vpop.f32.mrf.mxu0  ;;  %v6141_v21 = vpop.f32.mrf.mxu1  ;;  %v5751_v5 = vcombine.low %v4153_v13, %v4163_v54  ;;  %v5752_v2 = vcombine.low %v4177_v47, %v4187_v3  ;;  %v4196_v1 = vrot.slane %v4195_v31, 4  ;;  %v4206_v17 = vrot.slane %v4205_v50, 4  ;;  %v9594_v47 = vld [vmem:[#allocation16_spill] sm:$0xff] }
 0x152   : > { %v9002_v35 = vadd.f32 %v1675_v39, %v1223_v43  ;;  %v1234_v63 = vadd.f32 %v6141_v21, %v9591_v9  ;;  %v4210_v36 = vrot.slane %v4208_v8, 5  ;;  %v4706_v28 = vsel %vm7075_vm5, %v5793_v52, %v4705_v11 }
 0x153   : > { %v6192_v60 = vpop.f32.mrf.mxu0  ;;  %v1225_v55 = vpop.f32.mrf.mxu1  ;;  %v4709_v20 = vsel %vm7075_vm5, %v4707_v4, %v4708_v59  ;;  %v4201_v0 = vsel %vm6764_vm2, %v4196_v1, %v8969_v10  ;;  %v9595_v10 = vld [vmem:[#allocation19_spill] sm:$0xff] }
 0x154   : > { %v9009_v30 = vadd.f32 %v6189_v58, %v1234_v63  ;;  %v1226_v13 = vadd.f32 %v1225_v55, %v9592_v48  ;;  %v4211_v56 = vsel %vm6764_vm2, %v4206_v17, %v4210_v36  ;;  %v5825_v11 = vcombine.low %v4706_v28, %v4709_v20  ;;  %v9598_v17 = vld [vmem:[#allocation23_spill] sm:$0xff]  ;;  %v9599_v20 = vld [vmem:[#allocation24_spill] sm:$0xff] }
 0x155   : > { %6479 = vmatmul.mubr.bf16.gmra.mxu0 %v5823_v40  ;;  %v1691_v54 = vpop.f32.mrf.mxu0  ;;  %v6144_v46 = vpop.f32.mrf.mxu1  ;;  %6431 = vmatmul.mubr.bf16.gmra.mxu1 %v5751_v5  ;;  %v5753_v34 = vcombine.low %v4201_v0, %v4211_v56  ;;  %v9600_v0 = vld [vmem:[#allocation25_spill] sm:$0xff] }
 0x156   : > { %6482 = vmatprep.mubr.bf16.mxu0 %v5824_v26  ;;  %v9015_v39 = vadd.f32 %v1678_v38, %v1226_v13  ;;  %v1247_v22 = vadd.f32 %v6144_v46, %v9593_v44  ;;  %6434 = vmatprep.mubr.bf16.mxu1 %v5752_v2  ;;  %v9597_v2 = vld [vmem:[#allocation22_spill] sm:$0xff] }
 0x157   : > { %v6193_v6 = vpop.f32.mrf.mxu0  ;;  %v1238_v29 = vpop.f32.mrf.mxu1 }
 0x158   : > { %v9020_v40 = vadd.f32 %v6192_v60, %v1247_v22  ;;  %v1239_v31 = vadd.f32 %v1238_v29, %v9594_v47 }
 0x159   : > { %v1694_v8 = vpop.f32.mrf.mxu0  ;;  %v6145_v57 = vpop.f32.mrf.mxu1 }
 0x15a   : > { %v9023_v58 = vadd.f32 %v1691_v54, %v1239_v31  ;;  %v1250_v3 = vadd.f32 %v6145_v57, %v9595_v10  ;;  %v9602_v57 = vld [vmem:[#allocation27_spill] sm:$0xff] }
 0x15b   : > { %v6196_v50 = vpop.f32.mrf.mxu0  ;;  %v1241_v16 = vpop.f32.mrf.mxu1 }
 0x15c   : > { %v9026_v26 = vadd.f32 %v6193_v6, %v1250_v3  ;;  %v1242_v27 = vadd.f32 %v1241_v16, %v8616_v32 }
 0x15d   : > { %6483 = vmatmul.mubr.bf16.gmra.mxu0 %v5825_v11  ;;  %v1707_v52 = vpop.f32.mrf.mxu0  ;;  %v6148_v4 = vpop.f32.mrf.mxu1  ;;  %6435 = vmatmul.mubr.bf16.gmra.mxu1 %v5753_v34  ;;  %v9601_v11 = vld [vmem:[#allocation26_spill] sm:$0xff] }
 0x15e   : > { %v9029_v59 = vadd.f32 %v1694_v8, %v1242_v27  ;;  %v1263_v43 = vadd.f32 %v6148_v4, %v9596_v37 }
 0x15f   : > { %v6197_v38 = vpop.f32.mrf.mxu0  ;;  %v1254_v21 = vpop.f32.mrf.mxu1 }
 0x160   : > { %v9032_v5 = vadd.f32 %v6196_v50, %v1263_v43  ;;  %v1255_v1 = vadd.f32 %v1254_v21, %v9597_v2 }
 0x161   : > { %v1710_v9 = vpop.f32.mrf.mxu0  ;;  %v6149_v63 = vpop.f32.mrf.mxu1 }
 0x162   : > { %v9035_v60 = vadd.f32 %v1707_v52, %v1255_v1  ;;  %v1266_v36 = vadd.f32 %v6149_v63, %v9598_v17 }
 0x163   : > { %v6264_v32 = vpop.f32.mrf.mxu0  ;;  %v1257_v55 = vpop.f32.mrf.mxu1 }
 0x164   : > { %v9038_v28 = vadd.f32 %v6197_v38, %v1266_v36  ;;  %v1258_v48 = vadd.f32 %v1257_v55, %v9599_v20 }
 0x165   : > { %v2736_v13 = vpop.f32.mrf.mxu0  ;;  %v6216_v54 = vpop.f32.mrf.mxu1 }
 0x166   : > { %v9041_v46 = vadd.f32 %v1710_v9, %v1258_v48  ;;  %v2111_v44 = vadd.f32 %v6216_v54, %v9600_v0 }
 0x167   : > { %v6265_v22 = vpop.f32.mrf.mxu0  ;;  %v1982_v6 = vpop.f32.mrf.mxu1 }
 0x168   : > { %v9044_v56 = vadd.f32 %v6264_v32, %v2111_v44  ;;  %v2109_v29 = vadd.f32 %v1982_v6, %v9601_v11 }
 0x169   : > { %v2739_v47 = vpop.f32.mrf.mxu0  ;;  %v6217_v31 = vpop.f32.mrf.mxu1 }
 0x16a   : > { %v9047_v8 = vadd.f32 %v2736_v13, %v2109_v29  ;;  %v2112_v34 = vadd.f32 %v6217_v31, %v9602_v57 }
 0x16b   : > { %v6268_v10 = vpop.f32.mrf.mxu0  ;;  %v1985_v3 = vpop.f32.mrf.mxu1 }
 0x16c   : > { %v9050_v50 = vadd.f32 %v6265_v22, %v2112_v34  ;;  %v2110_v16 = vadd.f32 %v1985_v3, %v8786_v24 }
 0x16d   : > { %v2752_v27 = vpop.f32.mrf.mxu0  ;;  %v6220_v52 = vpop.f32.mrf.mxu1 }
 0x16e   : > { %v9053_v4 = vadd.f32 %v2739_v47, %v2110_v16  ;;  %v2115_v37 = vadd.f32 %v6220_v52, %v8790_v41 }
 0x16f   : > { %v6269_v43 = vpop.f32.mrf.mxu0  ;;  %v1998_v38 = vpop.f32.mrf.mxu1 }
 0x170   : > { %v9056_v21 = vadd.f32 %v6268_v10, %v2115_v37  ;;  %v2113_v2 = vadd.f32 %v1998_v38, %v8799_v15 }
 0x171   : > { %v2755_v1 = vpop.f32.mrf.mxu0  ;;  %v6221_v9 = vpop.f32.mrf.mxu1 }
 0x172   : > { %v9059_v63 = vadd.f32 %v2752_v27, %v2113_v2  ;;  %v2116_v17 = vadd.f32 %v6221_v9, %v8825_v53 }
 0x173   : > { %v6272_v36 = vpop.f32.mrf.mxu0  ;;  %v2001_v24 = vpop.f32.mrf.mxu1 }
 0x174   : > { %v9062_v32 = vadd.f32 %v6269_v43, %v2116_v17  ;;  %v2114_v55 = vadd.f32 %v2001_v24, %v8845_v14 }
 0x175   : > { %v2768_v20 = vpop.f32.mrf.mxu0  ;;  %v6224_v41 = vpop.f32.mrf.mxu1 }
 0x176   : > { %v9065_v48 = vadd.f32 %v2755_v1, %v2114_v55  ;;  %v2119_v13 = vadd.f32 %v6224_v41, %v8853_v7 }
 0x177   : > { %v6273_v54 = vpop.f32.mrf.mxu0  ;;  %v2014_v15 = vpop.f32.mrf.mxu1 }
 0x178   : > { %v9068_v0 = vadd.f32 %v6272_v36, %v2119_v13  ;;  %v2117_v44 = vadd.f32 %v2014_v15, %v8863_v45 }
 0x179   : > { %v2771_v22 = vpop.f32.mrf.mxu0  ;;  %v6225_v53 = vpop.f32.mrf.mxu1 }
 0x17a   : > { %v9071_v6 = vadd.f32 %v2768_v20, %v2117_v44  ;;  %v2120_v11 = vadd.f32 %v6225_v53, %v8886_v23 }
 0x17b   : > { %v6276_v29 = vpop.f32.mrf.mxu0  ;;  %v2017_v14 = vpop.f32.mrf.mxu1 }
 0x17c   : > { %v9074_v47 = vadd.f32 %v6273_v54, %v2120_v11  ;;  %v2118_v31 = vadd.f32 %v2017_v14, %v8903_v18 }
 0x17d   : > { %v2784_v57 = vpop.f32.mrf.mxu0  ;;  %v6228_v7 = vpop.f32.mrf.mxu1 }
 0x17e   : > { %v9077_v34 = vadd.f32 %v2771_v22, %v2118_v31  ;;  %v2123_v10 = vadd.f32 %v6228_v7, %v8910_v42 }
 0x17f   : > { %v6277_v3 = vpop.f32.mrf.mxu0  ;;  %v2030_v45 = vpop.f32.mrf.mxu1 }
 0x180   : > { %v9080_v16 = vadd.f32 %v6276_v29, %v2123_v10  ;;  %v2121_v27 = vadd.f32 %v2030_v45, %v8922_v61 }
 0x181   : > { %v2787_v52 = vpop.f32.mrf.mxu0  ;;  %v6229_v23 = vpop.f32.mrf.mxu1 }
 0x182   : > { %v9083_v37 = vadd.f32 %v2784_v57, %v2121_v27  ;;  %v2124_v43 = vadd.f32 %v6229_v23, %v8942_v19 }
 0x183   : > { %v6280_v38 = vpop.f32.mrf.mxu0  ;;  %v2033_v18 = vpop.f32.mrf.mxu1 }
 0x184   : > { %v9086_v2 = vadd.f32 %v6277_v3, %v2124_v43  ;;  %v2122_v1 = vadd.f32 %v2033_v18, %v8950_v12 }
 0x185   : > { %v2800_v9 = vpop.f32.mrf.mxu0  ;;  %v6232_v42 = vpop.f32.mrf.mxu1 }
 0x186   : > { %v9089_v17 = vadd.f32 %v2787_v52, %v2122_v1  ;;  %v2127_v36 = vadd.f32 %v6232_v42, %v8959_v25 }
 0x187   : > { %v6281_v24 = vpop.f32.mrf.mxu0  ;;  %v2046_v61 = vpop.f32.mrf.mxu1 }
 0x188   : > { %v9092_v55 = vadd.f32 %v6280_v38, %v2127_v36  ;;  %v2125_v20 = vadd.f32 %v2046_v61, %v8962_v51 }
 0x189   : > { %v2803_v41 = vpop.f32.mrf.mxu0  ;;  %v6233_v19 = vpop.f32.mrf.mxu1 }
 0x18a   : > { %v9095_v13 = vadd.f32 %v2800_v9, %v2125_v20  ;;  %v2128_v54 = vadd.f32 %v6233_v19, %v8979_v62 }
 0x18b   : > { %v6284_v15 = vpop.f32.mrf.mxu0  ;;  %v2049_v12 = vpop.f32.mrf.mxu1 }
 0x18c   : > { %v9098_v44 = vadd.f32 %v6281_v24, %v2128_v54  ;;  %v2126_v22 = vadd.f32 %v2049_v12, %v8992_v33 }
 0x18d   : > { %v2816_v53 = vpop.f32.mrf.mxu0  ;;  %v6236_v25 = vpop.f32.mrf.mxu1 }
 0x18e   : > { %9603 = vst [vmem:[#allocation3_spill] sm:$0xff] %v9098_v44  ;;  %v9101_v11 = vadd.f32 %v2803_v41, %v2126_v22  ;;  %v2131_v29 = vadd.f32 %v6236_v25, %v8999_v49 }
 0x18f   : > { %v6285_v14 = vpop.f32.mrf.mxu0  ;;  %v2062_v51 = vpop.f32.mrf.mxu1 }
 0x190   : > { %9604 = vst [vmem:[#allocation7_spill] sm:$0xff] %v9101_v11  ;;  %v9104_v31 = vadd.f32 %v6284_v15, %v2131_v29  ;;  %v2129_v57 = vadd.f32 %v2062_v51, %v9002_v35 }
 0x191   : > { %v2819_v7 = vpop.f32.mrf.mxu0  ;;  %v6237_v62 = vpop.f32.mrf.mxu1 }
 0x192   : > { %9605 = vst [vmem:[#allocation9_spill] sm:$0xff] %v9104_v31  ;;  %v9107_v10 = vadd.f32 %v2816_v53, %v2129_v57  ;;  %v2132_v3 = vadd.f32 %v6237_v62, %v9009_v30 }
 0x193   : > { %v6288_v45 = vpop.f32.mrf.mxu0  ;;  %v2065_v33 = vpop.f32.mrf.mxu1 }
 0x194   : > { %9606 = vst [vmem:[#allocation18_spill] sm:$0xff] %v9107_v10  ;;  %v9110_v27 = vadd.f32 %v6285_v14, %v2132_v3  ;;  %v2130_v52 = vadd.f32 %v2065_v33, %v9015_v39 }
 0x195   : > { %v2832_v23 = vpop.f32.mrf.mxu0  ;;  %v6240_v49 = vpop.f32.mrf.mxu1 }
 0x196   : > { %9607 = vst [vmem:[#allocation13_spill] sm:$0xff] %v9110_v27  ;;  %v9113_v43 = vadd.f32 %v2819_v7, %v2130_v52  ;;  %v2135_v38 = vadd.f32 %v6240_v49, %v9020_v40 }
 0x197   : > { %v6289_v18 = vpop.f32.mrf.mxu0  ;;  %v2078_v35 = vpop.f32.mrf.mxu1 }
 0x198   : > { %9608 = vst [vmem:[#allocation15_spill] sm:$0xff] %v9113_v43  ;;  %v9116_v1 = vadd.f32 %v6288_v45, %v2135_v38  ;;  %v2133_v9 = vadd.f32 %v2078_v35, %v9023_v58 }
 0x199   : > { %v2835_v42 = vpop.f32.mrf.mxu0  ;;  %v6241_v30 = vpop.f32.mrf.mxu1 }
 0x19a   : > { %9609 = vst [vmem:[#allocation17_spill] sm:$0xff] %v9116_v1  ;;  %v9119_v36 = vadd.f32 %v2832_v23, %v2133_v9  ;;  %v2136_v24 = vadd.f32 %v6241_v30, %v9026_v26 }
 0x19b   : > { %v6292_v61 = vpop.f32.mrf.mxu0  ;;  %v2081_v39 = vpop.f32.mrf.mxu1 }
 0x19c   : > { %9610 = vst [vmem:[#allocation20_spill] sm:$0xff] %v9119_v36  ;;  %v9122_v20 = vadd.f32 %v6289_v18, %v2136_v24  ;;  %v2134_v41 = vadd.f32 %v2081_v39, %v9029_v59 }
 0x19d   : > { %v2848_v19 = vpop.f32.mrf.mxu0  ;;  %v6244_v40 = vpop.f32.mrf.mxu1 }
 0x19e   : > { %9611 = vst [vmem:[#allocation2_spill] sm:$0xff] %v9122_v20  ;;  %v9125_v54 = vadd.f32 %v2835_v42, %v2134_v41  ;;  %v2139_v15 = vadd.f32 %v6244_v40, %v9032_v5 }
 0x19f   : > { %v6293_v12 = vpop.f32.mrf.mxu0  ;;  %v2094_v58 = vpop.f32.mrf.mxu1 }
 0x1a0   : > { %9612 = vst [vmem:[#allocation5_spill] sm:$0xff] %v9125_v54  ;;  %v9128_v22 = vadd.f32 %v6292_v61, %v2139_v15  ;;  %v2137_v53 = vadd.f32 %v2094_v58, %v9035_v60 }
 0x1a1   : > { %v2851_v25 = vpop.f32.mrf.mxu0  ;;  %v6245_v26 = vpop.f32.mrf.mxu1 }
 0x1a2   : > { %9613 = vst [vmem:[#allocation4_spill] sm:$0xff] %v9128_v22  ;;  %v9131_v29 = vadd.f32 %v2848_v19, %v2137_v53  ;;  %v2140_v14 = vadd.f32 %v6245_v26, %v9038_v28 }
 0x1a3   : > { %v9134_v51 = vpop.f32.mrf.mxu0  ;;  %v2097_v59 = vpop.f32.mrf.mxu1 }
 0x1a4   : > { %9614 = vst [vmem:[#allocation6_spill] sm:$0xff] %v9131_v29  ;;  %v9136_v57 = vadd.f32 %v6293_v12, %v2140_v14  ;;  %v2138_v7 = vadd.f32 %v2097_v59, %v9041_v46 }
 0x1a5   : > { %v9139_v5 = vpop.f32.mrf.mxu0  ;;  %v6312_v62 = vpop.f32.mrf.mxu1 }
 0x1a6   : > { %9615 = vst [vmem:[#allocation8_spill] sm:$0xff] %v9136_v57  ;;  %v9141_v3 = vadd.f32 %v2851_v25, %v2138_v7 }
 0x1a7   : > { %v9143_v45 = vpop.f32.mrf.mxu0  ;;  %v3234_v60 = vpop.f32.mrf.mxu1 }
 0x1a8   : > { %9616 = vst [vmem:[#allocation10_spill] sm:$0xff] %v9141_v3 }
 0x1a9   : > { %v9145_v33 = vpop.f32.mrf.mxu0  ;;  %v6313_v52 = vpop.f32.mrf.mxu1 }
 0x1ab   : > { %v9147_v23 = vpop.f32.mrf.mxu0  ;;  %v9149_v28 = vpop.f32.mrf.mxu1 }
 0x1ad   : > { %v9151_v49 = vpop.f32.mrf.mxu0  ;;  %v9153_v38 = vpop.f32.mrf.mxu1 }
 0x1af   : > { %v9155_v46 = vpop.f32.mrf.mxu0  ;;  %v9157_v18 = vpop.f32.mrf.mxu1 }
 0x1b1   : > { %v9159_v35 = vpop.f32.mrf.mxu0  ;;  %v9161_v9 = vpop.f32.mrf.mxu1 }
 0x1b3   : > { %v9163_v42 = vpop.f32.mrf.mxu0  ;;  %v9165_v30 = vpop.f32.mrf.mxu1 }
 0x1b5   : > { %v9167_v24 = vpop.f32.mrf.mxu0  ;;  %v9169_v61 = vpop.f32.mrf.mxu1 }
 0x1b7   : > { %v9171_v39 = vpop.f32.mrf.mxu0  ;;  %v9173_v41 = vpop.f32.mrf.mxu1 }
 0x1b9   : > { %v9175_v19 = vpop.f32.mrf.mxu0  ;;  %v9177_v40 = vpop.f32.mrf.mxu1 }
 0x1bb   : > { %v9179_v15 = vpop.f32.mrf.mxu0  ;;  %v9181_v12 = vpop.f32.mrf.mxu1 }
 0x1bd   : > { %v9183_v58 = vpop.f32.mrf.mxu0  ;;  %v9185_v53 = vpop.f32.mrf.mxu1 }
 0x1bf   : > { %v9187_v25 = vpop.f32.mrf.mxu0  ;;  %v9189_v26 = vpop.f32.mrf.mxu1 }
 0x1c1   : > { %v9191_v14 = vpop.f32.mrf.mxu0  ;;  %v9193_v59 = vpop.f32.mrf.mxu1 }
 0x1c3   : > { %v9195_v7 = vpop.f32.mrf.mxu0  ;;  %v9197_v3 = vpop.f32.mrf.mxu1 }
 0x1c5   : > { %v9199_v57 = vpop.f32.mrf.mxu0  ;;  %v9201_v29 = vpop.f32.mrf.mxu1 }
 0x1c6   : > { %9617 = vst [vmem:[#allocation11_spill] sm:$0xff] %v9199_v57 }
 0x1c7   : > { %v9203_v22 = vpop.f32.mrf.mxu0  ;;  %v9205_v54 = vpop.f32.mrf.mxu1 }
 0x1c8   : > { %9618 = vst [vmem:[#allocation12_spill] sm:$0xff] %v9203_v22 }
 0x1c9   : > { %v9207_v20 = vpop.f32.mrf.mxu0  ;;  %v9209_v36 = vpop.f32.mrf.mxu1 }
 0x1ca   : > { %9619 = vst [vmem:[#allocation14_spill] sm:$0xff] %v9207_v20  ;;  %9620 = vst [vmem:[#allocation16_spill] sm:$0xff] %v9209_v36 }
 0x1cb   : > { %v9211_v1 = vpop.f32.mrf.mxu0  ;;  %v9213_v43 = vpop.f32.mrf.mxu1 }
 0x1cc   : > { %9621 = vst [vmem:[#allocation19_spill] sm:$0xff] %v9211_v1  ;;  %9622 = vst [vmem:[#allocation21_spill] sm:$0xff] %v9213_v43 }
 0x1cd   : > { %v9215_v27 = vpop.f32.mrf.mxu0  ;;  %v9217_v10 = vpop.f32.mrf.mxu1 }
 0x1ce   : > { %9623 = vst [vmem:[#allocation22_spill] sm:$0xff] %v9215_v27  ;;  %9624 = vst [vmem:[#allocation23_spill] sm:$0xff] %v9217_v10 }
 0x1cf   : > { %v9219_v31 = vpop.f32.mrf.mxu0  ;;  %v9221_v11 = vpop.f32.mrf.mxu1 }
 0x1d0   : > { %9625 = vst [vmem:[#allocation24_spill] sm:$0xff] %v9219_v31  ;;  %9626 = vst [vmem:[#allocation25_spill] sm:$0xff] %v9221_v11 }
 0x1d1   : > { %v9223_v57 = vpop.f32.mrf.mxu0  ;;  %v9225_v22 = vpop.f32.mrf.mxu1 }
 0x1d2   : > { %9627 = vst [vmem:[#allocation26_spill] sm:$0xff] %v9223_v57  ;;  %9628 = vst [vmem:[#allocation27_spill] sm:$0xff] %v9225_v22 }
 0x1d3   : > { %v9227_v44 = vpop.f32.mrf.mxu0  ;;  %v9229_v20 = vpop.f32.mrf.mxu1 }
 0x1d4   : > { %9629 = vst [vmem:[#allocation28_spill] sm:$0xff] %v9227_v44  ;;  %9630 = vst [vmem:[#allocation29_spill] sm:$0xff] %v9229_v20 }
 0x1d5   : > { %v9231_v36 = vpop.f32.mrf.mxu0  ;;  %v9233_v1 = vpop.f32.mrf.mxu1 }
 0x1d6   : > { %9631 = vst [vmem:[#allocation30_spill] sm:$0xff] %v9231_v36  ;;  %9632 = vst [vmem:[#allocation31_spill] sm:$0xff] %v9233_v1 }
 0x1d7   : > { %v9235_v43 = vpop.f32.mrf.mxu0  ;;  %v9237_v27 = vpop.f32.mrf.mxu1 }
 0x1d8   : > { %9633 = vst [vmem:[#allocation32_spill] sm:$0xff] %v9235_v43  ;;  %9634 = vst [vmem:[#allocation33_spill] sm:$0xff] %v9237_v27  ;;  %v3363_v43 = vadd.f32 %v6312_v62, %v9044_v56  ;;  %v3362_v56 = vadd.f32 %v9149_v28, %v9053_v4  ;;  %v3365_v4 = vadd.f32 %v9157_v18, %v9059_v63 }
 0x1d9   : > { %v9239_v10 = vpop.f32.mrf.mxu0  ;;  %v9241_v31 = vpop.f32.mrf.mxu1 }
 0x1da   : > { %9635 = vst [vmem:[#allocation34_spill] sm:$0xff] %v9239_v10  ;;  %9636 = vst [vmem:[#allocation35_spill] sm:$0xff] %v9241_v31  ;;  %v3361_v10 = vadd.f32 %v3234_v60, %v9047_v8  ;;  %v9273_v8 = vld [vmem:[%s9440_s2] ss:$0 sm:$0xff]  ;;  %v3752_v18 = vadd.f32 %v9151_v49, %v3365_v4 }
 0x1db   : > { %v9243_v11 = vpop.f32.mrf.mxu0  ;;  %v9245_v57 = vpop.f32.mrf.mxu1 }
 0x1dc   : > { %9637 = vst [vmem:[#allocation36_spill] sm:$0xff] %v9243_v11  ;;  %9638 = vst [vmem:[#allocation37_spill] sm:$0xff] %v9245_v57 }
 0x1dd   : > { %v9247_v22 = vpop.f32.mrf.mxu0  ;;  %v9249_v44 = vpop.f32.mrf.mxu1 }
 0x1de   : > { %9639 = vst [vmem:[#allocation38_spill] sm:$0xff] %v9247_v22  ;;  %9640 = vst [vmem:[#allocation39_spill] sm:$0xff] %v9249_v44  ;;  %v3750_v22 = vadd.f32 %v9134_v51, %v3363_v43  ;;  %v3364_v44 = vadd.f32 %v6313_v52, %v9050_v50 }
 0x1df   : > { %v9251_v20 = vpop.f32.mrf.mxu0  ;;  %v9253_v36 = vpop.f32.mrf.mxu1 }
 0x1e0   : > { %9641 = vst [vmem:[#allocation40_spill] sm:$0xff] %v9251_v20  ;;  %9642 = vst [vmem:[#allocation41_spill] sm:$0xff] %v9253_v36  ;;  %v3748_v36 = vadd.f32 %v9139_v5, %v3361_v10  ;;  %v3751_v50 = vadd.f32 %v9143_v45, %v3364_v44  ;;  %v3368_v44 = vadd.f32 %v9161_v9, %v9062_v32 }
 0x1e1   : > { %v9256_v1 = vpop.f32.mrf.mxu0  ;;  %v9258_v27 = vpop.f32.mrf.mxu1 }
 0x1e2   : > { %9643 = vst [vmem:[#allocation42_spill] sm:$0xff] %v9256_v1  ;;  %9644 = vst [vmem:[#allocation43_spill] sm:$0xff] %v9258_v27  ;;  %v3367_v27 = vadd.f32 %v9153_v38, %v9056_v21 }
 0x1e3   : > { %v9261_v31 = vpop.f32.mrf.mxu1 }
 0x1e4   : > { %v6456_v11 = vpop.f32.mrf.mxu0  ;;  %v3754_v38 = vadd.f32 %v9147_v23, %v3367_v27  ;;  %v3366_v27 = vadd.f32 %v9165_v30, %v9065_v48 }
 0x1e5   : > { %v6408_v20 = vpop.f32.mrf.mxu1 }
 0x1e6   : > { %v4873_v57 = vpop.f32.mrf.mxu0  ;;  %v4504_v62 = vadd.f32 %v6408_v20, %v3750_v22  ;;  %v3749_v22 = vadd.f32 %v9145_v33, %v3362_v56 }
 0x1e7   : > { %v4375_v43 = vpop.f32.mrf.mxu1 }
 0x1e8   : > { %v6457_v1 = vpop.f32.mrf.mxu0  ;;  %v5002_v51 = vadd.f32 %v6456_v11, %v4504_v62  ;;  %v4502_v60 = vadd.f32 %v4375_v43, %v3748_v36 }
 0x1e9   : > { %v6409_v20 = vpop.f32.mrf.mxu1 }
 0x1ea   : > { %v4876_v10 = vpop.f32.mrf.mxu0  ;;  %v5041_v21 = vadd.f32 %v9273_v8, %v5002_v51  ;;  %v5000_v5 = vadd.f32 %v4873_v57, %v4502_v60  ;;  %v4505_v52 = vadd.f32 %v6409_v20, %v3751_v50  ;;  %v3755_v50 = vadd.f32 %v9155_v46, %v3368_v44 }
 0x1eb   : > { %v4378_v63 = vpop.f32.mrf.mxu1  ;;  %v3753_v20 = vadd.f32 %v9159_v35, %v3366_v27  ;;  %v3375_v27 = vadd.f32 %v9185_v53, %v9080_v16 }
 0x1ec   : > { %v6460_v28 = vpop.f32.mrf.mxu0  ;;  %v5073_v11 = vmax.f32 %v5041_v21, 0.0  ;;  %v5039_v36 = vadd.f32 %v9273_v8, %v5000_v5  ;;  %v5003_v45 = vadd.f32 %v6457_v1, %v4505_v52  ;;  %v4503_v57 = vadd.f32 %v4378_v63, %v3749_v22 }
 0x1ed   : > { %v6412_v32 = vpop.f32.mrf.mxu1  ;;  %v3371_v1 = vadd.f32 %v9169_v61, %v9068_v0 }
 0x1ee   : > { %v4889_v33 = vpop.f32.mrf.mxu0  ;;  %5105 = vst [vmem:[%s9287_s8 + $0x10] sm:$0xff] %v5073_v11  ;;  %v5071_v23 = vmax.f32 %v5039_v36, 0.0  ;;  %v5042_v9 = vadd.f32 %v9273_v8, %v5003_v45  ;;  %v5001_v56 = vadd.f32 %v4876_v10, %v4503_v57  ;;  %v4508_v62 = vadd.f32 %v6412_v32, %v3754_v38 }
 0x1ef   : > { %v4391_v51 = vpop.f32.mrf.mxu1  ;;  %v3369_v10 = vadd.f32 %v9173_v41, %v9071_v6  ;;  %v3758_v52 = vadd.f32 %v9163_v42, %v3371_v1  ;;  %v3370_v36 = vadd.f32 %v9181_v12, %v9077_v34 }
 0x1f0   : > { %v6461_v43 = vpop.f32.mrf.mxu0  ;;  %5103 = vst [vmem:[%s9287_s8] sm:$0xff] %v5071_v23  ;;  %v5074_v49 = vmax.f32 %v5042_v9, 0.0  ;;  %v5040_v60 = vadd.f32 %v9273_v8, %v5001_v56  ;;  %v5006_v48 = vadd.f32 %v6460_v28, %v4508_v62  ;;  %v4506_v30 = vadd.f32 %v4391_v51, %v3752_v18 }
 0x1f1   : > { %v6413_v22 = vpop.f32.mrf.mxu1  ;;  %v3372_v28 = vadd.f32 %v9177_v40, %v9074_v47  ;;  %v3756_v11 = vadd.f32 %v9167_v24, %v3369_v10  ;;  %v3757_v56 = vadd.f32 %v9175_v19, %v3370_v36  ;;  %v3373_v62 = vadd.f32 %v9189_v26, %v9083_v37 }
 0x1f2   : > { %v4892_v4 = vpop.f32.mrf.mxu0  ;;  %5106 = vst [vmem:[%s9287_s8 + $0x18] sm:$0xff] %v5074_v49  ;;  %v5072_v46 = vmax.f32 %v5040_v60, 0.0  ;;  %v5045_v21 = vadd.f32 %v9273_v8, %v5006_v48  ;;  %v5004_v0 = vadd.f32 %v4889_v33, %v4506_v30  ;;  %v4509_v61 = vadd.f32 %v6413_v22, %v3755_v50 }
 0x1f3   : > { %v4394_v38 = vpop.f32.mrf.mxu1  ;;  %v3759_v18 = vadd.f32 %v9171_v39, %v3372_v28  ;;  %v3762_v51 = vadd.f32 %v9179_v15, %v3375_v27  ;;  %v3376_v49 = vadd.f32 %v9193_v59, %v9086_v2 }
 0x1f4   : > { %v6464_v5 = vpop.f32.mrf.mxu0  ;;  %5104 = vst [vmem:[%s9287_s8 + $0x8] sm:$0xff] %v5072_v46  ;;  %v5077_v35 = vmax.f32 %v5045_v21, 0.0  ;;  %v5043_v44 = vadd.f32 %v9273_v8, %v5004_v0  ;;  %v5007_v6 = vadd.f32 %v6461_v43, %v4509_v61  ;;  %v4507_v41 = vadd.f32 %v4394_v38, %v3753_v20 }
 0x1f5   : > { %v6416_v45 = vpop.f32.mrf.mxu1  ;;  %v3374_v20 = vadd.f32 %v9197_v3, %v9089_v17  ;;  %v3763_v21 = vadd.f32 %v9187_v25, %v3376_v49  ;;  %v3379_v0 = vadd.f32 %v9201_v29, %v9092_v55  ;;  %v3377_v38 = vadd.f32 %v9205_v54, %v9095_v13 }
 0x1f6   : > { %v4905_v63 = vpop.f32.mrf.mxu0  ;;  %5109 = vst [vmem:[%s9287_s8 + $0x30] sm:$0xff] %v5077_v35  ;;  %v5075_v42 = vmax.f32 %v5043_v44, 0.0  ;;  %v5046_v57 = vadd.f32 %v9273_v8, %v5007_v6  ;;  %v5005_v47 = vadd.f32 %v4892_v4, %v4507_v41  ;;  %v4512_v40 = vadd.f32 %v6416_v45, %v3758_v52 }
 0x1f7   : > { %v4407_v32 = vpop.f32.mrf.mxu1  ;;  %v3760_v4 = vadd.f32 %v9183_v58, %v3373_v62  ;;  %v3761_v28 = vadd.f32 %v9191_v14, %v3374_v20  ;;  %v3766_v41 = vadd.f32 %v9195_v7, %v3379_v0  ;;  %v9651_v62 = vld [vmem:[#allocation9_spill] sm:$0xff] }
 0x1f8   : > { %v6465_v33 = vpop.f32.mrf.mxu0  ;;  %5107 = vst [vmem:[%s9287_s8 + $0x20] sm:$0xff] %v5075_v42  ;;  %v5078_v24 = vmax.f32 %v5046_v57, 0.0  ;;  %v5044_v23 = vadd.f32 %v9273_v8, %v5005_v47  ;;  %v5010_v34 = vadd.f32 %v6464_v5, %v4512_v40  ;;  %v4510_v12 = vadd.f32 %v4407_v32, %v3756_v11  ;;  %v9646_v11 = vld [vmem:[#allocation16_spill] sm:$0xff]  ;;  %v9647_v47 = vld [vmem:[#allocation11_spill] sm:$0xff] }
 0x1f9   : > { %v6417_v43 = vpop.f32.mrf.mxu1  ;;  %v3764_v40 = vadd.f32 %v9647_v47, %v3377_v38 }
 0x1fa   : > { %v4908_v9 = vpop.f32.mrf.mxu0  ;;  %5110 = vst [vmem:[%s9287_s8 + $0x38] sm:$0xff] %v5078_v24  ;;  %v5076_v39 = vmax.f32 %v5044_v23, 0.0  ;;  %v5049_v50 = vadd.f32 %v9273_v8, %v5010_v34  ;;  %v5008_v16 = vadd.f32 %v4905_v63, %v4510_v12  ;;  %v4513_v53 = vadd.f32 %v6417_v43, %v3759_v18  ;;  %v9645_v63 = vld [vmem:[#allocation3_spill] sm:$0xff]  ;;  %v9649_v18 = vld [vmem:[#allocation21_spill] sm:$0xff] }
 0x1fb   : > { %v4410_v60 = vpop.f32.mrf.mxu1  ;;  %v3380_v36 = vadd.f32 %v9646_v11, %v9645_v63  ;;  %v9652_v43 = vld [vmem:[#allocation23_spill] sm:$0xff] }
 0x1fc   : > { %v6468_v1 = vpop.f32.mrf.mxu0  ;;  %5108 = vst [vmem:[%s9287_s8 + $0x28] sm:$0xff] %v5076_v39  ;;  %v5081_v19 = vmax.f32 %v5049_v50, 0.0  ;;  %v5047_v48 = vadd.f32 %v9273_v8, %v5008_v16  ;;  %v5011_v37 = vadd.f32 %v6465_v33, %v4513_v53  ;;  %v4511_v26 = vadd.f32 %v4410_v60, %v3757_v56  ;;  %v9648_v33 = vld [vmem:[#allocation7_spill] sm:$0xff]  ;;  %v9653_v60 = vld [vmem:[#allocation14_spill] sm:$0xff] }
 0x1fd   : > { %v6420_v10 = vpop.f32.mrf.mxu1  ;;  %v3378_v27 = vadd.f32 %v9649_v18, %v9648_v33  ;;  %v3383_v39 = vadd.f32 %v9652_v43, %v9651_v62 }
 0x1fe   : > { %v4921_v30 = vpop.f32.mrf.mxu0  ;;  %5113 = vst [vmem:[%s9287_s8 + $0x50] sm:$0xff] %v5081_v19  ;;  %v5079_v15 = vmax.f32 %v5047_v48, 0.0  ;;  %v5050_v22 = vadd.f32 %v9273_v8, %v5011_v37  ;;  %v5009_v2 = vadd.f32 %v4908_v9, %v4511_v26  ;;  %v4516_v59 = vadd.f32 %v6420_v10, %v3762_v51  ;;  %v9650_v9 = vld [vmem:[#allocation12_spill] sm:$0xff]  ;;  %v9654_v48 = vld [vmem:[#allocation18_spill] sm:$0xff]  ;;  %v9655_v37 = vld [vmem:[#allocation25_spill] sm:$0xff] }
 0x1ff   : > { %v4423_v61 = vpop.f32.mrf.mxu1  ;;  %v3767_v56 = vadd.f32 %v9650_v9, %v3380_v36  ;;  %v3765_v19 = vadd.f32 %v9653_v60, %v3378_v27  ;;  %v3381_v26 = vadd.f32 %v9655_v37, %v9654_v48  ;;  %v9662_v36 = vld [vmem:[#allocation24_spill] sm:$0xff]  ;;  %v9665_v27 = vld [vmem:[#allocation26_spill] sm:$0xff] }
 0x200   : > { %v6469_v46 = vpop.f32.mrf.mxu0  ;;  %5111 = vst [vmem:[%s9287_s8 + $0x40] sm:$0xff] %v5079_v15  ;;  %v5082_v58 = vmax.f32 %v5050_v22, 0.0  ;;  %v5048_v5 = vadd.f32 %v9273_v8, %v5009_v2  ;;  %v5014_v17 = vadd.f32 %v6468_v1, %v4516_v59  ;;  %v4514_v3 = vadd.f32 %v4423_v61, %v3760_v4  ;;  %v9656_v2 = vld [vmem:[#allocation19_spill] sm:$0xff] }
 0x201   : > { %v6421_v35 = vpop.f32.mrf.mxu1  ;;  %v3770_v59 = vadd.f32 %v9656_v2, %v3383_v39  ;;  %v9668_v39 = vld [vmem:[#allocation28_spill] sm:$0xff] }
 0x202   : > { %v4924_v52 = vpop.f32.mrf.mxu0  ;;  %5114 = vst [vmem:[%s9287_s8 + $0x58] sm:$0xff] %v5082_v58  ;;  %v5080_v25 = vmax.f32 %v5048_v5, 0.0  ;;  %v5053_v44 = vadd.f32 %v9273_v8, %v5014_v17  ;;  %v5012_v55 = vadd.f32 %v4921_v30, %v4514_v3  ;;  %v4517_v29 = vadd.f32 %v6421_v35, %v3763_v21  ;;  %v9658_v21 = vld [vmem:[#allocation27_spill] sm:$0xff] }
 0x203   : > { %v4426_v45 = vpop.f32.mrf.mxu1  ;;  %v9660_v35 = vld [vmem:[#allocation15_spill] sm:$0xff] }
 0x204   : > { %5112 = vst [vmem:[%s9287_s8 + $0x48] sm:$0xff] %v5080_v25  ;;  %v5085_v14 = vmax.f32 %v5053_v44, 0.0  ;;  %v5051_v42 = vadd.f32 %v9273_v8, %v5012_v55  ;;  %v5015_v13 = vadd.f32 %v6469_v46, %v4517_v29  ;;  %v4515_v54 = vadd.f32 %v4426_v45, %v3761_v28  ;;  %v9657_v46 = vld [vmem:[#allocation13_spill] sm:$0xff]  ;;  %v9659_v28 = vld [vmem:[#allocation22_spill] sm:$0xff] }
 0x205   : > { %v6472_v6 = vpop.f32.mrf.mxu0  ;;  %v6424_v32 = vpop.f32.mrf.mxu1  ;;  %v3384_v0 = vadd.f32 %v9658_v21, %v9657_v46  ;;  %v3768_v38 = vadd.f32 %v9659_v28, %v3381_v26  ;;  %v9661_v25 = vld [vmem:[#allocation29_spill] sm:$0xff]  ;;  %v9671_v26 = vld [vmem:[#allocation30_spill] sm:$0xff] }
 0x206   : > { %5117 = vst [vmem:[%s9287_s8 + $0x70] sm:$0xff] %v5085_v14  ;;  %v5083_v7 = vmax.f32 %v5051_v42, 0.0  ;;  %v5054_v24 = vadd.f32 %v9273_v8, %v5015_v13  ;;  %v5013_v23 = vadd.f32 %v4924_v52, %v4515_v54  ;;  %v4520_v34 = vadd.f32 %v6424_v32, %v3766_v41  ;;  %v9663_v14 = vld [vmem:[#allocation17_spill] sm:$0xff]  ;;  %v9664_v42 = vld [vmem:[#allocation31_spill] sm:$0xff] }
 0x207   : > { %v4937_v57 = vpop.f32.mrf.mxu0  ;;  %v4439_v50 = vpop.f32.mrf.mxu1  ;;  %v3382_v44 = vadd.f32 %v9661_v25, %v9660_v35  ;;  %v3771_v45 = vadd.f32 %v9662_v36, %v3384_v0  ;;  %v3387_v13 = vadd.f32 %v9664_v42, %v9663_v14  ;;  %v9674_v0 = vld [vmem:[#allocation32_spill] sm:$0xff] }
 0x208   : > { %5115 = vst [vmem:[%s9287_s8 + $0x60] sm:$0xff] %v5083_v7  ;;  %v5086_v16 = vmax.f32 %v5054_v24, 0.0  ;;  %v5052_v53 = vadd.f32 %v9273_v8, %v5013_v23  ;;  %v5018_v1 = vadd.f32 %v6472_v6, %v4520_v34  ;;  %v4518_v51 = vadd.f32 %v4439_v50, %v3764_v40  ;;  %v9666_v7 = vld [vmem:[#allocation20_spill] sm:$0xff]  ;;  %v9667_v24 = vld [vmem:[#allocation33_spill] sm:$0xff] }
 0x209   : > { %v6473_v12 = vpop.f32.mrf.mxu0  ;;  %v6425_v30 = vpop.f32.mrf.mxu1  ;;  %v3769_v32 = vadd.f32 %v9665_v27, %v3382_v44  ;;  %v3385_v23 = vadd.f32 %v9667_v24, %v9666_v7  ;;  %v3774_v50 = vadd.f32 %v9668_v39, %v3387_v13  ;;  %v9677_v44 = vld [vmem:[#allocation34_spill] sm:$0xff]  ;;  %v9680_v13 = vld [vmem:[#allocation36_spill] sm:$0xff] }
 0x20a   : > { %5118 = vst [vmem:[%s9287_s8 + $0x78] sm:$0xff] %v5086_v16  ;;  %v5084_v4 = vmax.f32 %v5052_v53, 0.0  ;;  %v5057_v20 = vadd.f32 %v9273_v8, %v5018_v1  ;;  %v5016_v10 = vadd.f32 %v4937_v57, %v4518_v51  ;;  %v4521_v15 = vadd.f32 %v6425_v30, %v3767_v56  ;;  %v9669_v16 = vld [vmem:[#allocation2_spill] sm:$0xff]  ;;  %v9670_v53 = vld [vmem:[#allocation35_spill] sm:$0xff] }
 0x20b   : > { %v4940_v49 = vpop.f32.mrf.mxu0  ;;  %v4442_v61 = vpop.f32.mrf.mxu1  ;;  %v3388_v1 = vadd.f32 %v9670_v53, %v9669_v16  ;;  %v3772_v30 = vadd.f32 %v9671_v26, %v3385_v23  ;;  %v9683_v24 = vld [vmem:[#allocation38_spill] sm:$0xff]  ;;  %v9685_v16 = vld [vmem:[#allocation40_spill] sm:$0xff] }
 0x20c   : > { %5116 = vst [vmem:[%s9287_s8 + $0x68] sm:$0xff] %v5084_v4  ;;  %v5089_v58 = vmax.f32 %v5057_v20, 0.0  ;;  %v5055_v5 = vadd.f32 %v9273_v8, %v5016_v10  ;;  %v5019_v17 = vadd.f32 %v6473_v12, %v4521_v15  ;;  %v4519_v3 = vadd.f32 %v4442_v61, %v3765_v19  ;;  %v9672_v4 = vld [vmem:[#allocation5_spill] sm:$0xff] }
 0x20d   : > { %v6476_v22 = vpop.f32.mrf.mxu0  ;;  %v6428_v55 = vpop.f32.mrf.mxu1  ;;  %v9673_v20 = vld [vmem:[#allocation37_spill] sm:$0xff]  ;;  %v3775_v61 = vadd.f32 %v9674_v0, %v3388_v1 }
 0x20e   : > { %5121 = vst [vmem:[%s9287_s8 + $0x90] sm:$0xff] %v5089_v58  ;;  %v5087_v29 = vmax.f32 %v5055_v5, 0.0  ;;  %v5058_v6 = vadd.f32 %v9273_v8, %v5019_v17  ;;  %v5017_v41 = vadd.f32 %v4940_v49, %v4519_v3  ;;  %v4524_v63 = vadd.f32 %v6428_v55, %v3770_v59  ;;  %v9675_v58 = vld [vmem:[#allocation4_spill] sm:$0xff]  ;;  %v9676_v5 = vld [vmem:[#allocation39_spill] sm:$0xff] }
 0x20f   : > { %v4953_v52 = vpop.f32.mrf.mxu0  ;;  %v4455_v54 = vpop.f32.mrf.mxu1  ;;  %v3386_v10 = vadd.f32 %v9673_v20, %v9672_v4  ;;  %v3391_v17 = vadd.f32 %v9676_v5, %v9675_v58 }
 0x210   : > { %5119 = vst [vmem:[%s9287_s8 + $0x80] sm:$0xff] %v5087_v29  ;;  %v5090_v57 = vmax.f32 %v5058_v6, 0.0  ;;  %v5056_v47 = vadd.f32 %v9273_v8, %v5017_v41  ;;  %v5022_v40 = vadd.f32 %v6476_v22, %v4524_v63  ;;  %v4522_v33 = vadd.f32 %v4455_v54, %v3768_v38  ;;  %v9678_v29 = vld [vmem:[#allocation6_spill] sm:$0xff]  ;;  %v9679_v6 = vld [vmem:[#allocation41_spill] sm:$0xff] }
 0x211   : > { %v6477_v11 = vpop.f32.mrf.mxu0  ;;  %v6429_v34 = vpop.f32.mrf.mxu1  ;;  %v3773_v55 = vadd.f32 %v9677_v44, %v3386_v10  ;;  %v3389_v41 = vadd.f32 %v9679_v6, %v9678_v29  ;;  %v3778_v54 = vadd.f32 %v9680_v13, %v3391_v17 }
 0x212   : > { %5122 = vst [vmem:[%s9287_s8 + $0x98] sm:$0xff] %v5090_v57  ;;  %v5088_v12 = vmax.f32 %v5056_v47, 0.0  ;;  %v5061_v9 = vadd.f32 %v9273_v8, %v5022_v40  ;;  %v5020_v56 = vadd.f32 %v4953_v52, %v4522_v33  ;;  %v4525_v62 = vadd.f32 %v6429_v34, %v3771_v45  ;;  %v9681_v57 = vld [vmem:[#allocation8_spill] sm:$0xff]  ;;  %v9682_v47 = vld [vmem:[#allocation43_spill] sm:$0xff]  ;;  %v9684_v34 = vld [vmem:[#allocation10_spill] sm:$0xff] }
 0x213   : > { %v4956_v18 = vpop.f32.mrf.mxu0  ;;  %v4458_v51 = vpop.f32.mrf.mxu1  ;;  %v3392_v40 = vadd.f32 %v9682_v47, %v9681_v57  ;;  %v3776_v23 = vadd.f32 %v9683_v24, %v3389_v41 }
 0x214   : > { %5120 = vst [vmem:[%s9287_s8 + $0x88] sm:$0xff] %v5088_v12  ;;  %v5093_v49 = vmax.f32 %v5061_v9, 0.0  ;;  %v5059_v60 = vadd.f32 %v9273_v8, %v5020_v56  ;;  %v5023_v19 = vadd.f32 %v6477_v11, %v4525_v62  ;;  %v4523_v48 = vadd.f32 %v4458_v51, %v3769_v32 }
 0x215   : > { %v6480_v43 = vpop.f32.mrf.mxu0  ;;  %v6432_v15 = vpop.f32.mrf.mxu1  ;;  %v3390_v12 = vadd.f32 %v9261_v31, %v9684_v34  ;;  %v3779_v53 = vadd.f32 %v9685_v16, %v3392_v40  ;;  %v9686_v31 = vld [vmem:[#allocation42_spill] sm:$0xff] }
 0x216   : > { %5125 = vst [vmem:[%s9287_s8 + $0xb0] sm:$0xff] %v5093_v49  ;;  %v5091_v22 = vmax.f32 %v5059_v60, 0.0  ;;  %v5062_v2 = vadd.f32 %v9273_v8, %v5023_v19  ;;  %v5021_v59 = vadd.f32 %v4956_v18, %v4523_v48  ;;  %v4528_v46 = vadd.f32 %v6432_v15, %v3774_v50 }
 0x217   : > { %v4969_v37 = vpop.f32.mrf.mxu0  ;;  %v4471_v3 = vpop.f32.mrf.mxu1  ;;  %v3777_v48 = vadd.f32 %v9686_v31, %v3390_v12 }
 0x218   : > { %5123 = vst [vmem:[%s9287_s8 + $0xa0] sm:$0xff] %v5091_v22  ;;  %v5094_v52 = vmax.f32 %v5062_v2, 0.0  ;;  %v5060_v28 = vadd.f32 %v9273_v8, %v5021_v59  ;;  %v5026_v38 = vadd.f32 %v6480_v43, %v4528_v46  ;;  %v4526_v35 = vadd.f32 %v4471_v3, %v3772_v30 }
 0x219   : > { %v6481_v21 = vpop.f32.mrf.mxu0  ;;  %v6433_v63 = vpop.f32.mrf.mxu1 }
 0x21a   : > { %5126 = vst [vmem:[%s9287_s8 + $0xb8] sm:$0xff] %v5094_v52  ;;  %v5092_v11 = vmax.f32 %v5060_v28, 0.0  ;;  %v5065_v36 = vadd.f32 %v9273_v8, %v5026_v38  ;;  %v5024_v45 = vadd.f32 %v4969_v37, %v4526_v35  ;;  %v4529_v14 = vadd.f32 %v6433_v63, %v3775_v61 }
 0x21b   : > { %v4972_v25 = vpop.f32.mrf.mxu0  ;;  %v4474_v33 = vpop.f32.mrf.mxu1 }
 0x21c   : > { %5124 = vst [vmem:[%s9287_s8 + $0xa8] sm:$0xff] %v5092_v11  ;;  %v5097_v18 = vmax.f32 %v5065_v36, 0.0  ;;  %v5063_v27 = vadd.f32 %v9273_v8, %v5024_v45  ;;  %v5027_v32 = vadd.f32 %v6481_v21, %v4529_v14  ;;  %v4527_v7 = vadd.f32 %v4474_v33, %v3773_v55 }
 0x21d   : > { %v6484_v42 = vpop.f32.mrf.mxu0  ;;  %v6436_v9 = vpop.f32.mrf.mxu1 }
 0x21e   : > { %5129 = vst [vmem:[%s9287_s8 + $0xd0] sm:$0xff] %v5097_v18  ;;  %v5095_v62 = vmax.f32 %v5063_v27, 0.0  ;;  %v5066_v43 = vadd.f32 %v9273_v8, %v5027_v32  ;;  %v5025_v39 = vadd.f32 %v4972_v25, %v4527_v7  ;;  %v4532_v50 = vadd.f32 %v6436_v9, %v3778_v54 }
 0x21f   : > { %v4985_v56 = vpop.f32.mrf.mxu0  ;;  %v4487_v1 = vpop.f32.mrf.mxu1 }
 0x220   : > { %5127 = vst [vmem:[%s9287_s8 + $0xc0] sm:$0xff] %v5095_v62  ;;  %v5098_v51 = vmax.f32 %v5066_v43, 0.0  ;;  %v5064_v49 = vadd.f32 %v9273_v8, %v5025_v39  ;;  %v5030_v60 = vadd.f32 %v6484_v42, %v4532_v50  ;;  %v4530_v19 = vadd.f32 %v4487_v1, %v3776_v23 }
 0x221   : > { %v6437_v37 = vpop.f32.mrf.mxu1  ;;  %v6485_v26 = vpop.f32.mrf.mxu0 }
 0x222   : > { %5130 = vst [vmem:[%s9287_s8 + $0xd8] sm:$0xff] %v5098_v51  ;;  %v5096_v30 = vmax.f32 %v5064_v49, 0.0  ;;  %v5069_v4 = vadd.f32 %v9273_v8, %v5030_v60  ;;  %v5028_v20 = vadd.f32 %v4985_v56, %v4530_v19  ;;  %v4533_v10 = vadd.f32 %v6437_v37, %v3779_v53 }
 0x223   : > { %v4490_v15 = vpop.f32.mrf.mxu1  ;;  %v4988_v21 = vpop.f32.mrf.mxu0 }
 0x224   : > { %5128 = vst [vmem:[%s9287_s8 + $0xc8] sm:$0xff] %v5096_v30  ;;  %v5101_v22 = vmax.f32 %v5069_v4, 0.0  ;;  %v5067_v2 = vadd.f32 %v9273_v8, %v5028_v20  ;;  %v5031_v59 = vadd.f32 %v6485_v26, %v4533_v10  ;;  %v4531_v46 = vadd.f32 %v4490_v15, %v3777_v48 }
 0x226   : > { %5133 = vst [vmem:[%s9287_s8 + $0xf0] sm:$0xff] %v5101_v22  ;;  %v5099_v0 = vmax.f32 %v5067_v2, 0.0  ;;  %v5070_v61 = vadd.f32 %v9273_v8, %v5031_v59  ;;  %v5029_v58 = vadd.f32 %v4988_v21, %v4531_v46 }
 0x228   : > { %5131 = vst [vmem:[%s9287_s8 + $0xe0] sm:$0xff] %v5099_v0  ;;  %v5102_v5 = vmax.f32 %v5070_v61, 0.0  ;;  %v5068_v17 = vadd.f32 %v9273_v8, %v5029_v58 }
 0x22a   : > { %5134 = vst [vmem:[%s9287_s8 + $0xf8] sm:$0xff] %v5102_v5  ;;  %v5100_v3 = vmax.f32 %v5068_v17, 0.0 }
 0x22c   : > { %5132 = vst [vmem:[%s9287_s8 + $0xe8] sm:$0xff] %v5100_v3 }
 0x22d PF: > { %s13_s14 = sadd.s32 1, %s6678_s14   ;;  %s9687_s12 = smov %s6674_s13 }
 0x22e   : > { %p10_p5 = scmp.ge.s32.totalorder %s13_s14, 4   ;;  %s9688_s13 = smov %s9690_s15 }
 0x230   :  { %12 = sbr.rel (!%p10_p5) target bundleno = 2 (0x2), region = 78 }

</bundles_post_ra>
